<compile_context>
chip_gen: v7x
topology: tpu7x:2x2x1
jax: 0.10.0
libtpu: 0.0.40
codegen_flags: <defaults>
</compile_context>

<pallas_src>
import math

import jax
import jax.numpy as jnp
from jax import lax
from jax.experimental import pallas as pl
from jax.experimental.pallas import tpu as pltpu

# ----------------- configuration (small, consistent with __init__) -----------------
INPUT_DIM   = 32    # must equal HIDDEN for the ConvReluNorm residual
HIDDEN      = 32    # hidden_channels
FILTER      = 64    # filter_channels
N_HEADS     = 2
N_LAYERS    = 2
KERNEL_SIZE = 3     # encoder FFN kernel size (odd -> symmetric same-padding)
WINDOW      = 4     # relative-attention window_size
PRENET_K    = 5
PRENET_L    = 3
N_SPKS      = 1     # TODO(synk): n_spks > 1 speaker-embedding concat path not implemented.
LN_EPS      = 1e-4  # Glow-TTS channel LayerNorm epsilon

B    = 2
T    = 16
K_CH = HIDDEN // N_HEADS
NEG  = -1e4

assert INPUT_DIM == HIDDEN, "prenet residual requires input_dim == hidden_channels"


# ------------------------------- in-kernel helpers ---------------------------------
def _dot_nt(a, b):
    """a @ b.T without an explicit transpose."""
    return lax.dot_general(a, b, (((1,), (1,)), ((), ())),
                           preferred_element_type=jnp.float32)


def _im2col(x, k):
    """(T, C) -> (T, K*C): column block kk holds x[i + kk - pad] (zero padded)."""
    pad = k // 2
    t, c = x.shape
    z = jnp.zeros((pad, c), jnp.float32)
    xp = jnp.concatenate([z, x, z], axis=0)              # (t + 2*pad, c)
    cols = [xp[kk:kk + t, :] for kk in range(k)]         # static sublane slices
    return jnp.concatenate(cols, axis=-1)                # (t, k*c)


def _conv1d(x, w_flat, b, k):
    """'same' 1-D conv as a single matmul.  w_flat: (K*Cin, Cout), b: (1, Cout)."""
    return jnp.dot(_im2col(x, k), w_flat, preferred_element_type=jnp.float32) + b


def _layer_norm(x, g, b):
    """Glow-TTS channel LayerNorm (per time step over channels)."""
    mean = jnp.mean(x, axis=-1, keepdims=True)
    var = jnp.mean((x - mean) ** 2, axis=-1, keepdims=True)
    return (x - mean) * lax.rsqrt(var + LN_EPS) * g + b


# ----------------------------------- kernel ----------------------------------------
def mel_decoder_kernel(
    xlen_ref,                                     # scalar-prefetch: (B,) int32 (SMEM)
    x_ref,                                        # (1, T, HIDDEN) VMEM block
    pre_cw_ref, pre_cb_ref, pre_g_ref, pre_b_ref, pre_pw_ref, pre_pb_ref,
    qw_ref, qb_ref, kw_ref, kb_ref, vw_ref, vb_ref, ow_ref, ob_ref,
    ek_ref, ev_ref, g1_ref, b1_ref,
    f1w_ref, f1b_ref, f2w_ref, f2b_ref, g2_ref, b2_ref,
    out_ref,
):
    bidx = pl.program_id(0)
    length = xlen_ref[bidx]

    # ---- masks & diagonal band masks: built ONCE, reused everywhere -----------
    col = lax.broadcasted_iota(jnp.int32, (T, 1), 0)
    row = lax.broadcasted_iota(jnp.int32, (1, T), 1)
    mask = (col < length).astype(jnp.float32)             # (T, 1)  == x_mask
    mask_row = (row < length).astype(jnp.float32)         # (1, T)
    attn_mask = mask * mask_row                           # (T, T)

    i_idx = lax.broadcasted_iota(jnp.int32, (T, T), 0)
    j_idx = lax.broadcasted_iota(jnp.int32, (T, T), 1)
    dm = j_idx - i_idx
    diag_masks = [(dm == (di - WINDOW)).astype(jnp.float32)
                  for di in range(2 * WINDOW + 1)]        # 2W+1 x (T, T)

    x = x_ref[0].astype(jnp.float32)                      # (T, C) time-major

    # ---------------- prenet: ConvReluNorm ----------------
    x_org = x
    h = x
    for i in range(PRENET_L):
        h = _conv1d(h * mask, pre_cw_ref[i], pre_cb_ref[i], PRENET_K)
        h = _layer_norm(h, pre_g_ref[i], pre_b_ref[i])
        h = jnp.maximum(h, 0.0)                           # ReLU; dropout = identity (eval)
    # proj is zero-initialised in ConvReluNorm.__init__ (kept faithful)
    x = x_org + jnp.dot(h, pre_pw_ref[...], preferred_element_type=jnp.float32) + pre_pb_ref[...]
    x = x * mask

    # ---------------- encoder (rel-pos MHA + conv FFN) ----------------
    scale = 1.0 / math.sqrt(K_CH)
    for l in range(N_LAYERS):
        x = x * mask
        ek_l = ek_ref[l]                                  # (2W+1, K_CH) shared over heads
        ev_l = ev_ref[l]
        att = jnp.zeros((T, HIDDEN), jnp.float32) + ob_ref[l]     # conv_o bias
        for hh in range(N_HEADS):
            lh = l * N_HEADS + hh                         # per-head pre-split weights
            qh = (jnp.dot(x, qw_ref[lh], preferred_element_type=jnp.float32)
                  + qb_ref[lh]) * scale
            kh = jnp.dot(x, kw_ref[lh], preferred_element_type=jnp.float32) + kb_ref[lh]
            vh = jnp.dot(x, vw_ref[lh], preferred_element_type=jnp.float32) + vb_ref[lh]

            scores = _dot_nt(qh, kh)                      # (T, T)
            # relative-key logits: scores[i, i+d] += (q_i/sqrt(d)) . emb_rel_k[W+d]
            rel_k = _dot_nt(qh, ek_l)                     # (T, 2W+1)
            for di in range(2 * WINDOW + 1):
                scores = scores + diag_masks[di] * rel_k[:, di:di + 1]

            scores = jnp.where(attn_mask == 0.0, NEG, scores)   # masked_fill(mask==0, -1e4)
            m = jnp.max(scores, axis=-1, keepdims=True)
            e = jnp.exp(scores - m)
            p = e / jnp.sum(e, axis=-1, keepdims=True)    # softmax over keys

            oh = jnp.dot(p, vh, preferred_element_type=jnp.float32)
            # relative-value: band-extract p (T, 2W+1) then one matmul with emb_rel_v
            band = [jnp.sum(p * diag_masks[di], axis=-1, keepdims=True)
                    for di in range(2 * WINDOW + 1)]
            p_band = jnp.concatenate(band, axis=-1)       # (T, 2W+1)
            oh = oh + jnp.dot(p_band, ev_l, preferred_element_type=jnp.float32)

            # conv_o on head-major concat == per-head partial matmuls summed
            att = att + jnp.dot(oh, ow_ref[lh], preferred_element_type=jnp.float32)

        x = _layer_norm(x + att, g1_ref[l], b1_ref[l])

        # FFN: conv -> relu -> conv, masked at each conv input
        y = _conv1d(x * mask, f1w_ref[l], f1b_ref[l], KERNEL_SIZE)
        y = jnp.maximum(y, 0.0)
        y = _conv1d(y * mask, f2w_ref[l], f2b_ref[l], KERNEL_SIZE)
        y = y * mask
        x = _layer_norm(x + y, g2_ref[l], b2_ref[l])

    x = x * mask
    out_ref[0] = x


# ------------------------------- params & wrapper -----------------------------------
PARAM_ORDER = ["pre_cw", "pre_cb", "pre_g", "pre_b", "pre_pw", "pre_pb",
               "qw", "qb", "kw", "kb", "vw", "vb", "ow", "ob",
               "ek", "ev", "g1", "b1", "f1w", "f1b", "f2w", "f2b", "g2", "b2"]


def make_params(key):
    keys = iter(jax.random.split(key, 16))
    nrm = lambda k, s, sc: sc * jax.random.normal(k, s, jnp.float32)
    p = {}
    # prenet (ConvReluNorm): conv weights stored flattened for im2col: (L, K*Cin, Cout)
    p["pre_cw"] = nrm(next(keys), (PRENET_L, PRENET_K * HIDDEN, HIDDEN), 0.08)
    p["pre_cb"] = nrm(next(keys), (PRENET_L, 1, HIDDEN), 0.05)
    p["pre_g"]  = jnp.ones((PRENET_L, 1, HIDDEN), jnp.float32)
    p["pre_b"]  = jnp.zeros((PRENET_L, 1, HIDDEN), jnp.float32)
    p["pre_pw"] = jnp.zeros((HIDDEN, HIDDEN), jnp.float32)   # zero-init as in ConvReluNorm.__init__
    p["pre_pb"] = jnp.zeros((1, HIDDEN), jnp.float32)
    # encoder 1x1 convs, pre-split per head: leading dim = layer * N_HEADS + head
    LH = N_LAYERS * N_HEADS
    for name in ("qw", "kw", "vw"):
        p[name] = nrm(next(keys), (LH, HIDDEN, K_CH), HIDDEN ** -0.5)
    p["ow"] = nrm(next(keys), (LH, K_CH, HIDDEN), HIDDEN ** -0.5)
    for name in ("qb", "kb", "vb"):
        p[name] = jnp.zeros((LH, 1, K_CH), jnp.float32)
    p["ob"] = jnp.zeros((N_LAYERS, 1, HIDDEN), jnp.float32)
    p["ek"] = nrm(next(keys), (N_LAYERS, 2 * WINDOW + 1, K_CH), K_CH ** -0.5)
    p["ev"] = nrm(next(keys), (N_LAYERS, 2 * WINDOW + 1, K_CH), K_CH ** -0.5)
    p["g1"] = jnp.ones((N_LAYERS, 1, HIDDEN), jnp.float32)
    p["b1"] = jnp.zeros((N_LAYERS, 1, HIDDEN), jnp.float32)
    # FFN conv weights stored flattened for im2col
    p["f1w"] = nrm(next(keys), (N_LAYERS, KERNEL_SIZE * HIDDEN, FILTER),
                   (HIDDEN * KERNEL_SIZE) ** -0.5)
    p["f1b"] = jnp.zeros((N_LAYERS, 1, FILTER), jnp.float32)
    p["f2w"] = nrm(next(keys), (N_LAYERS, KERNEL_SIZE * FILTER, HIDDEN),
                   (FILTER * KERNEL_SIZE) ** -0.5)
    p["f2b"] = jnp.zeros((N_LAYERS, 1, HIDDEN), jnp.float32)
    p["g2"] = jnp.ones((N_LAYERS, 1, HIDDEN), jnp.float32)
    p["b2"] = jnp.zeros((N_LAYERS, 1, HIDDEN), jnp.float32)
    return p


def _full_spec(shape):
    nd = len(shape)
    return pl.BlockSpec(shape, lambda b, xlen, _nd=nd: (0,) * _nd)


@jax.jit
def mel_decoder_forward(x, x_lengths, params):
    """x: (B, INPUT_DIM, T) float32, x_lengths: (B,) int32.  Returns (x_out, x_mask)."""
    x_tc = jnp.transpose(x, (0, 2, 1)).astype(jnp.float32)           # (B, T, C) time-major
    args = [params[k] for k in PARAM_ORDER]

    in_specs = [pl.BlockSpec((1, T, HIDDEN), lambda b, xlen: (b, 0, 0))]
    in_specs += [_full_spec(a.shape) for a in args]                  # grid-invariant weights

    out = pl.pallas_call(
        mel_decoder_kernel,
        out_shape=jax.ShapeDtypeStruct((B, T, HIDDEN), jnp.float32),
        grid_spec=pltpu.PrefetchScalarGridSpec(
            num_scalar_prefetch=1,
            grid=(B,),
            in_specs=in_specs,
            out_specs=pl.BlockSpec((1, T, HIDDEN), lambda b, xlen: (b, 0, 0)),
        ),
        # batch elements are independent -> shard across TensorCores on v7x
        compiler_params=pltpu.CompilerParams(dimension_semantics=("parallel",)),
    )(x_lengths.astype(jnp.int32), x_tc, *args)

    x_out = jnp.transpose(out, (0, 2, 1))                            # back to (B, C, T)
    x_mask = (jnp.arange(T)[None, :] < x_lengths[:, None]).astype(jnp.float32)[:, None, :]
    return x_out, x_mask


if __name__ == "__main__":
    key = jax.random.PRNGKey(0)
    k_x, k_p = jax.random.split(key)
    params = make_params(k_p)

    x = jax.random.normal(k_x, (B, INPUT_DIM, T), jnp.float32)       # (b, d, ty)
    x_lengths = jnp.array([T, 11], dtype=jnp.int32)                  # (b,)

    y, y_mask = mel_decoder_forward(x, x_lengths, params)
    jax.block_until_ready((y, y_mask))

    assert y.shape == (B, HIDDEN, T) and y_mask.shape == (B, 1, T)
    assert bool(jnp.all(jnp.isfinite(y)))
    print("KERNEL_OK")
</pallas_src>

<mosaic_0001>
module attributes {stable_mosaic.version = 11 : i64} {
  func.func @mel_decoder_kernel(%arg0: i32, %arg1: memref<2xi32, #tpu.memory_space<smem>>, %arg2: memref<1x16x32xf32, #tpu.memory_space<vmem>>, %arg3: memref<3x160x32xf32, #tpu.memory_space<vmem>>, %arg4: memref<3x1x32xf32, #tpu.memory_space<vmem>>, %arg5: memref<3x1x32xf32, #tpu.memory_space<vmem>>, %arg6: memref<3x1x32xf32, #tpu.memory_space<vmem>>, %arg7: memref<32x32xf32, #tpu.memory_space<vmem>>, %arg8: memref<1x32xf32, #tpu.memory_space<vmem>>, %arg9: memref<4x32x16xf32, #tpu.memory_space<vmem>>, %arg10: memref<4x1x16xf32, #tpu.memory_space<vmem>>, %arg11: memref<4x32x16xf32, #tpu.memory_space<vmem>>, %arg12: memref<4x1x16xf32, #tpu.memory_space<vmem>>, %arg13: memref<4x32x16xf32, #tpu.memory_space<vmem>>, %arg14: memref<4x1x16xf32, #tpu.memory_space<vmem>>, %arg15: memref<4x16x32xf32, #tpu.memory_space<vmem>>, %arg16: memref<2x1x32xf32, #tpu.memory_space<vmem>>, %arg17: memref<2x9x16xf32, #tpu.memory_space<vmem>>, %arg18: memref<2x9x16xf32, #tpu.memory_space<vmem>>, %arg19: memref<2x1x32xf32, #tpu.memory_space<vmem>>, %arg20: memref<2x1x32xf32, #tpu.memory_space<vmem>>, %arg21: memref<2x96x64xf32, #tpu.memory_space<vmem>>, %arg22: memref<2x1x64xf32, #tpu.memory_space<vmem>>, %arg23: memref<2x192x32xf32, #tpu.memory_space<vmem>>, %arg24: memref<2x1x32xf32, #tpu.memory_space<vmem>>, %arg25: memref<2x1x32xf32, #tpu.memory_space<vmem>>, %arg26: memref<2x1x32xf32, #tpu.memory_space<vmem>>, %arg27: memref<1x16x32xf32, #tpu.memory_space<vmem>>) attributes {dimension_semantics = [#tpu.dimension_semantics<parallel>], iteration_bounds = array<i64: 2>, scalar_prefetch = 1 : i64, scratch_operands = 0 : i64, tpu.core_type = #tpu.core_type<tc>, window_params = [{transform_indices = @transform_0, window_bounds = array<i64: 1, 16, 32>}, {pipeline_mode = #tpu.pipeline_mode<synchronous>, transform_indices = @transform_1, window_bounds = array<i64: 3, 160, 32>}, {pipeline_mode = #tpu.pipeline_mode<synchronous>, transform_indices = @transform_2, window_bounds = array<i64: 3, 1, 32>}, {pipeline_mode = #tpu.pipeline_mode<synchronous>, transform_indices = @transform_3, window_bounds = array<i64: 3, 1, 32>}, {pipeline_mode = #tpu.pipeline_mode<synchronous>, transform_indices = @transform_4, window_bounds = array<i64: 3, 1, 32>}, {pipeline_mode = #tpu.pipeline_mode<synchronous>, transform_indices = @transform_5, window_bounds = array<i64: 32, 32>}, {pipeline_mode = #tpu.pipeline_mode<synchronous>, transform_indices = @transform_6, window_bounds = array<i64: 1, 32>}, {pipeline_mode = #tpu.pipeline_mode<synchronous>, transform_indices = @transform_7, window_bounds = array<i64: 4, 32, 16>}, {pipeline_mode = #tpu.pipeline_mode<synchronous>, transform_indices = @transform_8, window_bounds = array<i64: 4, 1, 16>}, {pipeline_mode = #tpu.pipeline_mode<synchronous>, transform_indices = @transform_9, window_bounds = array<i64: 4, 32, 16>}, {pipeline_mode = #tpu.pipeline_mode<synchronous>, transform_indices = @transform_10, window_bounds = array<i64: 4, 1, 16>}, {pipeline_mode = #tpu.pipeline_mode<synchronous>, transform_indices = @transform_11, window_bounds = array<i64: 4, 32, 16>}, {pipeline_mode = #tpu.pipeline_mode<synchronous>, transform_indices = @transform_12, window_bounds = array<i64: 4, 1, 16>}, {pipeline_mode = #tpu.pipeline_mode<synchronous>, transform_indices = @transform_13, window_bounds = array<i64: 4, 16, 32>}, {pipeline_mode = #tpu.pipeline_mode<synchronous>, transform_indices = @transform_14, window_bounds = array<i64: 2, 1, 32>}, {pipeline_mode = #tpu.pipeline_mode<synchronous>, transform_indices = @transform_15, window_bounds = array<i64: 2, 9, 16>}, {pipeline_mode = #tpu.pipeline_mode<synchronous>, transform_indices = @transform_16, window_bounds = array<i64: 2, 9, 16>}, {pipeline_mode = #tpu.pipeline_mode<synchronous>, transform_indices = @transform_17, window_bounds = array<i64: 2, 1, 32>}, {pipeline_mode = #tpu.pipeline_mode<synchronous>, transform_indices = @transform_18, window_bounds = array<i64: 2, 1, 32>}, {pipeline_mode = #tpu.pipeline_mode<synchronous>, transform_indices = @transform_19, window_bounds = array<i64: 2, 96, 64>}, {pipeline_mode = #tpu.pipeline_mode<synchronous>, transform_indices = @transform_20, window_bounds = array<i64: 2, 1, 64>}, {pipeline_mode = #tpu.pipeline_mode<synchronous>, transform_indices = @transform_21, window_bounds = array<i64: 2, 192, 32>}, {pipeline_mode = #tpu.pipeline_mode<synchronous>, transform_indices = @transform_22, window_bounds = array<i64: 2, 1, 32>}, {pipeline_mode = #tpu.pipeline_mode<synchronous>, transform_indices = @transform_23, window_bounds = array<i64: 2, 1, 32>}, {pipeline_mode = #tpu.pipeline_mode<synchronous>, transform_indices = @transform_24, window_bounds = array<i64: 2, 1, 32>}, {transform_indices = @transform_25, window_bounds = array<i64: 1, 16, 32>}]} {
    %0 = arith.index_cast %arg0 : i32 to index
    %1 = memref.load %arg1[%0] : memref<2xi32, #tpu.memory_space<smem>>
    %2 = tpu.iota {dimensions = array<i32: 0>} : vector<16x1xi32>
    %3 = tpu.iota {dimensions = array<i32: 1>} : vector<1x16xi32>
    %4 = vector.broadcast %1 : i32 to vector<16x1xi32>
    %5 = arith.cmpi slt, %2, %4 : vector<16x1xi32>
    %6 = arith.extui %5 : vector<16x1xi1> to vector<16x1xi32>
    %7 = arith.sitofp %6 : vector<16x1xi32> to vector<16x1xf32>
    %8 = vector.broadcast %1 : i32 to vector<1x16xi32>
    %9 = arith.cmpi slt, %3, %8 : vector<1x16xi32>
    %10 = arith.extui %9 : vector<1x16xi1> to vector<1x16xi32>
    %11 = arith.sitofp %10 : vector<1x16xi32> to vector<1x16xf32>
    %12 = vector.broadcast %7 : vector<16x1xf32> to vector<16x16xf32>
    %13 = vector.broadcast %11 : vector<1x16xf32> to vector<16x16xf32>
    %14 = arith.mulf %12, %13 : vector<16x16xf32>
    %15 = tpu.iota {dimensions = array<i32: 0>} : vector<16x16xi32>
    %16 = tpu.iota {dimensions = array<i32: 1>} : vector<16x16xi32>
    %17 = arith.subi %16, %15 : vector<16x16xi32>
    %c-4_i32 = arith.constant -4 : i32
    %18 = vector.broadcast %c-4_i32 : i32 to vector<16x16xi32>
    %19 = arith.cmpi eq, %17, %18 : vector<16x16xi32>
    %20 = arith.extui %19 : vector<16x16xi1> to vector<16x16xi32>
    %21 = arith.sitofp %20 : vector<16x16xi32> to vector<16x16xf32>
    %c-3_i32 = arith.constant -3 : i32
    %22 = vector.broadcast %c-3_i32 : i32 to vector<16x16xi32>
    %23 = arith.cmpi eq, %17, %22 : vector<16x16xi32>
    %24 = arith.extui %23 : vector<16x16xi1> to vector<16x16xi32>
    %25 = arith.sitofp %24 : vector<16x16xi32> to vector<16x16xf32>
    %c-2_i32 = arith.constant -2 : i32
    %26 = vector.broadcast %c-2_i32 : i32 to vector<16x16xi32>
    %27 = arith.cmpi eq, %17, %26 : vector<16x16xi32>
    %28 = arith.extui %27 : vector<16x16xi1> to vector<16x16xi32>
    %29 = arith.sitofp %28 : vector<16x16xi32> to vector<16x16xf32>
    %c-1_i32 = arith.constant -1 : i32
    %30 = vector.broadcast %c-1_i32 : i32 to vector<16x16xi32>
    %31 = arith.cmpi eq, %17, %30 : vector<16x16xi32>
    %32 = arith.extui %31 : vector<16x16xi1> to vector<16x16xi32>
    %33 = arith.sitofp %32 : vector<16x16xi32> to vector<16x16xf32>
    %c0_i32 = arith.constant 0 : i32
    %34 = vector.broadcast %c0_i32 : i32 to vector<16x16xi32>
    %35 = arith.cmpi eq, %17, %34 : vector<16x16xi32>
    %36 = arith.extui %35 : vector<16x16xi1> to vector<16x16xi32>
    %37 = arith.sitofp %36 : vector<16x16xi32> to vector<16x16xf32>
    %c1_i32 = arith.constant 1 : i32
    %38 = vector.broadcast %c1_i32 : i32 to vector<16x16xi32>
    %39 = arith.cmpi eq, %17, %38 : vector<16x16xi32>
    %40 = arith.extui %39 : vector<16x16xi1> to vector<16x16xi32>
    %41 = arith.sitofp %40 : vector<16x16xi32> to vector<16x16xf32>
    %c2_i32 = arith.constant 2 : i32
    %42 = vector.broadcast %c2_i32 : i32 to vector<16x16xi32>
    %43 = arith.cmpi eq, %17, %42 : vector<16x16xi32>
    %44 = arith.extui %43 : vector<16x16xi1> to vector<16x16xi32>
    %45 = arith.sitofp %44 : vector<16x16xi32> to vector<16x16xf32>
    %c3_i32 = arith.constant 3 : i32
    %46 = vector.broadcast %c3_i32 : i32 to vector<16x16xi32>
    %47 = arith.cmpi eq, %17, %46 : vector<16x16xi32>
    %48 = arith.extui %47 : vector<16x16xi1> to vector<16x16xi32>
    %49 = arith.sitofp %48 : vector<16x16xi32> to vector<16x16xf32>
    %c4_i32 = arith.constant 4 : i32
    %50 = vector.broadcast %c4_i32 : i32 to vector<16x16xi32>
    %51 = arith.cmpi eq, %17, %50 : vector<16x16xi32>
    %52 = arith.extui %51 : vector<16x16xi1> to vector<16x16xi32>
    %53 = arith.sitofp %52 : vector<16x16xi32> to vector<16x16xf32>
    %c0 = arith.constant 0 : index
    %c0_0 = arith.constant 0 : index
    %c0_1 = arith.constant 0 : index
    %54 = vector.load %arg2[%c0, %c0_0, %c0_1] : memref<1x16x32xf32, #tpu.memory_space<vmem>>, vector<1x16x32xf32>
    %55 = vector.shape_cast %54 : vector<1x16x32xf32> to vector<16x32xf32>
    %56 = vector.broadcast %7 : vector<16x1xf32> to vector<16x32xf32>
    %57 = arith.mulf %55, %56 : vector<16x32xf32>
    %c0_2 = arith.constant 0 : index
    %c0_3 = arith.constant 0 : index
    %c0_4 = arith.constant 0 : index
    %58 = vector.load %arg3[%c0_2, %c0_3, %c0_4] : memref<3x160x32xf32, #tpu.memory_space<vmem>>, vector<1x160x32xf32>
    %59 = vector.shape_cast %58 : vector<1x160x32xf32> to vector<160x32xf32>
    %c0_5 = arith.constant 0 : index
    %c0_6 = arith.constant 0 : index
    %c0_7 = arith.constant 0 : index
    %60 = vector.load %arg4[%c0_5, %c0_6, %c0_7] : memref<3x1x32xf32, #tpu.memory_space<vmem>>, vector<1x1x32xf32>
    %61 = vector.shape_cast %60 : vector<1x1x32xf32> to vector<1x32xf32>
    %cst = arith.constant 0.000000e+00 : f32
    %62 = vector.broadcast %cst : f32 to vector<2x32xf32>
    %63 = tpu.concatenate %62, %57, %62 in 0 : vector<2x32xf32>, vector<16x32xf32>, vector<2x32xf32> -> vector<20x32xf32>
    %64 = vector.extract_strided_slice %63 {offsets = [0, 0], sizes = [16, 32], strides = [1, 1]} : vector<20x32xf32> to vector<16x32xf32>
    %65 = vector.extract_strided_slice %63 {offsets = [1, 0], sizes = [16, 32], strides = [1, 1]} : vector<20x32xf32> to vector<16x32xf32>
    %66 = vector.extract_strided_slice %63 {offsets = [2, 0], sizes = [16, 32], strides = [1, 1]} : vector<20x32xf32> to vector<16x32xf32>
    %67 = vector.extract_strided_slice %63 {offsets = [3, 0], sizes = [16, 32], strides = [1, 1]} : vector<20x32xf32> to vector<16x32xf32>
    %68 = vector.extract_strided_slice %63 {offsets = [4, 0], sizes = [16, 32], strides = [1, 1]} : vector<20x32xf32> to vector<16x32xf32>
    %69 = tpu.concatenate %64, %65, %66, %67, %68 in 1 : vector<16x32xf32>, vector<16x32xf32>, vector<16x32xf32>, vector<16x32xf32>, vector<16x32xf32> -> vector<16x160xf32>
    %cst_8 = arith.constant dense<0.000000e+00> : vector<16x32xf32>
    %70 = tpu.matmul %69, %59, %cst_8 {dimension_numbers = #tpu.dot_dimension_numbers<[1], [0], [0], [1], [0, 0, 1, 1], [], []>} : vector<16x160xf32>, vector<160x32xf32>, vector<16x32xf32> -> vector<16x32xf32>
    %71 = vector.broadcast %61 : vector<1x32xf32> to vector<16x32xf32>
    %72 = arith.addf %70, %71 : vector<16x32xf32>
    %c0_9 = arith.constant 0 : index
    %c0_10 = arith.constant 0 : index
    %c0_11 = arith.constant 0 : index
    %73 = vector.load %arg5[%c0_9, %c0_10, %c0_11] : memref<3x1x32xf32, #tpu.memory_space<vmem>>, vector<1x1x32xf32>
    %74 = vector.shape_cast %73 : vector<1x1x32xf32> to vector<1x32xf32>
    %c0_12 = arith.constant 0 : index
    %c0_13 = arith.constant 0 : index
    %c0_14 = arith.constant 0 : index
    %75 = vector.load %arg6[%c0_12, %c0_13, %c0_14] : memref<3x1x32xf32, #tpu.memory_space<vmem>>, vector<1x1x32xf32>
    %76 = vector.shape_cast %75 : vector<1x1x32xf32> to vector<1x32xf32>
    %cst_15 = arith.constant dense<0.000000e+00> : vector<16xf32>
    %77 = vector.multi_reduction <add>, %72, %cst_15 [1] : vector<16x32xf32> to vector<16xf32>
    %78 = vector.shape_cast %77 : vector<16xf32> to vector<16x1xf32>
    %cst_16 = arith.constant 3.200000e+01 : f32
    %79 = vector.broadcast %cst_16 : f32 to vector<16x1xf32>
    %80 = arith.divf %78, %79 : vector<16x1xf32>
    %81 = vector.broadcast %80 : vector<16x1xf32> to vector<16x32xf32>
    %82 = arith.subf %72, %81 : vector<16x32xf32>
    %83 = arith.mulf %82, %82 : vector<16x32xf32>
    %cst_17 = arith.constant dense<0.000000e+00> : vector<16xf32>
    %84 = vector.multi_reduction <add>, %83, %cst_17 [1] : vector<16x32xf32> to vector<16xf32>
    %85 = vector.shape_cast %84 : vector<16xf32> to vector<16x1xf32>
    %cst_18 = arith.constant 3.200000e+01 : f32
    %86 = vector.broadcast %cst_18 : f32 to vector<16x1xf32>
    %87 = arith.divf %85, %86 : vector<16x1xf32>
    %88 = vector.broadcast %80 : vector<16x1xf32> to vector<16x32xf32>
    %89 = arith.subf %72, %88 : vector<16x32xf32>
    %cst_19 = arith.constant 9.99999974E-5 : f32
    %90 = vector.broadcast %cst_19 : f32 to vector<16x1xf32>
    %91 = arith.addf %87, %90 : vector<16x1xf32>
    %92 = math.rsqrt %91 : vector<16x1xf32>
    %93 = vector.broadcast %92 : vector<16x1xf32> to vector<16x32xf32>
    %94 = arith.mulf %89, %93 : vector<16x32xf32>
    %95 = vector.broadcast %74 : vector<1x32xf32> to vector<16x32xf32>
    %96 = arith.mulf %94, %95 : vector<16x32xf32>
    %97 = vector.broadcast %76 : vector<1x32xf32> to vector<16x32xf32>
    %98 = arith.addf %96, %97 : vector<16x32xf32>
    %cst_20 = arith.constant 0.000000e+00 : f32
    %99 = vector.broadcast %cst_20 : f32 to vector<16x32xf32>
    %100 = arith.maximumf %98, %99 : vector<16x32xf32>
    %101 = vector.broadcast %7 : vector<16x1xf32> to vector<16x32xf32>
    %102 = arith.mulf %100, %101 : vector<16x32xf32>
    %c1 = arith.constant 1 : index
    %c0_21 = arith.constant 0 : index
    %c0_22 = arith.constant 0 : index
    %103 = vector.load %arg3[%c1, %c0_21, %c0_22] : memref<3x160x32xf32, #tpu.memory_space<vmem>>, vector<1x160x32xf32>
    %104 = vector.shape_cast %103 : vector<1x160x32xf32> to vector<160x32xf32>
    %c1_23 = arith.constant 1 : index
    %c0_24 = arith.constant 0 : index
    %c0_25 = arith.constant 0 : index
    %105 = vector.load %arg4[%c1_23, %c0_24, %c0_25] : memref<3x1x32xf32, #tpu.memory_space<vmem>>, vector<1x1x32xf32>
    %106 = vector.shape_cast %105 : vector<1x1x32xf32> to vector<1x32xf32>
    %cst_26 = arith.constant 0.000000e+00 : f32
    %107 = vector.broadcast %cst_26 : f32 to vector<2x32xf32>
    %108 = tpu.concatenate %107, %102, %107 in 0 : vector<2x32xf32>, vector<16x32xf32>, vector<2x32xf32> -> vector<20x32xf32>
    %109 = vector.extract_strided_slice %108 {offsets = [0, 0], sizes = [16, 32], strides = [1, 1]} : vector<20x32xf32> to vector<16x32xf32>
    %110 = vector.extract_strided_slice %108 {offsets = [1, 0], sizes = [16, 32], strides = [1, 1]} : vector<20x32xf32> to vector<16x32xf32>
    %111 = vector.extract_strided_slice %108 {offsets = [2, 0], sizes = [16, 32], strides = [1, 1]} : vector<20x32xf32> to vector<16x32xf32>
    %112 = vector.extract_strided_slice %108 {offsets = [3, 0], sizes = [16, 32], strides = [1, 1]} : vector<20x32xf32> to vector<16x32xf32>
    %113 = vector.extract_strided_slice %108 {offsets = [4, 0], sizes = [16, 32], strides = [1, 1]} : vector<20x32xf32> to vector<16x32xf32>
    %114 = tpu.concatenate %109, %110, %111, %112, %113 in 1 : vector<16x32xf32>, vector<16x32xf32>, vector<16x32xf32>, vector<16x32xf32>, vector<16x32xf32> -> vector<16x160xf32>
    %cst_27 = arith.constant dense<0.000000e+00> : vector<16x32xf32>
    %115 = tpu.matmul %114, %104, %cst_27 {dimension_numbers = #tpu.dot_dimension_numbers<[1], [0], [0], [1], [0, 0, 1, 1], [], []>} : vector<16x160xf32>, vector<160x32xf32>, vector<16x32xf32> -> vector<16x32xf32>
    %116 = vector.broadcast %106 : vector<1x32xf32> to vector<16x32xf32>
    %117 = arith.addf %115, %116 : vector<16x32xf32>
    %c1_28 = arith.constant 1 : index
    %c0_29 = arith.constant 0 : index
    %c0_30 = arith.constant 0 : index
    %118 = vector.load %arg5[%c1_28, %c0_29, %c0_30] : memref<3x1x32xf32, #tpu.memory_space<vmem>>, vector<1x1x32xf32>
    %119 = vector.shape_cast %118 : vector<1x1x32xf32> to vector<1x32xf32>
    %c1_31 = arith.constant 1 : index
    %c0_32 = arith.constant 0 : index
    %c0_33 = arith.constant 0 : index
    %120 = vector.load %arg6[%c1_31, %c0_32, %c0_33] : memref<3x1x32xf32, #tpu.memory_space<vmem>>, vector<1x1x32xf32>
    %121 = vector.shape_cast %120 : vector<1x1x32xf32> to vector<1x32xf32>
    %cst_34 = arith.constant dense<0.000000e+00> : vector<16xf32>
    %122 = vector.multi_reduction <add>, %117, %cst_34 [1] : vector<16x32xf32> to vector<16xf32>
    %123 = vector.shape_cast %122 : vector<16xf32> to vector<16x1xf32>
    %cst_35 = arith.constant 3.200000e+01 : f32
    %124 = vector.broadcast %cst_35 : f32 to vector<16x1xf32>
    %125 = arith.divf %123, %124 : vector<16x1xf32>
    %126 = vector.broadcast %125 : vector<16x1xf32> to vector<16x32xf32>
    %127 = arith.subf %117, %126 : vector<16x32xf32>
    %128 = arith.mulf %127, %127 : vector<16x32xf32>
    %cst_36 = arith.constant dense<0.000000e+00> : vector<16xf32>
    %129 = vector.multi_reduction <add>, %128, %cst_36 [1] : vector<16x32xf32> to vector<16xf32>
    %130 = vector.shape_cast %129 : vector<16xf32> to vector<16x1xf32>
    %cst_37 = arith.constant 3.200000e+01 : f32
    %131 = vector.broadcast %cst_37 : f32 to vector<16x1xf32>
    %132 = arith.divf %130, %131 : vector<16x1xf32>
    %133 = vector.broadcast %125 : vector<16x1xf32> to vector<16x32xf32>
    %134 = arith.subf %117, %133 : vector<16x32xf32>
    %cst_38 = arith.constant 9.99999974E-5 : f32
    %135 = vector.broadcast %cst_38 : f32 to vector<16x1xf32>
    %136 = arith.addf %132, %135 : vector<16x1xf32>
    %137 = math.rsqrt %136 : vector<16x1xf32>
    %138 = vector.broadcast %137 : vector<16x1xf32> to vector<16x32xf32>
    %139 = arith.mulf %134, %138 : vector<16x32xf32>
    %140 = vector.broadcast %119 : vector<1x32xf32> to vector<16x32xf32>
    %141 = arith.mulf %139, %140 : vector<16x32xf32>
    %142 = vector.broadcast %121 : vector<1x32xf32> to vector<16x32xf32>
    %143 = arith.addf %141, %142 : vector<16x32xf32>
    %cst_39 = arith.constant 0.000000e+00 : f32
    %144 = vector.broadcast %cst_39 : f32 to vector<16x32xf32>
    %145 = arith.maximumf %143, %144 : vector<16x32xf32>
    %146 = vector.broadcast %7 : vector<16x1xf32> to vector<16x32xf32>
    %147 = arith.mulf %145, %146 : vector<16x32xf32>
    %c2 = arith.constant 2 : index
    %c0_40 = arith.constant 0 : index
    %c0_41 = arith.constant 0 : index
    %148 = vector.load %arg3[%c2, %c0_40, %c0_41] : memref<3x160x32xf32, #tpu.memory_space<vmem>>, vector<1x160x32xf32>
    %149 = vector.shape_cast %148 : vector<1x160x32xf32> to vector<160x32xf32>
    %c2_42 = arith.constant 2 : index
    %c0_43 = arith.constant 0 : index
    %c0_44 = arith.constant 0 : index
    %150 = vector.load %arg4[%c2_42, %c0_43, %c0_44] : memref<3x1x32xf32, #tpu.memory_space<vmem>>, vector<1x1x32xf32>
    %151 = vector.shape_cast %150 : vector<1x1x32xf32> to vector<1x32xf32>
    %cst_45 = arith.constant 0.000000e+00 : f32
    %152 = vector.broadcast %cst_45 : f32 to vector<2x32xf32>
    %153 = tpu.concatenate %152, %147, %152 in 0 : vector<2x32xf32>, vector<16x32xf32>, vector<2x32xf32> -> vector<20x32xf32>
    %154 = vector.extract_strided_slice %153 {offsets = [0, 0], sizes = [16, 32], strides = [1, 1]} : vector<20x32xf32> to vector<16x32xf32>
    %155 = vector.extract_strided_slice %153 {offsets = [1, 0], sizes = [16, 32], strides = [1, 1]} : vector<20x32xf32> to vector<16x32xf32>
    %156 = vector.extract_strided_slice %153 {offsets = [2, 0], sizes = [16, 32], strides = [1, 1]} : vector<20x32xf32> to vector<16x32xf32>
    %157 = vector.extract_strided_slice %153 {offsets = [3, 0], sizes = [16, 32], strides = [1, 1]} : vector<20x32xf32> to vector<16x32xf32>
    %158 = vector.extract_strided_slice %153 {offsets = [4, 0], sizes = [16, 32], strides = [1, 1]} : vector<20x32xf32> to vector<16x32xf32>
    %159 = tpu.concatenate %154, %155, %156, %157, %158 in 1 : vector<16x32xf32>, vector<16x32xf32>, vector<16x32xf32>, vector<16x32xf32>, vector<16x32xf32> -> vector<16x160xf32>
    %cst_46 = arith.constant dense<0.000000e+00> : vector<16x32xf32>
    %160 = tpu.matmul %159, %149, %cst_46 {dimension_numbers = #tpu.dot_dimension_numbers<[1], [0], [0], [1], [0, 0, 1, 1], [], []>} : vector<16x160xf32>, vector<160x32xf32>, vector<16x32xf32> -> vector<16x32xf32>
    %161 = vector.broadcast %151 : vector<1x32xf32> to vector<16x32xf32>
    %162 = arith.addf %160, %161 : vector<16x32xf32>
    %c2_47 = arith.constant 2 : index
    %c0_48 = arith.constant 0 : index
    %c0_49 = arith.constant 0 : index
    %163 = vector.load %arg5[%c2_47, %c0_48, %c0_49] : memref<3x1x32xf32, #tpu.memory_space<vmem>>, vector<1x1x32xf32>
    %164 = vector.shape_cast %163 : vector<1x1x32xf32> to vector<1x32xf32>
    %c2_50 = arith.constant 2 : index
    %c0_51 = arith.constant 0 : index
    %c0_52 = arith.constant 0 : index
    %165 = vector.load %arg6[%c2_50, %c0_51, %c0_52] : memref<3x1x32xf32, #tpu.memory_space<vmem>>, vector<1x1x32xf32>
    %166 = vector.shape_cast %165 : vector<1x1x32xf32> to vector<1x32xf32>
    %cst_53 = arith.constant dense<0.000000e+00> : vector<16xf32>
    %167 = vector.multi_reduction <add>, %162, %cst_53 [1] : vector<16x32xf32> to vector<16xf32>
    %168 = vector.shape_cast %167 : vector<16xf32> to vector<16x1xf32>
    %cst_54 = arith.constant 3.200000e+01 : f32
    %169 = vector.broadcast %cst_54 : f32 to vector<16x1xf32>
    %170 = arith.divf %168, %169 : vector<16x1xf32>
    %171 = vector.broadcast %170 : vector<16x1xf32> to vector<16x32xf32>
    %172 = arith.subf %162, %171 : vector<16x32xf32>
    %173 = arith.mulf %172, %172 : vector<16x32xf32>
    %cst_55 = arith.constant dense<0.000000e+00> : vector<16xf32>
    %174 = vector.multi_reduction <add>, %173, %cst_55 [1] : vector<16x32xf32> to vector<16xf32>
    %175 = vector.shape_cast %174 : vector<16xf32> to vector<16x1xf32>
    %cst_56 = arith.constant 3.200000e+01 : f32
    %176 = vector.broadcast %cst_56 : f32 to vector<16x1xf32>
    %177 = arith.divf %175, %176 : vector<16x1xf32>
    %178 = vector.broadcast %170 : vector<16x1xf32> to vector<16x32xf32>
    %179 = arith.subf %162, %178 : vector<16x32xf32>
    %cst_57 = arith.constant 9.99999974E-5 : f32
    %180 = vector.broadcast %cst_57 : f32 to vector<16x1xf32>
    %181 = arith.addf %177, %180 : vector<16x1xf32>
    %182 = math.rsqrt %181 : vector<16x1xf32>
    %183 = vector.broadcast %182 : vector<16x1xf32> to vector<16x32xf32>
    %184 = arith.mulf %179, %183 : vector<16x32xf32>
    %185 = vector.broadcast %164 : vector<1x32xf32> to vector<16x32xf32>
    %186 = arith.mulf %184, %185 : vector<16x32xf32>
    %187 = vector.broadcast %166 : vector<1x32xf32> to vector<16x32xf32>
    %188 = arith.addf %186, %187 : vector<16x32xf32>
    %cst_58 = arith.constant 0.000000e+00 : f32
    %189 = vector.broadcast %cst_58 : f32 to vector<16x32xf32>
    %190 = arith.maximumf %188, %189 : vector<16x32xf32>
    %c0_59 = arith.constant 0 : index
    %c0_60 = arith.constant 0 : index
    %191 = vector.load %arg7[%c0_59, %c0_60] : memref<32x32xf32, #tpu.memory_space<vmem>>, vector<32x32xf32>
    %cst_61 = arith.constant dense<0.000000e+00> : vector<16x32xf32>
    %192 = tpu.matmul %190, %191, %cst_61 {dimension_numbers = #tpu.dot_dimension_numbers<[1], [0], [0], [1], [0, 0, 1, 1], [], []>} : vector<16x32xf32>, vector<32x32xf32>, vector<16x32xf32> -> vector<16x32xf32>
    %193 = arith.addf %55, %192 : vector<16x32xf32>
    %c0_62 = arith.constant 0 : index
    %c0_63 = arith.constant 0 : index
    %194 = vector.load %arg8[%c0_62, %c0_63] : memref<1x32xf32, #tpu.memory_space<vmem>>, vector<1x32xf32>
    %195 = vector.broadcast %194 : vector<1x32xf32> to vector<16x32xf32>
    %196 = arith.addf %193, %195 : vector<16x32xf32>
    %197 = vector.broadcast %7 : vector<16x1xf32> to vector<16x32xf32>
    %198 = arith.mulf %196, %197 : vector<16x32xf32>
    %199 = vector.broadcast %7 : vector<16x1xf32> to vector<16x32xf32>
    %200 = arith.mulf %198, %199 : vector<16x32xf32>
    %c0_64 = arith.constant 0 : index
    %c0_65 = arith.constant 0 : index
    %c0_66 = arith.constant 0 : index
    %201 = vector.load %arg17[%c0_64, %c0_65, %c0_66] : memref<2x9x16xf32, #tpu.memory_space<vmem>>, vector<1x9x16xf32>
    %202 = vector.shape_cast %201 : vector<1x9x16xf32> to vector<9x16xf32>
    %c0_67 = arith.constant 0 : index
    %c0_68 = arith.constant 0 : index
    %c0_69 = arith.constant 0 : index
    %203 = vector.load %arg18[%c0_67, %c0_68, %c0_69] : memref<2x9x16xf32, #tpu.memory_space<vmem>>, vector<1x9x16xf32>
    %204 = vector.shape_cast %203 : vector<1x9x16xf32> to vector<9x16xf32>
    %cst_70 = arith.constant 0.000000e+00 : f32
    %205 = vector.broadcast %cst_70 : f32 to vector<16x32xf32>
    %c0_71 = arith.constant 0 : index
    %c0_72 = arith.constant 0 : index
    %c0_73 = arith.constant 0 : index
    %206 = vector.load %arg16[%c0_71, %c0_72, %c0_73] : memref<2x1x32xf32, #tpu.memory_space<vmem>>, vector<1x1x32xf32>
    %207 = vector.shape_cast %206 : vector<1x1x32xf32> to vector<1x32xf32>
    %208 = vector.broadcast %207 : vector<1x32xf32> to vector<16x32xf32>
    %209 = arith.addf %205, %208 : vector<16x32xf32>
    %c0_74 = arith.constant 0 : index
    %c0_75 = arith.constant 0 : index
    %c0_76 = arith.constant 0 : index
    %210 = vector.load %arg9[%c0_74, %c0_75, %c0_76] : memref<4x32x16xf32, #tpu.memory_space<vmem>>, vector<1x32x16xf32>
    %211 = vector.shape_cast %210 : vector<1x32x16xf32> to vector<32x16xf32>
    %cst_77 = arith.constant dense<0.000000e+00> : vector<16x16xf32>
    %212 = tpu.matmul %200, %211, %cst_77 {dimension_numbers = #tpu.dot_dimension_numbers<[1], [0], [0], [1], [0, 0, 1, 1], [], []>} : vector<16x32xf32>, vector<32x16xf32>, vector<16x16xf32> -> vector<16x16xf32>
    %c0_78 = arith.constant 0 : index
    %c0_79 = arith.constant 0 : index
    %c0_80 = arith.constant 0 : index
    %213 = vector.load %arg10[%c0_78, %c0_79, %c0_80] : memref<4x1x16xf32, #tpu.memory_space<vmem>>, vector<1x1x16xf32>
    %214 = vector.shape_cast %213 : vector<1x1x16xf32> to vector<1x16xf32>
    %215 = vector.broadcast %214 : vector<1x16xf32> to vector<16x16xf32>
    %216 = arith.addf %212, %215 : vector<16x16xf32>
    %cst_81 = arith.constant 2.500000e-01 : f32
    %217 = vector.broadcast %cst_81 : f32 to vector<16x16xf32>
    %218 = arith.mulf %216, %217 : vector<16x16xf32>
    %c0_82 = arith.constant 0 : index
    %c0_83 = arith.constant 0 : index
    %c0_84 = arith.constant 0 : index
    %219 = vector.load %arg11[%c0_82, %c0_83, %c0_84] : memref<4x32x16xf32, #tpu.memory_space<vmem>>, vector<1x32x16xf32>
    %220 = vector.shape_cast %219 : vector<1x32x16xf32> to vector<32x16xf32>
    %cst_85 = arith.constant dense<0.000000e+00> : vector<16x16xf32>
    %221 = tpu.matmul %200, %220, %cst_85 {dimension_numbers = #tpu.dot_dimension_numbers<[1], [0], [0], [1], [0, 0, 1, 1], [], []>} : vector<16x32xf32>, vector<32x16xf32>, vector<16x16xf32> -> vector<16x16xf32>
    %c0_86 = arith.constant 0 : index
    %c0_87 = arith.constant 0 : index
    %c0_88 = arith.constant 0 : index
    %222 = vector.load %arg12[%c0_86, %c0_87, %c0_88] : memref<4x1x16xf32, #tpu.memory_space<vmem>>, vector<1x1x16xf32>
    %223 = vector.shape_cast %222 : vector<1x1x16xf32> to vector<1x16xf32>
    %224 = vector.broadcast %223 : vector<1x16xf32> to vector<16x16xf32>
    %225 = arith.addf %221, %224 : vector<16x16xf32>
    %c0_89 = arith.constant 0 : index
    %c0_90 = arith.constant 0 : index
    %c0_91 = arith.constant 0 : index
    %226 = vector.load %arg13[%c0_89, %c0_90, %c0_91] : memref<4x32x16xf32, #tpu.memory_space<vmem>>, vector<1x32x16xf32>
    %227 = vector.shape_cast %226 : vector<1x32x16xf32> to vector<32x16xf32>
    %cst_92 = arith.constant dense<0.000000e+00> : vector<16x16xf32>
    %228 = tpu.matmul %200, %227, %cst_92 {dimension_numbers = #tpu.dot_dimension_numbers<[1], [0], [0], [1], [0, 0, 1, 1], [], []>} : vector<16x32xf32>, vector<32x16xf32>, vector<16x16xf32> -> vector<16x16xf32>
    %c0_93 = arith.constant 0 : index
    %c0_94 = arith.constant 0 : index
    %c0_95 = arith.constant 0 : index
    %229 = vector.load %arg14[%c0_93, %c0_94, %c0_95] : memref<4x1x16xf32, #tpu.memory_space<vmem>>, vector<1x1x16xf32>
    %230 = vector.shape_cast %229 : vector<1x1x16xf32> to vector<1x16xf32>
    %231 = vector.broadcast %230 : vector<1x16xf32> to vector<16x16xf32>
    %232 = arith.addf %228, %231 : vector<16x16xf32>
    %cst_96 = arith.constant dense<0.000000e+00> : vector<16x16xf32>
    %233 = tpu.matmul %218, %225, %cst_96 {dimension_numbers = #tpu.dot_dimension_numbers<[1], [1], [0], [0], [0, 0, 1, 0], [], []>} : vector<16x16xf32>, vector<16x16xf32>, vector<16x16xf32> -> vector<16x16xf32>
    %cst_97 = arith.constant dense<0.000000e+00> : vector<16x9xf32>
    %234 = tpu.matmul %218, %202, %cst_97 {dimension_numbers = #tpu.dot_dimension_numbers<[1], [1], [0], [0], [0, 0, 1, 0], [], []>} : vector<16x16xf32>, vector<9x16xf32>, vector<16x9xf32> -> vector<16x9xf32>
    %235 = vector.extract_strided_slice %234 {offsets = [0, 0], sizes = [16, 1], strides = [1, 1]} : vector<16x9xf32> to vector<16x1xf32>
    %236 = vector.broadcast %235 : vector<16x1xf32> to vector<16x16xf32>
    %237 = arith.mulf %21, %236 : vector<16x16xf32>
    %238 = arith.addf %233, %237 : vector<16x16xf32>
    %239 = vector.extract_strided_slice %234 {offsets = [0, 1], sizes = [16, 1], strides = [1, 1]} : vector<16x9xf32> to vector<16x1xf32>
    %240 = vector.broadcast %239 : vector<16x1xf32> to vector<16x16xf32>
    %241 = arith.mulf %25, %240 : vector<16x16xf32>
    %242 = arith.addf %238, %241 : vector<16x16xf32>
    %243 = vector.extract_strided_slice %234 {offsets = [0, 2], sizes = [16, 1], strides = [1, 1]} : vector<16x9xf32> to vector<16x1xf32>
    %244 = vector.broadcast %243 : vector<16x1xf32> to vector<16x16xf32>
    %245 = arith.mulf %29, %244 : vector<16x16xf32>
    %246 = arith.addf %242, %245 : vector<16x16xf32>
    %247 = vector.extract_strided_slice %234 {offsets = [0, 3], sizes = [16, 1], strides = [1, 1]} : vector<16x9xf32> to vector<16x1xf32>
    %248 = vector.broadcast %247 : vector<16x1xf32> to vector<16x16xf32>
    %249 = arith.mulf %33, %248 : vector<16x16xf32>
    %250 = arith.addf %246, %249 : vector<16x16xf32>
    %251 = vector.extract_strided_slice %234 {offsets = [0, 4], sizes = [16, 1], strides = [1, 1]} : vector<16x9xf32> to vector<16x1xf32>
    %252 = vector.broadcast %251 : vector<16x1xf32> to vector<16x16xf32>
    %253 = arith.mulf %37, %252 : vector<16x16xf32>
    %254 = arith.addf %250, %253 : vector<16x16xf32>
    %255 = vector.extract_strided_slice %234 {offsets = [0, 5], sizes = [16, 1], strides = [1, 1]} : vector<16x9xf32> to vector<16x1xf32>
    %256 = vector.broadcast %255 : vector<16x1xf32> to vector<16x16xf32>
    %257 = arith.mulf %41, %256 : vector<16x16xf32>
    %258 = arith.addf %254, %257 : vector<16x16xf32>
    %259 = vector.extract_strided_slice %234 {offsets = [0, 6], sizes = [16, 1], strides = [1, 1]} : vector<16x9xf32> to vector<16x1xf32>
    %260 = vector.broadcast %259 : vector<16x1xf32> to vector<16x16xf32>
    %261 = arith.mulf %45, %260 : vector<16x16xf32>
    %262 = arith.addf %258, %261 : vector<16x16xf32>
    %263 = vector.extract_strided_slice %234 {offsets = [0, 7], sizes = [16, 1], strides = [1, 1]} : vector<16x9xf32> to vector<16x1xf32>
    %264 = vector.broadcast %263 : vector<16x1xf32> to vector<16x16xf32>
    %265 = arith.mulf %49, %264 : vector<16x16xf32>
    %266 = arith.addf %262, %265 : vector<16x16xf32>
    %267 = vector.extract_strided_slice %234 {offsets = [0, 8], sizes = [16, 1], strides = [1, 1]} : vector<16x9xf32> to vector<16x1xf32>
    %268 = vector.broadcast %267 : vector<16x1xf32> to vector<16x16xf32>
    %269 = arith.mulf %53, %268 : vector<16x16xf32>
    %270 = arith.addf %266, %269 : vector<16x16xf32>
    %cst_98 = arith.constant 0.000000e+00 : f32
    %271 = vector.broadcast %cst_98 : f32 to vector<16x16xf32>
    %272 = arith.cmpf oeq, %14, %271 : vector<16x16xf32>
    %cst_99 = arith.constant -1.000000e+04 : f32
    %273 = vector.broadcast %cst_99 : f32 to vector<16x16xf32>
    %274 = arith.select %272, %273, %270 : vector<16x16xi1>, vector<16x16xf32>
    %cst_100 = arith.constant dense<0xFF800000> : vector<16xf32>
    %275 = vector.multi_reduction <maximumf>, %274, %cst_100 [1] : vector<16x16xf32> to vector<16xf32>
    %276 = vector.shape_cast %275 : vector<16xf32> to vector<16x1xf32>
    %277 = vector.broadcast %276 : vector<16x1xf32> to vector<16x16xf32>
    %278 = arith.subf %274, %277 : vector<16x16xf32>
    %279 = math.exp %278 : vector<16x16xf32>
    %cst_101 = arith.constant dense<0.000000e+00> : vector<16xf32>
    %280 = vector.multi_reduction <add>, %279, %cst_101 [1] : vector<16x16xf32> to vector<16xf32>
    %281 = vector.shape_cast %280 : vector<16xf32> to vector<16x1xf32>
    %282 = vector.broadcast %281 : vector<16x1xf32> to vector<16x16xf32>
    %283 = arith.divf %279, %282 : vector<16x16xf32>
    %cst_102 = arith.constant dense<0.000000e+00> : vector<16x16xf32>
    %284 = tpu.matmul %283, %232, %cst_102 {dimension_numbers = #tpu.dot_dimension_numbers<[1], [0], [0], [1], [0, 0, 1, 1], [], []>} : vector<16x16xf32>, vector<16x16xf32>, vector<16x16xf32> -> vector<16x16xf32>
    %285 = arith.mulf %283, %21 : vector<16x16xf32>
    %cst_103 = arith.constant dense<0.000000e+00> : vector<16xf32>
    %286 = vector.multi_reduction <add>, %285, %cst_103 [1] : vector<16x16xf32> to vector<16xf32>
    %287 = vector.shape_cast %286 : vector<16xf32> to vector<16x1xf32>
    %288 = arith.mulf %283, %25 : vector<16x16xf32>
    %cst_104 = arith.constant dense<0.000000e+00> : vector<16xf32>
    %289 = vector.multi_reduction <add>, %288, %cst_104 [1] : vector<16x16xf32> to vector<16xf32>
    %290 = vector.shape_cast %289 : vector<16xf32> to vector<16x1xf32>
    %291 = arith.mulf %283, %29 : vector<16x16xf32>
    %cst_105 = arith.constant dense<0.000000e+00> : vector<16xf32>
    %292 = vector.multi_reduction <add>, %291, %cst_105 [1] : vector<16x16xf32> to vector<16xf32>
    %293 = vector.shape_cast %292 : vector<16xf32> to vector<16x1xf32>
    %294 = arith.mulf %283, %33 : vector<16x16xf32>
    %cst_106 = arith.constant dense<0.000000e+00> : vector<16xf32>
    %295 = vector.multi_reduction <add>, %294, %cst_106 [1] : vector<16x16xf32> to vector<16xf32>
    %296 = vector.shape_cast %295 : vector<16xf32> to vector<16x1xf32>
    %297 = arith.mulf %283, %37 : vector<16x16xf32>
    %cst_107 = arith.constant dense<0.000000e+00> : vector<16xf32>
    %298 = vector.multi_reduction <add>, %297, %cst_107 [1] : vector<16x16xf32> to vector<16xf32>
    %299 = vector.shape_cast %298 : vector<16xf32> to vector<16x1xf32>
    %300 = arith.mulf %283, %41 : vector<16x16xf32>
    %cst_108 = arith.constant dense<0.000000e+00> : vector<16xf32>
    %301 = vector.multi_reduction <add>, %300, %cst_108 [1] : vector<16x16xf32> to vector<16xf32>
    %302 = vector.shape_cast %301 : vector<16xf32> to vector<16x1xf32>
    %303 = arith.mulf %283, %45 : vector<16x16xf32>
    %cst_109 = arith.constant dense<0.000000e+00> : vector<16xf32>
    %304 = vector.multi_reduction <add>, %303, %cst_109 [1] : vector<16x16xf32> to vector<16xf32>
    %305 = vector.shape_cast %304 : vector<16xf32> to vector<16x1xf32>
    %306 = arith.mulf %283, %49 : vector<16x16xf32>
    %cst_110 = arith.constant dense<0.000000e+00> : vector<16xf32>
    %307 = vector.multi_reduction <add>, %306, %cst_110 [1] : vector<16x16xf32> to vector<16xf32>
    %308 = vector.shape_cast %307 : vector<16xf32> to vector<16x1xf32>
    %309 = arith.mulf %283, %53 : vector<16x16xf32>
    %cst_111 = arith.constant dense<0.000000e+00> : vector<16xf32>
    %310 = vector.multi_reduction <add>, %309, %cst_111 [1] : vector<16x16xf32> to vector<16xf32>
    %311 = vector.shape_cast %310 : vector<16xf32> to vector<16x1xf32>
    %312 = tpu.concatenate %287, %290, %293, %296, %299, %302, %305, %308, %311 in 1 : vector<16x1xf32>, vector<16x1xf32>, vector<16x1xf32>, vector<16x1xf32>, vector<16x1xf32>, vector<16x1xf32>, vector<16x1xf32>, vector<16x1xf32>, vector<16x1xf32> -> vector<16x9xf32>
    %cst_112 = arith.constant dense<0.000000e+00> : vector<16x16xf32>
    %313 = tpu.matmul %312, %204, %cst_112 {dimension_numbers = #tpu.dot_dimension_numbers<[1], [0], [0], [1], [0, 0, 1, 1], [], []>} : vector<16x9xf32>, vector<9x16xf32>, vector<16x16xf32> -> vector<16x16xf32>
    %314 = arith.addf %284, %313 : vector<16x16xf32>
    %c0_113 = arith.constant 0 : index
    %c0_114 = arith.constant 0 : index
    %c0_115 = arith.constant 0 : index
    %315 = vector.load %arg15[%c0_113, %c0_114, %c0_115] : memref<4x16x32xf32, #tpu.memory_space<vmem>>, vector<1x16x32xf32>
    %316 = vector.shape_cast %315 : vector<1x16x32xf32> to vector<16x32xf32>
    %cst_116 = arith.constant dense<0.000000e+00> : vector<16x32xf32>
    %317 = tpu.matmul %314, %316, %cst_116 {dimension_numbers = #tpu.dot_dimension_numbers<[1], [0], [0], [1], [0, 0, 1, 1], [], []>} : vector<16x16xf32>, vector<16x32xf32>, vector<16x32xf32> -> vector<16x32xf32>
    %318 = arith.addf %209, %317 : vector<16x32xf32>
    %c1_117 = arith.constant 1 : index
    %c0_118 = arith.constant 0 : index
    %c0_119 = arith.constant 0 : index
    %319 = vector.load %arg9[%c1_117, %c0_118, %c0_119] : memref<4x32x16xf32, #tpu.memory_space<vmem>>, vector<1x32x16xf32>
    %320 = vector.shape_cast %319 : vector<1x32x16xf32> to vector<32x16xf32>
    %cst_120 = arith.constant dense<0.000000e+00> : vector<16x16xf32>
    %321 = tpu.matmul %200, %320, %cst_120 {dimension_numbers = #tpu.dot_dimension_numbers<[1], [0], [0], [1], [0, 0, 1, 1], [], []>} : vector<16x32xf32>, vector<32x16xf32>, vector<16x16xf32> -> vector<16x16xf32>
    %c1_121 = arith.constant 1 : index
    %c0_122 = arith.constant 0 : index
    %c0_123 = arith.constant 0 : index
    %322 = vector.load %arg10[%c1_121, %c0_122, %c0_123] : memref<4x1x16xf32, #tpu.memory_space<vmem>>, vector<1x1x16xf32>
    %323 = vector.shape_cast %322 : vector<1x1x16xf32> to vector<1x16xf32>
    %324 = vector.broadcast %323 : vector<1x16xf32> to vector<16x16xf32>
    %325 = arith.addf %321, %324 : vector<16x16xf32>
    %cst_124 = arith.constant 2.500000e-01 : f32
    %326 = vector.broadcast %cst_124 : f32 to vector<16x16xf32>
    %327 = arith.mulf %325, %326 : vector<16x16xf32>
    %c1_125 = arith.constant 1 : index
    %c0_126 = arith.constant 0 : index
    %c0_127 = arith.constant 0 : index
    %328 = vector.load %arg11[%c1_125, %c0_126, %c0_127] : memref<4x32x16xf32, #tpu.memory_space<vmem>>, vector<1x32x16xf32>
    %329 = vector.shape_cast %328 : vector<1x32x16xf32> to vector<32x16xf32>
    %cst_128 = arith.constant dense<0.000000e+00> : vector<16x16xf32>
    %330 = tpu.matmul %200, %329, %cst_128 {dimension_numbers = #tpu.dot_dimension_numbers<[1], [0], [0], [1], [0, 0, 1, 1], [], []>} : vector<16x32xf32>, vector<32x16xf32>, vector<16x16xf32> -> vector<16x16xf32>
    %c1_129 = arith.constant 1 : index
    %c0_130 = arith.constant 0 : index
    %c0_131 = arith.constant 0 : index
    %331 = vector.load %arg12[%c1_129, %c0_130, %c0_131] : memref<4x1x16xf32, #tpu.memory_space<vmem>>, vector<1x1x16xf32>
    %332 = vector.shape_cast %331 : vector<1x1x16xf32> to vector<1x16xf32>
    %333 = vector.broadcast %332 : vector<1x16xf32> to vector<16x16xf32>
    %334 = arith.addf %330, %333 : vector<16x16xf32>
    %c1_132 = arith.constant 1 : index
    %c0_133 = arith.constant 0 : index
    %c0_134 = arith.constant 0 : index
    %335 = vector.load %arg13[%c1_132, %c0_133, %c0_134] : memref<4x32x16xf32, #tpu.memory_space<vmem>>, vector<1x32x16xf32>
    %336 = vector.shape_cast %335 : vector<1x32x16xf32> to vector<32x16xf32>
    %cst_135 = arith.constant dense<0.000000e+00> : vector<16x16xf32>
    %337 = tpu.matmul %200, %336, %cst_135 {dimension_numbers = #tpu.dot_dimension_numbers<[1], [0], [0], [1], [0, 0, 1, 1], [], []>} : vector<16x32xf32>, vector<32x16xf32>, vector<16x16xf32> -> vector<16x16xf32>
    %c1_136 = arith.constant 1 : index
    %c0_137 = arith.constant 0 : index
    %c0_138 = arith.constant 0 : index
    %338 = vector.load %arg14[%c1_136, %c0_137, %c0_138] : memref<4x1x16xf32, #tpu.memory_space<vmem>>, vector<1x1x16xf32>
    %339 = vector.shape_cast %338 : vector<1x1x16xf32> to vector<1x16xf32>
    %340 = vector.broadcast %339 : vector<1x16xf32> to vector<16x16xf32>
    %341 = arith.addf %337, %340 : vector<16x16xf32>
    %cst_139 = arith.constant dense<0.000000e+00> : vector<16x16xf32>
    %342 = tpu.matmul %327, %334, %cst_139 {dimension_numbers = #tpu.dot_dimension_numbers<[1], [1], [0], [0], [0, 0, 1, 0], [], []>} : vector<16x16xf32>, vector<16x16xf32>, vector<16x16xf32> -> vector<16x16xf32>
    %cst_140 = arith.constant dense<0.000000e+00> : vector<16x9xf32>
    %343 = tpu.matmul %327, %202, %cst_140 {dimension_numbers = #tpu.dot_dimension_numbers<[1], [1], [0], [0], [0, 0, 1, 0], [], []>} : vector<16x16xf32>, vector<9x16xf32>, vector<16x9xf32> -> vector<16x9xf32>
    %344 = vector.extract_strided_slice %343 {offsets = [0, 0], sizes = [16, 1], strides = [1, 1]} : vector<16x9xf32> to vector<16x1xf32>
    %345 = vector.broadcast %344 : vector<16x1xf32> to vector<16x16xf32>
    %346 = arith.mulf %21, %345 : vector<16x16xf32>
    %347 = arith.addf %342, %346 : vector<16x16xf32>
    %348 = vector.extract_strided_slice %343 {offsets = [0, 1], sizes = [16, 1], strides = [1, 1]} : vector<16x9xf32> to vector<16x1xf32>
    %349 = vector.broadcast %348 : vector<16x1xf32> to vector<16x16xf32>
    %350 = arith.mulf %25, %349 : vector<16x16xf32>
    %351 = arith.addf %347, %350 : vector<16x16xf32>
    %352 = vector.extract_strided_slice %343 {offsets = [0, 2], sizes = [16, 1], strides = [1, 1]} : vector<16x9xf32> to vector<16x1xf32>
    %353 = vector.broadcast %352 : vector<16x1xf32> to vector<16x16xf32>
    %354 = arith.mulf %29, %353 : vector<16x16xf32>
    %355 = arith.addf %351, %354 : vector<16x16xf32>
    %356 = vector.extract_strided_slice %343 {offsets = [0, 3], sizes = [16, 1], strides = [1, 1]} : vector<16x9xf32> to vector<16x1xf32>
    %357 = vector.broadcast %356 : vector<16x1xf32> to vector<16x16xf32>
    %358 = arith.mulf %33, %357 : vector<16x16xf32>
    %359 = arith.addf %355, %358 : vector<16x16xf32>
    %360 = vector.extract_strided_slice %343 {offsets = [0, 4], sizes = [16, 1], strides = [1, 1]} : vector<16x9xf32> to vector<16x1xf32>
    %361 = vector.broadcast %360 : vector<16x1xf32> to vector<16x16xf32>
    %362 = arith.mulf %37, %361 : vector<16x16xf32>
    %363 = arith.addf %359, %362 : vector<16x16xf32>
    %364 = vector.extract_strided_slice %343 {offsets = [0, 5], sizes = [16, 1], strides = [1, 1]} : vector<16x9xf32> to vector<16x1xf32>
    %365 = vector.broadcast %364 : vector<16x1xf32> to vector<16x16xf32>
    %366 = arith.mulf %41, %365 : vector<16x16xf32>
    %367 = arith.addf %363, %366 : vector<16x16xf32>
    %368 = vector.extract_strided_slice %343 {offsets = [0, 6], sizes = [16, 1], strides = [1, 1]} : vector<16x9xf32> to vector<16x1xf32>
    %369 = vector.broadcast %368 : vector<16x1xf32> to vector<16x16xf32>
    %370 = arith.mulf %45, %369 : vector<16x16xf32>
    %371 = arith.addf %367, %370 : vector<16x16xf32>
    %372 = vector.extract_strided_slice %343 {offsets = [0, 7], sizes = [16, 1], strides = [1, 1]} : vector<16x9xf32> to vector<16x1xf32>
    %373 = vector.broadcast %372 : vector<16x1xf32> to vector<16x16xf32>
    %374 = arith.mulf %49, %373 : vector<16x16xf32>
    %375 = arith.addf %371, %374 : vector<16x16xf32>
    %376 = vector.extract_strided_slice %343 {offsets = [0, 8], sizes = [16, 1], strides = [1, 1]} : vector<16x9xf32> to vector<16x1xf32>
    %377 = vector.broadcast %376 : vector<16x1xf32> to vector<16x16xf32>
    %378 = arith.mulf %53, %377 : vector<16x16xf32>
    %379 = arith.addf %375, %378 : vector<16x16xf32>
    %cst_141 = arith.constant 0.000000e+00 : f32
    %380 = vector.broadcast %cst_141 : f32 to vector<16x16xf32>
    %381 = arith.cmpf oeq, %14, %380 : vector<16x16xf32>
    %cst_142 = arith.constant -1.000000e+04 : f32
    %382 = vector.broadcast %cst_142 : f32 to vector<16x16xf32>
    %383 = arith.select %381, %382, %379 : vector<16x16xi1>, vector<16x16xf32>
    %cst_143 = arith.constant dense<0xFF800000> : vector<16xf32>
    %384 = vector.multi_reduction <maximumf>, %383, %cst_143 [1] : vector<16x16xf32> to vector<16xf32>
    %385 = vector.shape_cast %384 : vector<16xf32> to vector<16x1xf32>
    %386 = vector.broadcast %385 : vector<16x1xf32> to vector<16x16xf32>
    %387 = arith.subf %383, %386 : vector<16x16xf32>
    %388 = math.exp %387 : vector<16x16xf32>
    %cst_144 = arith.constant dense<0.000000e+00> : vector<16xf32>
    %389 = vector.multi_reduction <add>, %388, %cst_144 [1] : vector<16x16xf32> to vector<16xf32>
    %390 = vector.shape_cast %389 : vector<16xf32> to vector<16x1xf32>
    %391 = vector.broadcast %390 : vector<16x1xf32> to vector<16x16xf32>
    %392 = arith.divf %388, %391 : vector<16x16xf32>
    %cst_145 = arith.constant dense<0.000000e+00> : vector<16x16xf32>
    %393 = tpu.matmul %392, %341, %cst_145 {dimension_numbers = #tpu.dot_dimension_numbers<[1], [0], [0], [1], [0, 0, 1, 1], [], []>} : vector<16x16xf32>, vector<16x16xf32>, vector<16x16xf32> -> vector<16x16xf32>
    %394 = arith.mulf %392, %21 : vector<16x16xf32>
    %cst_146 = arith.constant dense<0.000000e+00> : vector<16xf32>
    %395 = vector.multi_reduction <add>, %394, %cst_146 [1] : vector<16x16xf32> to vector<16xf32>
    %396 = vector.shape_cast %395 : vector<16xf32> to vector<16x1xf32>
    %397 = arith.mulf %392, %25 : vector<16x16xf32>
    %cst_147 = arith.constant dense<0.000000e+00> : vector<16xf32>
    %398 = vector.multi_reduction <add>, %397, %cst_147 [1] : vector<16x16xf32> to vector<16xf32>
    %399 = vector.shape_cast %398 : vector<16xf32> to vector<16x1xf32>
    %400 = arith.mulf %392, %29 : vector<16x16xf32>
    %cst_148 = arith.constant dense<0.000000e+00> : vector<16xf32>
    %401 = vector.multi_reduction <add>, %400, %cst_148 [1] : vector<16x16xf32> to vector<16xf32>
    %402 = vector.shape_cast %401 : vector<16xf32> to vector<16x1xf32>
    %403 = arith.mulf %392, %33 : vector<16x16xf32>
    %cst_149 = arith.constant dense<0.000000e+00> : vector<16xf32>
    %404 = vector.multi_reduction <add>, %403, %cst_149 [1] : vector<16x16xf32> to vector<16xf32>
    %405 = vector.shape_cast %404 : vector<16xf32> to vector<16x1xf32>
    %406 = arith.mulf %392, %37 : vector<16x16xf32>
    %cst_150 = arith.constant dense<0.000000e+00> : vector<16xf32>
    %407 = vector.multi_reduction <add>, %406, %cst_150 [1] : vector<16x16xf32> to vector<16xf32>
    %408 = vector.shape_cast %407 : vector<16xf32> to vector<16x1xf32>
    %409 = arith.mulf %392, %41 : vector<16x16xf32>
    %cst_151 = arith.constant dense<0.000000e+00> : vector<16xf32>
    %410 = vector.multi_reduction <add>, %409, %cst_151 [1] : vector<16x16xf32> to vector<16xf32>
    %411 = vector.shape_cast %410 : vector<16xf32> to vector<16x1xf32>
    %412 = arith.mulf %392, %45 : vector<16x16xf32>
    %cst_152 = arith.constant dense<0.000000e+00> : vector<16xf32>
    %413 = vector.multi_reduction <add>, %412, %cst_152 [1] : vector<16x16xf32> to vector<16xf32>
    %414 = vector.shape_cast %413 : vector<16xf32> to vector<16x1xf32>
    %415 = arith.mulf %392, %49 : vector<16x16xf32>
    %cst_153 = arith.constant dense<0.000000e+00> : vector<16xf32>
    %416 = vector.multi_reduction <add>, %415, %cst_153 [1] : vector<16x16xf32> to vector<16xf32>
    %417 = vector.shape_cast %416 : vector<16xf32> to vector<16x1xf32>
    %418 = arith.mulf %392, %53 : vector<16x16xf32>
    %cst_154 = arith.constant dense<0.000000e+00> : vector<16xf32>
    %419 = vector.multi_reduction <add>, %418, %cst_154 [1] : vector<16x16xf32> to vector<16xf32>
    %420 = vector.shape_cast %419 : vector<16xf32> to vector<16x1xf32>
    %421 = tpu.concatenate %396, %399, %402, %405, %408, %411, %414, %417, %420 in 1 : vector<16x1xf32>, vector<16x1xf32>, vector<16x1xf32>, vector<16x1xf32>, vector<16x1xf32>, vector<16x1xf32>, vector<16x1xf32>, vector<16x1xf32>, vector<16x1xf32> -> vector<16x9xf32>
    %cst_155 = arith.constant dense<0.000000e+00> : vector<16x16xf32>
    %422 = tpu.matmul %421, %204, %cst_155 {dimension_numbers = #tpu.dot_dimension_numbers<[1], [0], [0], [1], [0, 0, 1, 1], [], []>} : vector<16x9xf32>, vector<9x16xf32>, vector<16x16xf32> -> vector<16x16xf32>
    %423 = arith.addf %393, %422 : vector<16x16xf32>
    %c1_156 = arith.constant 1 : index
    %c0_157 = arith.constant 0 : index
    %c0_158 = arith.constant 0 : index
    %424 = vector.load %arg15[%c1_156, %c0_157, %c0_158] : memref<4x16x32xf32, #tpu.memory_space<vmem>>, vector<1x16x32xf32>
    %425 = vector.shape_cast %424 : vector<1x16x32xf32> to vector<16x32xf32>
    %cst_159 = arith.constant dense<0.000000e+00> : vector<16x32xf32>
    %426 = tpu.matmul %423, %425, %cst_159 {dimension_numbers = #tpu.dot_dimension_numbers<[1], [0], [0], [1], [0, 0, 1, 1], [], []>} : vector<16x16xf32>, vector<16x32xf32>, vector<16x32xf32> -> vector<16x32xf32>
    %427 = arith.addf %318, %426 : vector<16x32xf32>
    %428 = arith.addf %200, %427 : vector<16x32xf32>
    %c0_160 = arith.constant 0 : index
    %c0_161 = arith.constant 0 : index
    %c0_162 = arith.constant 0 : index
    %429 = vector.load %arg19[%c0_160, %c0_161, %c0_162] : memref<2x1x32xf32, #tpu.memory_space<vmem>>, vector<1x1x32xf32>
    %430 = vector.shape_cast %429 : vector<1x1x32xf32> to vector<1x32xf32>
    %c0_163 = arith.constant 0 : index
    %c0_164 = arith.constant 0 : index
    %c0_165 = arith.constant 0 : index
    %431 = vector.load %arg20[%c0_163, %c0_164, %c0_165] : memref<2x1x32xf32, #tpu.memory_space<vmem>>, vector<1x1x32xf32>
    %432 = vector.shape_cast %431 : vector<1x1x32xf32> to vector<1x32xf32>
    %cst_166 = arith.constant dense<0.000000e+00> : vector<16xf32>
    %433 = vector.multi_reduction <add>, %428, %cst_166 [1] : vector<16x32xf32> to vector<16xf32>
    %434 = vector.shape_cast %433 : vector<16xf32> to vector<16x1xf32>
    %cst_167 = arith.constant 3.200000e+01 : f32
    %435 = vector.broadcast %cst_167 : f32 to vector<16x1xf32>
    %436 = arith.divf %434, %435 : vector<16x1xf32>
    %437 = vector.broadcast %436 : vector<16x1xf32> to vector<16x32xf32>
    %438 = arith.subf %428, %437 : vector<16x32xf32>
    %439 = arith.mulf %438, %438 : vector<16x32xf32>
    %cst_168 = arith.constant dense<0.000000e+00> : vector<16xf32>
    %440 = vector.multi_reduction <add>, %439, %cst_168 [1] : vector<16x32xf32> to vector<16xf32>
    %441 = vector.shape_cast %440 : vector<16xf32> to vector<16x1xf32>
    %cst_169 = arith.constant 3.200000e+01 : f32
    %442 = vector.broadcast %cst_169 : f32 to vector<16x1xf32>
    %443 = arith.divf %441, %442 : vector<16x1xf32>
    %444 = vector.broadcast %436 : vector<16x1xf32> to vector<16x32xf32>
    %445 = arith.subf %428, %444 : vector<16x32xf32>
    %cst_170 = arith.constant 9.99999974E-5 : f32
    %446 = vector.broadcast %cst_170 : f32 to vector<16x1xf32>
    %447 = arith.addf %443, %446 : vector<16x1xf32>
    %448 = math.rsqrt %447 : vector<16x1xf32>
    %449 = vector.broadcast %448 : vector<16x1xf32> to vector<16x32xf32>
    %450 = arith.mulf %445, %449 : vector<16x32xf32>
    %451 = vector.broadcast %430 : vector<1x32xf32> to vector<16x32xf32>
    %452 = arith.mulf %450, %451 : vector<16x32xf32>
    %453 = vector.broadcast %432 : vector<1x32xf32> to vector<16x32xf32>
    %454 = arith.addf %452, %453 : vector<16x32xf32>
    %455 = vector.broadcast %7 : vector<16x1xf32> to vector<16x32xf32>
    %456 = arith.mulf %454, %455 : vector<16x32xf32>
    %c0_171 = arith.constant 0 : index
    %c0_172 = arith.constant 0 : index
    %c0_173 = arith.constant 0 : index
    %457 = vector.load %arg21[%c0_171, %c0_172, %c0_173] : memref<2x96x64xf32, #tpu.memory_space<vmem>>, vector<1x96x64xf32>
    %458 = vector.shape_cast %457 : vector<1x96x64xf32> to vector<96x64xf32>
    %c0_174 = arith.constant 0 : index
    %c0_175 = arith.constant 0 : index
    %c0_176 = arith.constant 0 : index
    %459 = vector.load %arg22[%c0_174, %c0_175, %c0_176] : memref<2x1x64xf32, #tpu.memory_space<vmem>>, vector<1x1x64xf32>
    %460 = vector.shape_cast %459 : vector<1x1x64xf32> to vector<1x64xf32>
    %cst_177 = arith.constant 0.000000e+00 : f32
    %461 = vector.broadcast %cst_177 : f32 to vector<1x32xf32>
    %462 = tpu.concatenate %461, %456, %461 in 0 : vector<1x32xf32>, vector<16x32xf32>, vector<1x32xf32> -> vector<18x32xf32>
    %463 = vector.extract_strided_slice %462 {offsets = [0, 0], sizes = [16, 32], strides = [1, 1]} : vector<18x32xf32> to vector<16x32xf32>
    %464 = vector.extract_strided_slice %462 {offsets = [1, 0], sizes = [16, 32], strides = [1, 1]} : vector<18x32xf32> to vector<16x32xf32>
    %465 = vector.extract_strided_slice %462 {offsets = [2, 0], sizes = [16, 32], strides = [1, 1]} : vector<18x32xf32> to vector<16x32xf32>
    %466 = tpu.concatenate %463, %464, %465 in 1 : vector<16x32xf32>, vector<16x32xf32>, vector<16x32xf32> -> vector<16x96xf32>
    %cst_178 = arith.constant dense<0.000000e+00> : vector<16x64xf32>
    %467 = tpu.matmul %466, %458, %cst_178 {dimension_numbers = #tpu.dot_dimension_numbers<[1], [0], [0], [1], [0, 0, 1, 1], [], []>} : vector<16x96xf32>, vector<96x64xf32>, vector<16x64xf32> -> vector<16x64xf32>
    %468 = vector.broadcast %460 : vector<1x64xf32> to vector<16x64xf32>
    %469 = arith.addf %467, %468 : vector<16x64xf32>
    %cst_179 = arith.constant 0.000000e+00 : f32
    %470 = vector.broadcast %cst_179 : f32 to vector<16x64xf32>
    %471 = arith.maximumf %469, %470 : vector<16x64xf32>
    %472 = vector.broadcast %7 : vector<16x1xf32> to vector<16x64xf32>
    %473 = arith.mulf %471, %472 : vector<16x64xf32>
    %c0_180 = arith.constant 0 : index
    %c0_181 = arith.constant 0 : index
    %c0_182 = arith.constant 0 : index
    %474 = vector.load %arg23[%c0_180, %c0_181, %c0_182] : memref<2x192x32xf32, #tpu.memory_space<vmem>>, vector<1x192x32xf32>
    %475 = vector.shape_cast %474 : vector<1x192x32xf32> to vector<192x32xf32>
    %c0_183 = arith.constant 0 : index
    %c0_184 = arith.constant 0 : index
    %c0_185 = arith.constant 0 : index
    %476 = vector.load %arg24[%c0_183, %c0_184, %c0_185] : memref<2x1x32xf32, #tpu.memory_space<vmem>>, vector<1x1x32xf32>
    %477 = vector.shape_cast %476 : vector<1x1x32xf32> to vector<1x32xf32>
    %cst_186 = arith.constant 0.000000e+00 : f32
    %478 = vector.broadcast %cst_186 : f32 to vector<1x64xf32>
    %479 = tpu.concatenate %478, %473, %478 in 0 : vector<1x64xf32>, vector<16x64xf32>, vector<1x64xf32> -> vector<18x64xf32>
    %480 = vector.extract_strided_slice %479 {offsets = [0, 0], sizes = [16, 64], strides = [1, 1]} : vector<18x64xf32> to vector<16x64xf32>
    %481 = vector.extract_strided_slice %479 {offsets = [1, 0], sizes = [16, 64], strides = [1, 1]} : vector<18x64xf32> to vector<16x64xf32>
    %482 = vector.extract_strided_slice %479 {offsets = [2, 0], sizes = [16, 64], strides = [1, 1]} : vector<18x64xf32> to vector<16x64xf32>
    %483 = tpu.concatenate %480, %481, %482 in 1 : vector<16x64xf32>, vector<16x64xf32>, vector<16x64xf32> -> vector<16x192xf32>
    %cst_187 = arith.constant dense<0.000000e+00> : vector<16x32xf32>
    %484 = tpu.matmul %483, %475, %cst_187 {dimension_numbers = #tpu.dot_dimension_numbers<[1], [0], [0], [1], [0, 0, 1, 1], [], []>} : vector<16x192xf32>, vector<192x32xf32>, vector<16x32xf32> -> vector<16x32xf32>
    %485 = vector.broadcast %477 : vector<1x32xf32> to vector<16x32xf32>
    %486 = arith.addf %484, %485 : vector<16x32xf32>
    %487 = vector.broadcast %7 : vector<16x1xf32> to vector<16x32xf32>
    %488 = arith.mulf %486, %487 : vector<16x32xf32>
    %489 = arith.addf %454, %488 : vector<16x32xf32>
    %c0_188 = arith.constant 0 : index
    %c0_189 = arith.constant 0 : index
    %c0_190 = arith.constant 0 : index
    %490 = vector.load %arg25[%c0_188, %c0_189, %c0_190] : memref<2x1x32xf32, #tpu.memory_space<vmem>>, vector<1x1x32xf32>
    %491 = vector.shape_cast %490 : vector<1x1x32xf32> to vector<1x32xf32>
    %c0_191 = arith.constant 0 : index
    %c0_192 = arith.constant 0 : index
    %c0_193 = arith.constant 0 : index
    %492 = vector.load %arg26[%c0_191, %c0_192, %c0_193] : memref<2x1x32xf32, #tpu.memory_space<vmem>>, vector<1x1x32xf32>
    %493 = vector.shape_cast %492 : vector<1x1x32xf32> to vector<1x32xf32>
    %cst_194 = arith.constant dense<0.000000e+00> : vector<16xf32>
    %494 = vector.multi_reduction <add>, %489, %cst_194 [1] : vector<16x32xf32> to vector<16xf32>
    %495 = vector.shape_cast %494 : vector<16xf32> to vector<16x1xf32>
    %cst_195 = arith.constant 3.200000e+01 : f32
    %496 = vector.broadcast %cst_195 : f32 to vector<16x1xf32>
    %497 = arith.divf %495, %496 : vector<16x1xf32>
    %498 = vector.broadcast %497 : vector<16x1xf32> to vector<16x32xf32>
    %499 = arith.subf %489, %498 : vector<16x32xf32>
    %500 = arith.mulf %499, %499 : vector<16x32xf32>
    %cst_196 = arith.constant dense<0.000000e+00> : vector<16xf32>
    %501 = vector.multi_reduction <add>, %500, %cst_196 [1] : vector<16x32xf32> to vector<16xf32>
    %502 = vector.shape_cast %501 : vector<16xf32> to vector<16x1xf32>
    %cst_197 = arith.constant 3.200000e+01 : f32
    %503 = vector.broadcast %cst_197 : f32 to vector<16x1xf32>
    %504 = arith.divf %502, %503 : vector<16x1xf32>
    %505 = vector.broadcast %497 : vector<16x1xf32> to vector<16x32xf32>
    %506 = arith.subf %489, %505 : vector<16x32xf32>
    %cst_198 = arith.constant 9.99999974E-5 : f32
    %507 = vector.broadcast %cst_198 : f32 to vector<16x1xf32>
    %508 = arith.addf %504, %507 : vector<16x1xf32>
    %509 = math.rsqrt %508 : vector<16x1xf32>
    %510 = vector.broadcast %509 : vector<16x1xf32> to vector<16x32xf32>
    %511 = arith.mulf %506, %510 : vector<16x32xf32>
    %512 = vector.broadcast %491 : vector<1x32xf32> to vector<16x32xf32>
    %513 = arith.mulf %511, %512 : vector<16x32xf32>
    %514 = vector.broadcast %493 : vector<1x32xf32> to vector<16x32xf32>
    %515 = arith.addf %513, %514 : vector<16x32xf32>
    %516 = vector.broadcast %7 : vector<16x1xf32> to vector<16x32xf32>
    %517 = arith.mulf %515, %516 : vector<16x32xf32>
    %c1_199 = arith.constant 1 : index
    %c0_200 = arith.constant 0 : index
    %c0_201 = arith.constant 0 : index
    %518 = vector.load %arg17[%c1_199, %c0_200, %c0_201] : memref<2x9x16xf32, #tpu.memory_space<vmem>>, vector<1x9x16xf32>
    %519 = vector.shape_cast %518 : vector<1x9x16xf32> to vector<9x16xf32>
    %c1_202 = arith.constant 1 : index
    %c0_203 = arith.constant 0 : index
    %c0_204 = arith.constant 0 : index
    %520 = vector.load %arg18[%c1_202, %c0_203, %c0_204] : memref<2x9x16xf32, #tpu.memory_space<vmem>>, vector<1x9x16xf32>
    %521 = vector.shape_cast %520 : vector<1x9x16xf32> to vector<9x16xf32>
    %cst_205 = arith.constant 0.000000e+00 : f32
    %522 = vector.broadcast %cst_205 : f32 to vector<16x32xf32>
    %c1_206 = arith.constant 1 : index
    %c0_207 = arith.constant 0 : index
    %c0_208 = arith.constant 0 : index
    %523 = vector.load %arg16[%c1_206, %c0_207, %c0_208] : memref<2x1x32xf32, #tpu.memory_space<vmem>>, vector<1x1x32xf32>
    %524 = vector.shape_cast %523 : vector<1x1x32xf32> to vector<1x32xf32>
    %525 = vector.broadcast %524 : vector<1x32xf32> to vector<16x32xf32>
    %526 = arith.addf %522, %525 : vector<16x32xf32>
    %c2_209 = arith.constant 2 : index
    %c0_210 = arith.constant 0 : index
    %c0_211 = arith.constant 0 : index
    %527 = vector.load %arg9[%c2_209, %c0_210, %c0_211] : memref<4x32x16xf32, #tpu.memory_space<vmem>>, vector<1x32x16xf32>
    %528 = vector.shape_cast %527 : vector<1x32x16xf32> to vector<32x16xf32>
    %cst_212 = arith.constant dense<0.000000e+00> : vector<16x16xf32>
    %529 = tpu.matmul %517, %528, %cst_212 {dimension_numbers = #tpu.dot_dimension_numbers<[1], [0], [0], [1], [0, 0, 1, 1], [], []>} : vector<16x32xf32>, vector<32x16xf32>, vector<16x16xf32> -> vector<16x16xf32>
    %c2_213 = arith.constant 2 : index
    %c0_214 = arith.constant 0 : index
    %c0_215 = arith.constant 0 : index
    %530 = vector.load %arg10[%c2_213, %c0_214, %c0_215] : memref<4x1x16xf32, #tpu.memory_space<vmem>>, vector<1x1x16xf32>
    %531 = vector.shape_cast %530 : vector<1x1x16xf32> to vector<1x16xf32>
    %532 = vector.broadcast %531 : vector<1x16xf32> to vector<16x16xf32>
    %533 = arith.addf %529, %532 : vector<16x16xf32>
    %cst_216 = arith.constant 2.500000e-01 : f32
    %534 = vector.broadcast %cst_216 : f32 to vector<16x16xf32>
    %535 = arith.mulf %533, %534 : vector<16x16xf32>
    %c2_217 = arith.constant 2 : index
    %c0_218 = arith.constant 0 : index
    %c0_219 = arith.constant 0 : index
    %536 = vector.load %arg11[%c2_217, %c0_218, %c0_219] : memref<4x32x16xf32, #tpu.memory_space<vmem>>, vector<1x32x16xf32>
    %537 = vector.shape_cast %536 : vector<1x32x16xf32> to vector<32x16xf32>
    %cst_220 = arith.constant dense<0.000000e+00> : vector<16x16xf32>
    %538 = tpu.matmul %517, %537, %cst_220 {dimension_numbers = #tpu.dot_dimension_numbers<[1], [0], [0], [1], [0, 0, 1, 1], [], []>} : vector<16x32xf32>, vector<32x16xf32>, vector<16x16xf32> -> vector<16x16xf32>
    %c2_221 = arith.constant 2 : index
    %c0_222 = arith.constant 0 : index
    %c0_223 = arith.constant 0 : index
    %539 = vector.load %arg12[%c2_221, %c0_222, %c0_223] : memref<4x1x16xf32, #tpu.memory_space<vmem>>, vector<1x1x16xf32>
    %540 = vector.shape_cast %539 : vector<1x1x16xf32> to vector<1x16xf32>
    %541 = vector.broadcast %540 : vector<1x16xf32> to vector<16x16xf32>
    %542 = arith.addf %538, %541 : vector<16x16xf32>
    %c2_224 = arith.constant 2 : index
    %c0_225 = arith.constant 0 : index
    %c0_226 = arith.constant 0 : index
    %543 = vector.load %arg13[%c2_224, %c0_225, %c0_226] : memref<4x32x16xf32, #tpu.memory_space<vmem>>, vector<1x32x16xf32>
    %544 = vector.shape_cast %543 : vector<1x32x16xf32> to vector<32x16xf32>
    %cst_227 = arith.constant dense<0.000000e+00> : vector<16x16xf32>
    %545 = tpu.matmul %517, %544, %cst_227 {dimension_numbers = #tpu.dot_dimension_numbers<[1], [0], [0], [1], [0, 0, 1, 1], [], []>} : vector<16x32xf32>, vector<32x16xf32>, vector<16x16xf32> -> vector<16x16xf32>
    %c2_228 = arith.constant 2 : index
    %c0_229 = arith.constant 0 : index
    %c0_230 = arith.constant 0 : index
    %546 = vector.load %arg14[%c2_228, %c0_229, %c0_230] : memref<4x1x16xf32, #tpu.memory_space<vmem>>, vector<1x1x16xf32>
    %547 = vector.shape_cast %546 : vector<1x1x16xf32> to vector<1x16xf32>
    %548 = vector.broadcast %547 : vector<1x16xf32> to vector<16x16xf32>
    %549 = arith.addf %545, %548 : vector<16x16xf32>
    %cst_231 = arith.constant dense<0.000000e+00> : vector<16x16xf32>
    %550 = tpu.matmul %535, %542, %cst_231 {dimension_numbers = #tpu.dot_dimension_numbers<[1], [1], [0], [0], [0, 0, 1, 0], [], []>} : vector<16x16xf32>, vector<16x16xf32>, vector<16x16xf32> -> vector<16x16xf32>
    %cst_232 = arith.constant dense<0.000000e+00> : vector<16x9xf32>
    %551 = tpu.matmul %535, %519, %cst_232 {dimension_numbers = #tpu.dot_dimension_numbers<[1], [1], [0], [0], [0, 0, 1, 0], [], []>} : vector<16x16xf32>, vector<9x16xf32>, vector<16x9xf32> -> vector<16x9xf32>
    %552 = vector.extract_strided_slice %551 {offsets = [0, 0], sizes = [16, 1], strides = [1, 1]} : vector<16x9xf32> to vector<16x1xf32>
    %553 = vector.broadcast %552 : vector<16x1xf32> to vector<16x16xf32>
    %554 = arith.mulf %21, %553 : vector<16x16xf32>
    %555 = arith.addf %550, %554 : vector<16x16xf32>
    %556 = vector.extract_strided_slice %551 {offsets = [0, 1], sizes = [16, 1], strides = [1, 1]} : vector<16x9xf32> to vector<16x1xf32>
    %557 = vector.broadcast %556 : vector<16x1xf32> to vector<16x16xf32>
    %558 = arith.mulf %25, %557 : vector<16x16xf32>
    %559 = arith.addf %555, %558 : vector<16x16xf32>
    %560 = vector.extract_strided_slice %551 {offsets = [0, 2], sizes = [16, 1], strides = [1, 1]} : vector<16x9xf32> to vector<16x1xf32>
    %561 = vector.broadcast %560 : vector<16x1xf32> to vector<16x16xf32>
    %562 = arith.mulf %29, %561 : vector<16x16xf32>
    %563 = arith.addf %559, %562 : vector<16x16xf32>
    %564 = vector.extract_strided_slice %551 {offsets = [0, 3], sizes = [16, 1], strides = [1, 1]} : vector<16x9xf32> to vector<16x1xf32>
    %565 = vector.broadcast %564 : vector<16x1xf32> to vector<16x16xf32>
    %566 = arith.mulf %33, %565 : vector<16x16xf32>
    %567 = arith.addf %563, %566 : vector<16x16xf32>
    %568 = vector.extract_strided_slice %551 {offsets = [0, 4], sizes = [16, 1], strides = [1, 1]} : vector<16x9xf32> to vector<16x1xf32>
    %569 = vector.broadcast %568 : vector<16x1xf32> to vector<16x16xf32>
    %570 = arith.mulf %37, %569 : vector<16x16xf32>
    %571 = arith.addf %567, %570 : vector<16x16xf32>
    %572 = vector.extract_strided_slice %551 {offsets = [0, 5], sizes = [16, 1], strides = [1, 1]} : vector<16x9xf32> to vector<16x1xf32>
    %573 = vector.broadcast %572 : vector<16x1xf32> to vector<16x16xf32>
    %574 = arith.mulf %41, %573 : vector<16x16xf32>
    %575 = arith.addf %571, %574 : vector<16x16xf32>
    %576 = vector.extract_strided_slice %551 {offsets = [0, 6], sizes = [16, 1], strides = [1, 1]} : vector<16x9xf32> to vector<16x1xf32>
    %577 = vector.broadcast %576 : vector<16x1xf32> to vector<16x16xf32>
    %578 = arith.mulf %45, %577 : vector<16x16xf32>
    %579 = arith.addf %575, %578 : vector<16x16xf32>
    %580 = vector.extract_strided_slice %551 {offsets = [0, 7], sizes = [16, 1], strides = [1, 1]} : vector<16x9xf32> to vector<16x1xf32>
    %581 = vector.broadcast %580 : vector<16x1xf32> to vector<16x16xf32>
    %582 = arith.mulf %49, %581 : vector<16x16xf32>
    %583 = arith.addf %579, %582 : vector<16x16xf32>
    %584 = vector.extract_strided_slice %551 {offsets = [0, 8], sizes = [16, 1], strides = [1, 1]} : vector<16x9xf32> to vector<16x1xf32>
    %585 = vector.broadcast %584 : vector<16x1xf32> to vector<16x16xf32>
    %586 = arith.mulf %53, %585 : vector<16x16xf32>
    %587 = arith.addf %583, %586 : vector<16x16xf32>
    %cst_233 = arith.constant 0.000000e+00 : f32
    %588 = vector.broadcast %cst_233 : f32 to vector<16x16xf32>
    %589 = arith.cmpf oeq, %14, %588 : vector<16x16xf32>
    %cst_234 = arith.constant -1.000000e+04 : f32
    %590 = vector.broadcast %cst_234 : f32 to vector<16x16xf32>
    %591 = arith.select %589, %590, %587 : vector<16x16xi1>, vector<16x16xf32>
    %cst_235 = arith.constant dense<0xFF800000> : vector<16xf32>
    %592 = vector.multi_reduction <maximumf>, %591, %cst_235 [1] : vector<16x16xf32> to vector<16xf32>
    %593 = vector.shape_cast %592 : vector<16xf32> to vector<16x1xf32>
    %594 = vector.broadcast %593 : vector<16x1xf32> to vector<16x16xf32>
    %595 = arith.subf %591, %594 : vector<16x16xf32>
    %596 = math.exp %595 : vector<16x16xf32>
    %cst_236 = arith.constant dense<0.000000e+00> : vector<16xf32>
    %597 = vector.multi_reduction <add>, %596, %cst_236 [1] : vector<16x16xf32> to vector<16xf32>
    %598 = vector.shape_cast %597 : vector<16xf32> to vector<16x1xf32>
    %599 = vector.broadcast %598 : vector<16x1xf32> to vector<16x16xf32>
    %600 = arith.divf %596, %599 : vector<16x16xf32>
    %cst_237 = arith.constant dense<0.000000e+00> : vector<16x16xf32>
    %601 = tpu.matmul %600, %549, %cst_237 {dimension_numbers = #tpu.dot_dimension_numbers<[1], [0], [0], [1], [0, 0, 1, 1], [], []>} : vector<16x16xf32>, vector<16x16xf32>, vector<16x16xf32> -> vector<16x16xf32>
    %602 = arith.mulf %600, %21 : vector<16x16xf32>
    %cst_238 = arith.constant dense<0.000000e+00> : vector<16xf32>
    %603 = vector.multi_reduction <add>, %602, %cst_238 [1] : vector<16x16xf32> to vector<16xf32>
    %604 = vector.shape_cast %603 : vector<16xf32> to vector<16x1xf32>
    %605 = arith.mulf %600, %25 : vector<16x16xf32>
    %cst_239 = arith.constant dense<0.000000e+00> : vector<16xf32>
    %606 = vector.multi_reduction <add>, %605, %cst_239 [1] : vector<16x16xf32> to vector<16xf32>
    %607 = vector.shape_cast %606 : vector<16xf32> to vector<16x1xf32>
    %608 = arith.mulf %600, %29 : vector<16x16xf32>
    %cst_240 = arith.constant dense<0.000000e+00> : vector<16xf32>
    %609 = vector.multi_reduction <add>, %608, %cst_240 [1] : vector<16x16xf32> to vector<16xf32>
    %610 = vector.shape_cast %609 : vector<16xf32> to vector<16x1xf32>
    %611 = arith.mulf %600, %33 : vector<16x16xf32>
    %cst_241 = arith.constant dense<0.000000e+00> : vector<16xf32>
    %612 = vector.multi_reduction <add>, %611, %cst_241 [1] : vector<16x16xf32> to vector<16xf32>
    %613 = vector.shape_cast %612 : vector<16xf32> to vector<16x1xf32>
    %614 = arith.mulf %600, %37 : vector<16x16xf32>
    %cst_242 = arith.constant dense<0.000000e+00> : vector<16xf32>
    %615 = vector.multi_reduction <add>, %614, %cst_242 [1] : vector<16x16xf32> to vector<16xf32>
    %616 = vector.shape_cast %615 : vector<16xf32> to vector<16x1xf32>
    %617 = arith.mulf %600, %41 : vector<16x16xf32>
    %cst_243 = arith.constant dense<0.000000e+00> : vector<16xf32>
    %618 = vector.multi_reduction <add>, %617, %cst_243 [1] : vector<16x16xf32> to vector<16xf32>
    %619 = vector.shape_cast %618 : vector<16xf32> to vector<16x1xf32>
    %620 = arith.mulf %600, %45 : vector<16x16xf32>
    %cst_244 = arith.constant dense<0.000000e+00> : vector<16xf32>
    %621 = vector.multi_reduction <add>, %620, %cst_244 [1] : vector<16x16xf32> to vector<16xf32>
    %622 = vector.shape_cast %621 : vector<16xf32> to vector<16x1xf32>
    %623 = arith.mulf %600, %49 : vector<16x16xf32>
    %cst_245 = arith.constant dense<0.000000e+00> : vector<16xf32>
    %624 = vector.multi_reduction <add>, %623, %cst_245 [1] : vector<16x16xf32> to vector<16xf32>
    %625 = vector.shape_cast %624 : vector<16xf32> to vector<16x1xf32>
    %626 = arith.mulf %600, %53 : vector<16x16xf32>
    %cst_246 = arith.constant dense<0.000000e+00> : vector<16xf32>
    %627 = vector.multi_reduction <add>, %626, %cst_246 [1] : vector<16x16xf32> to vector<16xf32>
    %628 = vector.shape_cast %627 : vector<16xf32> to vector<16x1xf32>
    %629 = tpu.concatenate %604, %607, %610, %613, %616, %619, %622, %625, %628 in 1 : vector<16x1xf32>, vector<16x1xf32>, vector<16x1xf32>, vector<16x1xf32>, vector<16x1xf32>, vector<16x1xf32>, vector<16x1xf32>, vector<16x1xf32>, vector<16x1xf32> -> vector<16x9xf32>
    %cst_247 = arith.constant dense<0.000000e+00> : vector<16x16xf32>
    %630 = tpu.matmul %629, %521, %cst_247 {dimension_numbers = #tpu.dot_dimension_numbers<[1], [0], [0], [1], [0, 0, 1, 1], [], []>} : vector<16x9xf32>, vector<9x16xf32>, vector<16x16xf32> -> vector<16x16xf32>
    %631 = arith.addf %601, %630 : vector<16x16xf32>
    %c2_248 = arith.constant 2 : index
    %c0_249 = arith.constant 0 : index
    %c0_250 = arith.constant 0 : index
    %632 = vector.load %arg15[%c2_248, %c0_249, %c0_250] : memref<4x16x32xf32, #tpu.memory_space<vmem>>, vector<1x16x32xf32>
    %633 = vector.shape_cast %632 : vector<1x16x32xf32> to vector<16x32xf32>
    %cst_251 = arith.constant dense<0.000000e+00> : vector<16x32xf32>
    %634 = tpu.matmul %631, %633, %cst_251 {dimension_numbers = #tpu.dot_dimension_numbers<[1], [0], [0], [1], [0, 0, 1, 1], [], []>} : vector<16x16xf32>, vector<16x32xf32>, vector<16x32xf32> -> vector<16x32xf32>
    %635 = arith.addf %526, %634 : vector<16x32xf32>
    %c3 = arith.constant 3 : index
    %c0_252 = arith.constant 0 : index
    %c0_253 = arith.constant 0 : index
    %636 = vector.load %arg9[%c3, %c0_252, %c0_253] : memref<4x32x16xf32, #tpu.memory_space<vmem>>, vector<1x32x16xf32>
    %637 = vector.shape_cast %636 : vector<1x32x16xf32> to vector<32x16xf32>
    %cst_254 = arith.constant dense<0.000000e+00> : vector<16x16xf32>
    %638 = tpu.matmul %517, %637, %cst_254 {dimension_numbers = #tpu.dot_dimension_numbers<[1], [0], [0], [1], [0, 0, 1, 1], [], []>} : vector<16x32xf32>, vector<32x16xf32>, vector<16x16xf32> -> vector<16x16xf32>
    %c3_255 = arith.constant 3 : index
    %c0_256 = arith.constant 0 : index
    %c0_257 = arith.constant 0 : index
    %639 = vector.load %arg10[%c3_255, %c0_256, %c0_257] : memref<4x1x16xf32, #tpu.memory_space<vmem>>, vector<1x1x16xf32>
    %640 = vector.shape_cast %639 : vector<1x1x16xf32> to vector<1x16xf32>
    %641 = vector.broadcast %640 : vector<1x16xf32> to vector<16x16xf32>
    %642 = arith.addf %638, %641 : vector<16x16xf32>
    %cst_258 = arith.constant 2.500000e-01 : f32
    %643 = vector.broadcast %cst_258 : f32 to vector<16x16xf32>
    %644 = arith.mulf %642, %643 : vector<16x16xf32>
    %c3_259 = arith.constant 3 : index
    %c0_260 = arith.constant 0 : index
    %c0_261 = arith.constant 0 : index
    %645 = vector.load %arg11[%c3_259, %c0_260, %c0_261] : memref<4x32x16xf32, #tpu.memory_space<vmem>>, vector<1x32x16xf32>
    %646 = vector.shape_cast %645 : vector<1x32x16xf32> to vector<32x16xf32>
    %cst_262 = arith.constant dense<0.000000e+00> : vector<16x16xf32>
    %647 = tpu.matmul %517, %646, %cst_262 {dimension_numbers = #tpu.dot_dimension_numbers<[1], [0], [0], [1], [0, 0, 1, 1], [], []>} : vector<16x32xf32>, vector<32x16xf32>, vector<16x16xf32> -> vector<16x16xf32>
    %c3_263 = arith.constant 3 : index
    %c0_264 = arith.constant 0 : index
    %c0_265 = arith.constant 0 : index
    %648 = vector.load %arg12[%c3_263, %c0_264, %c0_265] : memref<4x1x16xf32, #tpu.memory_space<vmem>>, vector<1x1x16xf32>
    %649 = vector.shape_cast %648 : vector<1x1x16xf32> to vector<1x16xf32>
    %650 = vector.broadcast %649 : vector<1x16xf32> to vector<16x16xf32>
    %651 = arith.addf %647, %650 : vector<16x16xf32>
    %c3_266 = arith.constant 3 : index
    %c0_267 = arith.constant 0 : index
    %c0_268 = arith.constant 0 : index
    %652 = vector.load %arg13[%c3_266, %c0_267, %c0_268] : memref<4x32x16xf32, #tpu.memory_space<vmem>>, vector<1x32x16xf32>
    %653 = vector.shape_cast %652 : vector<1x32x16xf32> to vector<32x16xf32>
    %cst_269 = arith.constant dense<0.000000e+00> : vector<16x16xf32>
    %654 = tpu.matmul %517, %653, %cst_269 {dimension_numbers = #tpu.dot_dimension_numbers<[1], [0], [0], [1], [0, 0, 1, 1], [], []>} : vector<16x32xf32>, vector<32x16xf32>, vector<16x16xf32> -> vector<16x16xf32>
    %c3_270 = arith.constant 3 : index
    %c0_271 = arith.constant 0 : index
    %c0_272 = arith.constant 0 : index
    %655 = vector.load %arg14[%c3_270, %c0_271, %c0_272] : memref<4x1x16xf32, #tpu.memory_space<vmem>>, vector<1x1x16xf32>
    %656 = vector.shape_cast %655 : vector<1x1x16xf32> to vector<1x16xf32>
    %657 = vector.broadcast %656 : vector<1x16xf32> to vector<16x16xf32>
    %658 = arith.addf %654, %657 : vector<16x16xf32>
    %cst_273 = arith.constant dense<0.000000e+00> : vector<16x16xf32>
    %659 = tpu.matmul %644, %651, %cst_273 {dimension_numbers = #tpu.dot_dimension_numbers<[1], [1], [0], [0], [0, 0, 1, 0], [], []>} : vector<16x16xf32>, vector<16x16xf32>, vector<16x16xf32> -> vector<16x16xf32>
    %cst_274 = arith.constant dense<0.000000e+00> : vector<16x9xf32>
    %660 = tpu.matmul %644, %519, %cst_274 {dimension_numbers = #tpu.dot_dimension_numbers<[1], [1], [0], [0], [0, 0, 1, 0], [], []>} : vector<16x16xf32>, vector<9x16xf32>, vector<16x9xf32> -> vector<16x9xf32>
    %661 = vector.extract_strided_slice %660 {offsets = [0, 0], sizes = [16, 1], strides = [1, 1]} : vector<16x9xf32> to vector<16x1xf32>
    %662 = vector.broadcast %661 : vector<16x1xf32> to vector<16x16xf32>
    %663 = arith.mulf %21, %662 : vector<16x16xf32>
    %664 = arith.addf %659, %663 : vector<16x16xf32>
    %665 = vector.extract_strided_slice %660 {offsets = [0, 1], sizes = [16, 1], strides = [1, 1]} : vector<16x9xf32> to vector<16x1xf32>
    %666 = vector.broadcast %665 : vector<16x1xf32> to vector<16x16xf32>
    %667 = arith.mulf %25, %666 : vector<16x16xf32>
    %668 = arith.addf %664, %667 : vector<16x16xf32>
    %669 = vector.extract_strided_slice %660 {offsets = [0, 2], sizes = [16, 1], strides = [1, 1]} : vector<16x9xf32> to vector<16x1xf32>
    %670 = vector.broadcast %669 : vector<16x1xf32> to vector<16x16xf32>
    %671 = arith.mulf %29, %670 : vector<16x16xf32>
    %672 = arith.addf %668, %671 : vector<16x16xf32>
    %673 = vector.extract_strided_slice %660 {offsets = [0, 3], sizes = [16, 1], strides = [1, 1]} : vector<16x9xf32> to vector<16x1xf32>
    %674 = vector.broadcast %673 : vector<16x1xf32> to vector<16x16xf32>
    %675 = arith.mulf %33, %674 : vector<16x16xf32>
    %676 = arith.addf %672, %675 : vector<16x16xf32>
    %677 = vector.extract_strided_slice %660 {offsets = [0, 4], sizes = [16, 1], strides = [1, 1]} : vector<16x9xf32> to vector<16x1xf32>
    %678 = vector.broadcast %677 : vector<16x1xf32> to vector<16x16xf32>
    %679 = arith.mulf %37, %678 : vector<16x16xf32>
    %680 = arith.addf %676, %679 : vector<16x16xf32>
    %681 = vector.extract_strided_slice %660 {offsets = [0, 5], sizes = [16, 1], strides = [1, 1]} : vector<16x9xf32> to vector<16x1xf32>
    %682 = vector.broadcast %681 : vector<16x1xf32> to vector<16x16xf32>
    %683 = arith.mulf %41, %682 : vector<16x16xf32>
    %684 = arith.addf %680, %683 : vector<16x16xf32>
    %685 = vector.extract_strided_slice %660 {offsets = [0, 6], sizes = [16, 1], strides = [1, 1]} : vector<16x9xf32> to vector<16x1xf32>
    %686 = vector.broadcast %685 : vector<16x1xf32> to vector<16x16xf32>
    %687 = arith.mulf %45, %686 : vector<16x16xf32>
    %688 = arith.addf %684, %687 : vector<16x16xf32>
    %689 = vector.extract_strided_slice %660 {offsets = [0, 7], sizes = [16, 1], strides = [1, 1]} : vector<16x9xf32> to vector<16x1xf32>
    %690 = vector.broadcast %689 : vector<16x1xf32> to vector<16x16xf32>
    %691 = arith.mulf %49, %690 : vector<16x16xf32>
    %692 = arith.addf %688, %691 : vector<16x16xf32>
    %693 = vector.extract_strided_slice %660 {offsets = [0, 8], sizes = [16, 1], strides = [1, 1]} : vector<16x9xf32> to vector<16x1xf32>
    %694 = vector.broadcast %693 : vector<16x1xf32> to vector<16x16xf32>
    %695 = arith.mulf %53, %694 : vector<16x16xf32>
    %696 = arith.addf %692, %695 : vector<16x16xf32>
    %cst_275 = arith.constant 0.000000e+00 : f32
    %697 = vector.broadcast %cst_275 : f32 to vector<16x16xf32>
    %698 = arith.cmpf oeq, %14, %697 : vector<16x16xf32>
    %cst_276 = arith.constant -1.000000e+04 : f32
    %699 = vector.broadcast %cst_276 : f32 to vector<16x16xf32>
    %700 = arith.select %698, %699, %696 : vector<16x16xi1>, vector<16x16xf32>
    %cst_277 = arith.constant dense<0xFF800000> : vector<16xf32>
    %701 = vector.multi_reduction <maximumf>, %700, %cst_277 [1] : vector<16x16xf32> to vector<16xf32>
    %702 = vector.shape_cast %701 : vector<16xf32> to vector<16x1xf32>
    %703 = vector.broadcast %702 : vector<16x1xf32> to vector<16x16xf32>
    %704 = arith.subf %700, %703 : vector<16x16xf32>
    %705 = math.exp %704 : vector<16x16xf32>
    %cst_278 = arith.constant dense<0.000000e+00> : vector<16xf32>
    %706 = vector.multi_reduction <add>, %705, %cst_278 [1] : vector<16x16xf32> to vector<16xf32>
    %707 = vector.shape_cast %706 : vector<16xf32> to vector<16x1xf32>
    %708 = vector.broadcast %707 : vector<16x1xf32> to vector<16x16xf32>
    %709 = arith.divf %705, %708 : vector<16x16xf32>
    %cst_279 = arith.constant dense<0.000000e+00> : vector<16x16xf32>
    %710 = tpu.matmul %709, %658, %cst_279 {dimension_numbers = #tpu.dot_dimension_numbers<[1], [0], [0], [1], [0, 0, 1, 1], [], []>} : vector<16x16xf32>, vector<16x16xf32>, vector<16x16xf32> -> vector<16x16xf32>
    %711 = arith.mulf %709, %21 : vector<16x16xf32>
    %cst_280 = arith.constant dense<0.000000e+00> : vector<16xf32>
    %712 = vector.multi_reduction <add>, %711, %cst_280 [1] : vector<16x16xf32> to vector<16xf32>
    %713 = vector.shape_cast %712 : vector<16xf32> to vector<16x1xf32>
    %714 = arith.mulf %709, %25 : vector<16x16xf32>
    %cst_281 = arith.constant dense<0.000000e+00> : vector<16xf32>
    %715 = vector.multi_reduction <add>, %714, %cst_281 [1] : vector<16x16xf32> to vector<16xf32>
    %716 = vector.shape_cast %715 : vector<16xf32> to vector<16x1xf32>
    %717 = arith.mulf %709, %29 : vector<16x16xf32>
    %cst_282 = arith.constant dense<0.000000e+00> : vector<16xf32>
    %718 = vector.multi_reduction <add>, %717, %cst_282 [1] : vector<16x16xf32> to vector<16xf32>
    %719 = vector.shape_cast %718 : vector<16xf32> to vector<16x1xf32>
    %720 = arith.mulf %709, %33 : vector<16x16xf32>
    %cst_283 = arith.constant dense<0.000000e+00> : vector<16xf32>
    %721 = vector.multi_reduction <add>, %720, %cst_283 [1] : vector<16x16xf32> to vector<16xf32>
    %722 = vector.shape_cast %721 : vector<16xf32> to vector<16x1xf32>
    %723 = arith.mulf %709, %37 : vector<16x16xf32>
    %cst_284 = arith.constant dense<0.000000e+00> : vector<16xf32>
    %724 = vector.multi_reduction <add>, %723, %cst_284 [1] : vector<16x16xf32> to vector<16xf32>
    %725 = vector.shape_cast %724 : vector<16xf32> to vector<16x1xf32>
    %726 = arith.mulf %709, %41 : vector<16x16xf32>
    %cst_285 = arith.constant dense<0.000000e+00> : vector<16xf32>
    %727 = vector.multi_reduction <add>, %726, %cst_285 [1] : vector<16x16xf32> to vector<16xf32>
    %728 = vector.shape_cast %727 : vector<16xf32> to vector<16x1xf32>
    %729 = arith.mulf %709, %45 : vector<16x16xf32>
    %cst_286 = arith.constant dense<0.000000e+00> : vector<16xf32>
    %730 = vector.multi_reduction <add>, %729, %cst_286 [1] : vector<16x16xf32> to vector<16xf32>
    %731 = vector.shape_cast %730 : vector<16xf32> to vector<16x1xf32>
    %732 = arith.mulf %709, %49 : vector<16x16xf32>
    %cst_287 = arith.constant dense<0.000000e+00> : vector<16xf32>
    %733 = vector.multi_reduction <add>, %732, %cst_287 [1] : vector<16x16xf32> to vector<16xf32>
    %734 = vector.shape_cast %733 : vector<16xf32> to vector<16x1xf32>
    %735 = arith.mulf %709, %53 : vector<16x16xf32>
    %cst_288 = arith.constant dense<0.000000e+00> : vector<16xf32>
    %736 = vector.multi_reduction <add>, %735, %cst_288 [1] : vector<16x16xf32> to vector<16xf32>
    %737 = vector.shape_cast %736 : vector<16xf32> to vector<16x1xf32>
    %738 = tpu.concatenate %713, %716, %719, %722, %725, %728, %731, %734, %737 in 1 : vector<16x1xf32>, vector<16x1xf32>, vector<16x1xf32>, vector<16x1xf32>, vector<16x1xf32>, vector<16x1xf32>, vector<16x1xf32>, vector<16x1xf32>, vector<16x1xf32> -> vector<16x9xf32>
    %cst_289 = arith.constant dense<0.000000e+00> : vector<16x16xf32>
    %739 = tpu.matmul %738, %521, %cst_289 {dimension_numbers = #tpu.dot_dimension_numbers<[1], [0], [0], [1], [0, 0, 1, 1], [], []>} : vector<16x9xf32>, vector<9x16xf32>, vector<16x16xf32> -> vector<16x16xf32>
    %740 = arith.addf %710, %739 : vector<16x16xf32>
    %c3_290 = arith.constant 3 : index
    %c0_291 = arith.constant 0 : index
    %c0_292 = arith.constant 0 : index
    %741 = vector.load %arg15[%c3_290, %c0_291, %c0_292] : memref<4x16x32xf32, #tpu.memory_space<vmem>>, vector<1x16x32xf32>
    %742 = vector.shape_cast %741 : vector<1x16x32xf32> to vector<16x32xf32>
    %cst_293 = arith.constant dense<0.000000e+00> : vector<16x32xf32>
    %743 = tpu.matmul %740, %742, %cst_293 {dimension_numbers = #tpu.dot_dimension_numbers<[1], [0], [0], [1], [0, 0, 1, 1], [], []>} : vector<16x16xf32>, vector<16x32xf32>, vector<16x32xf32> -> vector<16x32xf32>
    %744 = arith.addf %635, %743 : vector<16x32xf32>
    %745 = arith.addf %517, %744 : vector<16x32xf32>
    %c1_294 = arith.constant 1 : index
    %c0_295 = arith.constant 0 : index
    %c0_296 = arith.constant 0 : index
    %746 = vector.load %arg19[%c1_294, %c0_295, %c0_296] : memref<2x1x32xf32, #tpu.memory_space<vmem>>, vector<1x1x32xf32>
    %747 = vector.shape_cast %746 : vector<1x1x32xf32> to vector<1x32xf32>
    %c1_297 = arith.constant 1 : index
    %c0_298 = arith.constant 0 : index
    %c0_299 = arith.constant 0 : index
    %748 = vector.load %arg20[%c1_297, %c0_298, %c0_299] : memref<2x1x32xf32, #tpu.memory_space<vmem>>, vector<1x1x32xf32>
    %749 = vector.shape_cast %748 : vector<1x1x32xf32> to vector<1x32xf32>
    %cst_300 = arith.constant dense<0.000000e+00> : vector<16xf32>
    %750 = vector.multi_reduction <add>, %745, %cst_300 [1] : vector<16x32xf32> to vector<16xf32>
    %751 = vector.shape_cast %750 : vector<16xf32> to vector<16x1xf32>
    %cst_301 = arith.constant 3.200000e+01 : f32
    %752 = vector.broadcast %cst_301 : f32 to vector<16x1xf32>
    %753 = arith.divf %751, %752 : vector<16x1xf32>
    %754 = vector.broadcast %753 : vector<16x1xf32> to vector<16x32xf32>
    %755 = arith.subf %745, %754 : vector<16x32xf32>
    %756 = arith.mulf %755, %755 : vector<16x32xf32>
    %cst_302 = arith.constant dense<0.000000e+00> : vector<16xf32>
    %757 = vector.multi_reduction <add>, %756, %cst_302 [1] : vector<16x32xf32> to vector<16xf32>
    %758 = vector.shape_cast %757 : vector<16xf32> to vector<16x1xf32>
    %cst_303 = arith.constant 3.200000e+01 : f32
    %759 = vector.broadcast %cst_303 : f32 to vector<16x1xf32>
    %760 = arith.divf %758, %759 : vector<16x1xf32>
    %761 = vector.broadcast %753 : vector<16x1xf32> to vector<16x32xf32>
    %762 = arith.subf %745, %761 : vector<16x32xf32>
    %cst_304 = arith.constant 9.99999974E-5 : f32
    %763 = vector.broadcast %cst_304 : f32 to vector<16x1xf32>
    %764 = arith.addf %760, %763 : vector<16x1xf32>
    %765 = math.rsqrt %764 : vector<16x1xf32>
    %766 = vector.broadcast %765 : vector<16x1xf32> to vector<16x32xf32>
    %767 = arith.mulf %762, %766 : vector<16x32xf32>
    %768 = vector.broadcast %747 : vector<1x32xf32> to vector<16x32xf32>
    %769 = arith.mulf %767, %768 : vector<16x32xf32>
    %770 = vector.broadcast %749 : vector<1x32xf32> to vector<16x32xf32>
    %771 = arith.addf %769, %770 : vector<16x32xf32>
    %772 = vector.broadcast %7 : vector<16x1xf32> to vector<16x32xf32>
    %773 = arith.mulf %771, %772 : vector<16x32xf32>
    %c1_305 = arith.constant 1 : index
    %c0_306 = arith.constant 0 : index
    %c0_307 = arith.constant 0 : index
    %774 = vector.load %arg21[%c1_305, %c0_306, %c0_307] : memref<2x96x64xf32, #tpu.memory_space<vmem>>, vector<1x96x64xf32>
    %775 = vector.shape_cast %774 : vector<1x96x64xf32> to vector<96x64xf32>
    %c1_308 = arith.constant 1 : index
    %c0_309 = arith.constant 0 : index
    %c0_310 = arith.constant 0 : index
    %776 = vector.load %arg22[%c1_308, %c0_309, %c0_310] : memref<2x1x64xf32, #tpu.memory_space<vmem>>, vector<1x1x64xf32>
    %777 = vector.shape_cast %776 : vector<1x1x64xf32> to vector<1x64xf32>
    %cst_311 = arith.constant 0.000000e+00 : f32
    %778 = vector.broadcast %cst_311 : f32 to vector<1x32xf32>
    %779 = tpu.concatenate %778, %773, %778 in 0 : vector<1x32xf32>, vector<16x32xf32>, vector<1x32xf32> -> vector<18x32xf32>
    %780 = vector.extract_strided_slice %779 {offsets = [0, 0], sizes = [16, 32], strides = [1, 1]} : vector<18x32xf32> to vector<16x32xf32>
    %781 = vector.extract_strided_slice %779 {offsets = [1, 0], sizes = [16, 32], strides = [1, 1]} : vector<18x32xf32> to vector<16x32xf32>
    %782 = vector.extract_strided_slice %779 {offsets = [2, 0], sizes = [16, 32], strides = [1, 1]} : vector<18x32xf32> to vector<16x32xf32>
    %783 = tpu.concatenate %780, %781, %782 in 1 : vector<16x32xf32>, vector<16x32xf32>, vector<16x32xf32> -> vector<16x96xf32>
    %cst_312 = arith.constant dense<0.000000e+00> : vector<16x64xf32>
    %784 = tpu.matmul %783, %775, %cst_312 {dimension_numbers = #tpu.dot_dimension_numbers<[1], [0], [0], [1], [0, 0, 1, 1], [], []>} : vector<16x96xf32>, vector<96x64xf32>, vector<16x64xf32> -> vector<16x64xf32>
    %785 = vector.broadcast %777 : vector<1x64xf32> to vector<16x64xf32>
    %786 = arith.addf %784, %785 : vector<16x64xf32>
    %cst_313 = arith.constant 0.000000e+00 : f32
    %787 = vector.broadcast %cst_313 : f32 to vector<16x64xf32>
    %788 = arith.maximumf %786, %787 : vector<16x64xf32>
    %789 = vector.broadcast %7 : vector<16x1xf32> to vector<16x64xf32>
    %790 = arith.mulf %788, %789 : vector<16x64xf32>
    %c1_314 = arith.constant 1 : index
    %c0_315 = arith.constant 0 : index
    %c0_316 = arith.constant 0 : index
    %791 = vector.load %arg23[%c1_314, %c0_315, %c0_316] : memref<2x192x32xf32, #tpu.memory_space<vmem>>, vector<1x192x32xf32>
    %792 = vector.shape_cast %791 : vector<1x192x32xf32> to vector<192x32xf32>
    %c1_317 = arith.constant 1 : index
    %c0_318 = arith.constant 0 : index
    %c0_319 = arith.constant 0 : index
    %793 = vector.load %arg24[%c1_317, %c0_318, %c0_319] : memref<2x1x32xf32, #tpu.memory_space<vmem>>, vector<1x1x32xf32>
    %794 = vector.shape_cast %793 : vector<1x1x32xf32> to vector<1x32xf32>
    %cst_320 = arith.constant 0.000000e+00 : f32
    %795 = vector.broadcast %cst_320 : f32 to vector<1x64xf32>
    %796 = tpu.concatenate %795, %790, %795 in 0 : vector<1x64xf32>, vector<16x64xf32>, vector<1x64xf32> -> vector<18x64xf32>
    %797 = vector.extract_strided_slice %796 {offsets = [0, 0], sizes = [16, 64], strides = [1, 1]} : vector<18x64xf32> to vector<16x64xf32>
    %798 = vector.extract_strided_slice %796 {offsets = [1, 0], sizes = [16, 64], strides = [1, 1]} : vector<18x64xf32> to vector<16x64xf32>
    %799 = vector.extract_strided_slice %796 {offsets = [2, 0], sizes = [16, 64], strides = [1, 1]} : vector<18x64xf32> to vector<16x64xf32>
    %800 = tpu.concatenate %797, %798, %799 in 1 : vector<16x64xf32>, vector<16x64xf32>, vector<16x64xf32> -> vector<16x192xf32>
    %cst_321 = arith.constant dense<0.000000e+00> : vector<16x32xf32>
    %801 = tpu.matmul %800, %792, %cst_321 {dimension_numbers = #tpu.dot_dimension_numbers<[1], [0], [0], [1], [0, 0, 1, 1], [], []>} : vector<16x192xf32>, vector<192x32xf32>, vector<16x32xf32> -> vector<16x32xf32>
    %802 = vector.broadcast %794 : vector<1x32xf32> to vector<16x32xf32>
    %803 = arith.addf %801, %802 : vector<16x32xf32>
    %804 = vector.broadcast %7 : vector<16x1xf32> to vector<16x32xf32>
    %805 = arith.mulf %803, %804 : vector<16x32xf32>
    %806 = arith.addf %771, %805 : vector<16x32xf32>
    %c1_322 = arith.constant 1 : index
    %c0_323 = arith.constant 0 : index
    %c0_324 = arith.constant 0 : index
    %807 = vector.load %arg25[%c1_322, %c0_323, %c0_324] : memref<2x1x32xf32, #tpu.memory_space<vmem>>, vector<1x1x32xf32>
    %808 = vector.shape_cast %807 : vector<1x1x32xf32> to vector<1x32xf32>
    %c1_325 = arith.constant 1 : index
    %c0_326 = arith.constant 0 : index
    %c0_327 = arith.constant 0 : index
    %809 = vector.load %arg26[%c1_325, %c0_326, %c0_327] : memref<2x1x32xf32, #tpu.memory_space<vmem>>, vector<1x1x32xf32>
    %810 = vector.shape_cast %809 : vector<1x1x32xf32> to vector<1x32xf32>
    %cst_328 = arith.constant dense<0.000000e+00> : vector<16xf32>
    %811 = vector.multi_reduction <add>, %806, %cst_328 [1] : vector<16x32xf32> to vector<16xf32>
    %812 = vector.shape_cast %811 : vector<16xf32> to vector<16x1xf32>
    %cst_329 = arith.constant 3.200000e+01 : f32
    %813 = vector.broadcast %cst_329 : f32 to vector<16x1xf32>
    %814 = arith.divf %812, %813 : vector<16x1xf32>
    %815 = vector.broadcast %814 : vector<16x1xf32> to vector<16x32xf32>
    %816 = arith.subf %806, %815 : vector<16x32xf32>
    %817 = arith.mulf %816, %816 : vector<16x32xf32>
    %cst_330 = arith.constant dense<0.000000e+00> : vector<16xf32>
    %818 = vector.multi_reduction <add>, %817, %cst_330 [1] : vector<16x32xf32> to vector<16xf32>
    %819 = vector.shape_cast %818 : vector<16xf32> to vector<16x1xf32>
    %cst_331 = arith.constant 3.200000e+01 : f32
    %820 = vector.broadcast %cst_331 : f32 to vector<16x1xf32>
    %821 = arith.divf %819, %820 : vector<16x1xf32>
    %822 = vector.broadcast %814 : vector<16x1xf32> to vector<16x32xf32>
    %823 = arith.subf %806, %822 : vector<16x32xf32>
    %cst_332 = arith.constant 9.99999974E-5 : f32
    %824 = vector.broadcast %cst_332 : f32 to vector<16x1xf32>
    %825 = arith.addf %821, %824 : vector<16x1xf32>
    %826 = math.rsqrt %825 : vector<16x1xf32>
    %827 = vector.broadcast %826 : vector<16x1xf32> to vector<16x32xf32>
    %828 = arith.mulf %823, %827 : vector<16x32xf32>
    %829 = vector.broadcast %808 : vector<1x32xf32> to vector<16x32xf32>
    %830 = arith.mulf %828, %829 : vector<16x32xf32>
    %831 = vector.broadcast %810 : vector<1x32xf32> to vector<16x32xf32>
    %832 = arith.addf %830, %831 : vector<16x32xf32>
    %833 = vector.broadcast %7 : vector<16x1xf32> to vector<16x32xf32>
    %834 = arith.mulf %832, %833 : vector<16x32xf32>
    %c0_333 = arith.constant 0 : index
    %c0_334 = arith.constant 0 : index
    %c0_335 = arith.constant 0 : index
    %835 = vector.load %arg27[%c0_333, %c0_334, %c0_335] : memref<1x16x32xf32, #tpu.memory_space<vmem>>, vector<1x16x32xf32>
    %836 = vector.shape_cast %835 : vector<1x16x32xf32> to vector<16x32xf32>
    %837 = vector.shape_cast %834 : vector<16x32xf32> to vector<1x16x32xf32>
    tpu.vector_store %arg27[%c0_333, %c0_334, %c0_335], %837 {strides = array<i32>} : memref<1x16x32xf32, #tpu.memory_space<vmem>>, vector<1x16x32xf32>,
    return
  }
  func.func @transform_0(%arg0: i32, %arg1: memref<2xi32, #tpu.memory_space<smem>>) -> (i32, i32, i32) {
    %c0_i32 = arith.constant 0 : i32
    %c0_i32_0 = arith.constant 0 : i32
    %c0_i32_1 = arith.constant 0 : i32
    return %arg0, %c0_i32, %c0_i32_0 : i32, i32, i32
  }
  func.func @transform_1(%arg0: i32, %arg1: memref<2xi32, #tpu.memory_space<smem>>) -> (i32, i32, i32) {
    %c0_i32 = arith.constant 0 : i32
    %c0_i32_0 = arith.constant 0 : i32
    %c0_i32_1 = arith.constant 0 : i32
    %c0_i32_2 = arith.constant 0 : i32
    return %c0_i32, %c0_i32_0, %c0_i32_1 : i32, i32, i32
  }
  func.func @transform_2(%arg0: i32, %arg1: memref<2xi32, #tpu.memory_space<smem>>) -> (i32, i32, i32) {
    %c0_i32 = arith.constant 0 : i32
    %c0_i32_0 = arith.constant 0 : i32
    %c0_i32_1 = arith.constant 0 : i32
    %c0_i32_2 = arith.constant 0 : i32
    return %c0_i32, %c0_i32_0, %c0_i32_1 : i32, i32, i32
  }
  func.func @transform_3(%arg0: i32, %arg1: memref<2xi32, #tpu.memory_space<smem>>) -> (i32, i32, i32) {
    %c0_i32 = arith.constant 0 : i32
    %c0_i32_0 = arith.constant 0 : i32
    %c0_i32_1 = arith.constant 0 : i32
    %c0_i32_2 = arith.constant 0 : i32
    return %c0_i32, %c0_i32_0, %c0_i32_1 : i32, i32, i32
  }
  func.func @transform_4(%arg0: i32, %arg1: memref<2xi32, #tpu.memory_space<smem>>) -> (i32, i32, i32) {
    %c0_i32 = arith.constant 0 : i32
    %c0_i32_0 = arith.constant 0 : i32
    %c0_i32_1 = arith.constant 0 : i32
    %c0_i32_2 = arith.constant 0 : i32
    return %c0_i32, %c0_i32_0, %c0_i32_1 : i32, i32, i32
  }
  func.func @transform_5(%arg0: i32, %arg1: memref<2xi32, #tpu.memory_space<smem>>) -> (i32, i32) {
    %c0_i32 = arith.constant 0 : i32
    %c0_i32_0 = arith.constant 0 : i32
    %c0_i32_1 = arith.constant 0 : i32
    return %c0_i32, %c0_i32_0 : i32, i32
  }
  func.func @transform_6(%arg0: i32, %arg1: memref<2xi32, #tpu.memory_space<smem>>) -> (i32, i32) {
    %c0_i32 = arith.constant 0 : i32
    %c0_i32_0 = arith.constant 0 : i32
    %c0_i32_1 = arith.constant 0 : i32
    return %c0_i32, %c0_i32_0 : i32, i32
  }
  func.func @transform_7(%arg0: i32, %arg1: memref<2xi32, #tpu.memory_space<smem>>) -> (i32, i32, i32) {
    %c0_i32 = arith.constant 0 : i32
    %c0_i32_0 = arith.constant 0 : i32
    %c0_i32_1 = arith.constant 0 : i32
    %c0_i32_2 = arith.constant 0 : i32
    return %c0_i32, %c0_i32_0, %c0_i32_1 : i32, i32, i32
  }
  func.func @transform_8(%arg0: i32, %arg1: memref<2xi32, #tpu.memory_space<smem>>) -> (i32, i32, i32) {
    %c0_i32 = arith.constant 0 : i32
    %c0_i32_0 = arith.constant 0 : i32
    %c0_i32_1 = arith.constant 0 : i32
    %c0_i32_2 = arith.constant 0 : i32
    return %c0_i32, %c0_i32_0, %c0_i32_1 : i32, i32, i32
  }
  func.func @transform_9(%arg0: i32, %arg1: memref<2xi32, #tpu.memory_space<smem>>) -> (i32, i32, i32) {
    %c0_i32 = arith.constant 0 : i32
    %c0_i32_0 = arith.constant 0 : i32
    %c0_i32_1 = arith.constant 0 : i32
    %c0_i32_2 = arith.constant 0 : i32
    return %c0_i32, %c0_i32_0, %c0_i32_1 : i32, i32, i32
  }
  func.func @transform_10(%arg0: i32, %arg1: memref<2xi32, #tpu.memory_space<smem>>) -> (i32, i32, i32) {
    %c0_i32 = arith.constant 0 : i32
    %c0_i32_0 = arith.constant 0 : i32
    %c0_i32_1 = arith.constant 0 : i32
    %c0_i32_2 = arith.constant 0 : i32
    return %c0_i32, %c0_i32_0, %c0_i32_1 : i32, i32, i32
  }
  func.func @transform_11(%arg0: i32, %arg1: memref<2xi32, #tpu.memory_space<smem>>) -> (i32, i32, i32) {
    %c0_i32 = arith.constant 0 : i32
    %c0_i32_0 = arith.constant 0 : i32
    %c0_i32_1 = arith.constant 0 : i32
    %c0_i32_2 = arith.constant 0 : i32
    return %c0_i32, %c0_i32_0, %c0_i32_1 : i32, i32, i32
  }
  func.func @transform_12(%arg0: i32, %arg1: memref<2xi32, #tpu.memory_space<smem>>) -> (i32, i32, i32) {
    %c0_i32 = arith.constant 0 : i32
    %c0_i32_0 = arith.constant 0 : i32
    %c0_i32_1 = arith.constant 0 : i32
    %c0_i32_2 = arith.constant 0 : i32
    return %c0_i32, %c0_i32_0, %c0_i32_1 : i32, i32, i32
  }
  func.func @transform_13(%arg0: i32, %arg1: memref<2xi32, #tpu.memory_space<smem>>) -> (i32, i32, i32) {
    %c0_i32 = arith.constant 0 : i32
    %c0_i32_0 = arith.constant 0 : i32
    %c0_i32_1 = arith.constant 0 : i32
    %c0_i32_2 = arith.constant 0 : i32
    return %c0_i32, %c0_i32_0, %c0_i32_1 : i32, i32, i32
  }
  func.func @transform_14(%arg0: i32, %arg1: memref<2xi32, #tpu.memory_space<smem>>) -> (i32, i32, i32) {
    %c0_i32 = arith.constant 0 : i32
    %c0_i32_0 = arith.constant 0 : i32
    %c0_i32_1 = arith.constant 0 : i32
    %c0_i32_2 = arith.constant 0 : i32
    return %c0_i32, %c0_i32_0, %c0_i32_1 : i32, i32, i32
  }
  func.func @transform_15(%arg0: i32, %arg1: memref<2xi32, #tpu.memory_space<smem>>) -> (i32, i32, i32) {
    %c0_i32 = arith.constant 0 : i32
    %c0_i32_0 = arith.constant 0 : i32
    %c0_i32_1 = arith.constant 0 : i32
    %c0_i32_2 = arith.constant 0 : i32
    return %c0_i32, %c0_i32_0, %c0_i32_1 : i32, i32, i32
  }
  func.func @transform_16(%arg0: i32, %arg1: memref<2xi32, #tpu.memory_space<smem>>) -> (i32, i32, i32) {
    %c0_i32 = arith.constant 0 : i32
    %c0_i32_0 = arith.constant 0 : i32
    %c0_i32_1 = arith.constant 0 : i32
    %c0_i32_2 = arith.constant 0 : i32
    return %c0_i32, %c0_i32_0, %c0_i32_1 : i32, i32, i32
  }
  func.func @transform_17(%arg0: i32, %arg1: memref<2xi32, #tpu.memory_space<smem>>) -> (i32, i32, i32) {
    %c0_i32 = arith.constant 0 : i32
    %c0_i32_0 = arith.constant 0 : i32
    %c0_i32_1 = arith.constant 0 : i32
    %c0_i32_2 = arith.constant 0 : i32
    return %c0_i32, %c0_i32_0, %c0_i32_1 : i32, i32, i32
  }
  func.func @transform_18(%arg0: i32, %arg1: memref<2xi32, #tpu.memory_space<smem>>) -> (i32, i32, i32) {
    %c0_i32 = arith.constant 0 : i32
    %c0_i32_0 = arith.constant 0 : i32
    %c0_i32_1 = arith.constant 0 : i32
    %c0_i32_2 = arith.constant 0 : i32
    return %c0_i32, %c0_i32_0, %c0_i32_1 : i32, i32, i32
  }
  func.func @transform_19(%arg0: i32, %arg1: memref<2xi32, #tpu.memory_space<smem>>) -> (i32, i32, i32) {
    %c0_i32 = arith.constant 0 : i32
    %c0_i32_0 = arith.constant 0 : i32
    %c0_i32_1 = arith.constant 0 : i32
    %c0_i32_2 = arith.constant 0 : i32
    return %c0_i32, %c0_i32_0, %c0_i32_1 : i32, i32, i32
  }
  func.func @transform_20(%arg0: i32, %arg1: memref<2xi32, #tpu.memory_space<smem>>) -> (i32, i32, i32) {
    %c0_i32 = arith.constant 0 : i32
    %c0_i32_0 = arith.constant 0 : i32
    %c0_i32_1 = arith.constant 0 : i32
    %c0_i32_2 = arith.constant 0 : i32
    return %c0_i32, %c0_i32_0, %c0_i32_1 : i32, i32, i32
  }
  func.func @transform_21(%arg0: i32, %arg1: memref<2xi32, #tpu.memory_space<smem>>) -> (i32, i32, i32) {
    %c0_i32 = arith.constant 0 : i32
    %c0_i32_0 = arith.constant 0 : i32
    %c0_i32_1 = arith.constant 0 : i32
    %c0_i32_2 = arith.constant 0 : i32
    return %c0_i32, %c0_i32_0, %c0_i32_1 : i32, i32, i32
  }
  func.func @transform_22(%arg0: i32, %arg1: memref<2xi32, #tpu.memory_space<smem>>) -> (i32, i32, i32) {
    %c0_i32 = arith.constant 0 : i32
    %c0_i32_0 = arith.constant 0 : i32
    %c0_i32_1 = arith.constant 0 : i32
    %c0_i32_2 = arith.constant 0 : i32
    return %c0_i32, %c0_i32_0, %c0_i32_1 : i32, i32, i32
  }
  func.func @transform_23(%arg0: i32, %arg1: memref<2xi32, #tpu.memory_space<smem>>) -> (i32, i32, i32) {
    %c0_i32 = arith.constant 0 : i32
    %c0_i32_0 = arith.constant 0 : i32
    %c0_i32_1 = arith.constant 0 : i32
    %c0_i32_2 = arith.constant 0 : i32
    return %c0_i32, %c0_i32_0, %c0_i32_1 : i32, i32, i32
  }
  func.func @transform_24(%arg0: i32, %arg1: memref<2xi32, #tpu.memory_space<smem>>) -> (i32, i32, i32) {
    %c0_i32 = arith.constant 0 : i32
    %c0_i32_0 = arith.constant 0 : i32
    %c0_i32_1 = arith.constant 0 : i32
    %c0_i32_2 = arith.constant 0 : i32
    return %c0_i32, %c0_i32_0, %c0_i32_1 : i32, i32, i32
  }
  func.func @transform_25(%arg0: i32, %arg1: memref<2xi32, #tpu.memory_space<smem>>) -> (i32, i32, i32) {
    %c0_i32 = arith.constant 0 : i32
    %c0_i32_0 = arith.constant 0 : i32
    %c0_i32_1 = arith.constant 0 : i32
    return %arg0, %c0_i32, %c0_i32_0 : i32, i32, i32
  }
}

</mosaic_0001>

<bundles_post_ra>
// kernel: mel_decoder_forward.1
= control target key start
LH: loop header
LB: loop body
LE: loop exit
PB: predicated region body
PF: predicated region fallthrough
CT: control target
= control target key end

     0   :  { %s9693_s0 = inlined_call_operand.vmem [shape: s32[2], index: 0, kind: input, shape index: {}]   ;;  %s9694_s1 = inlined_call_operand.vmem [shape: f32[2,16,32], index: 1, kind: input, shape index: {}]   ;;  %s9695_s2 = inlined_call_operand.vmem [shape: f32[3,160,32], index: 2, kind: input, shape index: {}]   ;;  %s9696_s3 = inlined_call_operand.vmem [shape: f32[3,1,32], index: 3, kind: input, shape index: {}]   ;;  %s9697_s4 = inlined_call_operand.vmem [shape: f32[3,1,32], index: 4, kind: input, shape index: {}]   ;;  %s9698_s5 = inlined_call_operand.vmem [shape: f32[3,1,32], index: 5, kind: input, shape index: {}]   ;;  %s9699_s6 = inlined_call_operand.vmem [shape: f32[32,32], index: 6, kind: input, shape index: {}]   ;;  %s9700_s7 = inlined_call_operand.vmem [shape: f32[1,32], index: 7, kind: input, shape index: {}]   ;;  %s9701_s8 = inlined_call_operand.vmem [shape: f32[4,32,16], index: 8, kind: input, shape index: {}]   ;;  %s9702_s9 = inlined_call_operand.vmem [shape: f32[4,1,16], index: 9, kind: input, shape index: {}]   ;;  %s9703_s10 = inlined_call_operand.vmem [shape: f32[4,32,16], index: 10, kind: input, shape index: {}]   ;;  %s9704_s11 = inlined_call_operand.vmem [shape: f32[4,1,16], index: 11, kind: input, shape index: {}]   ;;  %s9705_s12 = inlined_call_operand.vmem [shape: f32[4,32,16], index: 12, kind: input, shape index: {}]   ;;  %s9706_s13 = inlined_call_operand.vmem [shape: f32[4,1,16], index: 13, kind: input, shape index: {}]   ;;  %s9707_s14 = inlined_call_operand.vmem [shape: f32[4,16,32], index: 14, kind: input, shape index: {}]   ;;  %s9708_s15 = inlined_call_operand.vmem [shape: f32[2,1,32], index: 15, kind: input, shape index: {}]   ;;  %s9709_s16 = inlined_call_operand.vmem [shape: f32[2,9,16], index: 16, kind: input, shape index: {}]   ;;  %s9710_s17 = inlined_call_operand.vmem [shape: f32[2,9,16], index: 17, kind: input, shape index: {}]   ;;  %s9711_s18 = inlined_call_operand.vmem [shape: f32[2,1,32], index: 18, kind: input, shape index: {}]   ;;  %s9712_s19 = inlined_call_operand.vmem [shape: f32[2,1,32], index: 19, kind: input, shape index: {}]   ;;  %s9713_s20 = inlined_call_operand.vmem [shape: f32[2,96,64], index: 20, kind: input, shape index: {}]   ;;  %s9714_s21 = inlined_call_operand.vmem [shape: f32[2,1,64], index: 21, kind: input, shape index: {}]   ;;  %s9715_s22 = inlined_call_operand.vmem [shape: f32[2,192,32], index: 22, kind: input, shape index: {}]   ;;  %s9716_s23 = inlined_call_operand.vmem [shape: f32[2,1,32], index: 23, kind: input, shape index: {}]   ;;  %s9717_s24 = inlined_call_operand.vmem [shape: f32[2,1,32], index: 24, kind: input, shape index: {}]   ;;  %s9718_s25 = inlined_call_operand.vmem [shape: f32[2,1,32], index: 25, kind: input, shape index: {}]   ;;  %s9719_s26 = inlined_call_operand.hbm [shape: f32[2,16,32], index: 26, kind: output, shape index: {}]  }
   0x1   :  { %9768 = sst [smem:[#allocation16_spill]] %s9693_s0 }
   0x2   :  { %9769 = sst [smem:[#allocation17_spill]] %s9694_s1 }
   0x3   :  { %9770 = sst [smem:[#allocation18_spill]] %s9695_s2 }
   0x4   :  { %9771 = sst [smem:[#allocation19_spill]] %s9696_s3 }
   0x5   :  { %9772 = sst [smem:[#allocation20_spill]] %s9697_s4 }
   0x6   :  { %9773 = sst [smem:[#allocation21_spill]] %s9698_s5 }
   0x7   :  { %9774 = sst [smem:[#allocation22_spill]] %s9699_s6 }
   0x8   :  { %9775 = sst [smem:[#allocation23_spill]] %s9700_s7  ;;  %s9781_s7 = sld [smem:[#allocation16_spill]] }
   0x9   :  { %9776 = sst [smem:[#allocation24_spill]] %s9701_s8 }
   0xa   :  { %9777 = sst [smem:[#allocation25_spill]] %s9702_s9 }
   0xb   :  { %9778 = sst [smem:[#allocation26_spill]] %s9703_s10 }
   0xc   :  { %9779 = sst [smem:[#allocation27_spill]] %s9712_s19 }
   0xd   :  { %9780 = sst [smem:[#allocation28_spill]] %s9719_s26 }
   0xe   :  { %s31_s19 = sshll.u32 %s9781_s7, 4  ;;  %s32_s19 = int_to_ptr.vmem [resolvable:$true] %s31_s19 }
   0xf   :  { %s7547_s28 = scalar_lea.vmem %s32_s19, 16  ;;  %p7552_p1 = scmp.lt.s32.totalorder %s32_s19, %s32_s19 }
  0x10   :  { %p7548_p0 = scmp.ne.s32.totalorder %s32_s19, %s7547_s28  ;;  %p7553_p2 = scmp.lt.s32.totalorder %s7547_s28, %s7547_s28 }
  0x12   :  { %p7554_p3 = por %p7553_p2, %p7552_p1 }
  0x14   :  { %p7555_p4 = pnand %p7554_p3, %p7548_p0 }
  0x16   :  { %7558 = shalt.err (!%p7555_p4)  }
  0x17   :  { %s7625_s8 = smov [#allocation3]  }
  0x18   :  { %34 = dma.vmem_to_smem %s32_s19, 16, %s7625_s8, [#allocation2] }
  0x19   :  { %7603 = dma.done.wait [#allocation2], 16 }
  0x1a   :  { %7604 = vsyncadd [#allocation2], 4294967280 }
  0x1b   :  { %36 = sfence }
  0x1c   :  { %37 = vsyncpa [#allocation5], 0 }
  0x1d   :  { %39 = vsyncpa [#allocation5 + $0x1], 0  ;;  %s7782_s4 = smov 0   ;;  %s7784_s29 = smov 0  }
  0x1e   :  { %s7786_s0 = smov 0   ;;  %s7788_s9 = smov 0  }
  0x1f LB: > { %9782 = sst [smem:[#allocation8_spill]] %s7611_s4  ;;  %s7803_s19 = sadd.s32 4294967295, %s7623_s9   ;;  %s7623_s9 = sphi %s7788_s9, %s9881_s9   ;;  %s7619_s0 = sphi %s7786_s0, %s9883_s0   ;;  %s7615_s29 = sphi %s7784_s29, %s9885_s29   ;;  %s7611_s4 = sphi %s7782_s4, %s9884_s4  }
  0x20   : > { %9783 = sst [smem:[#allocation9_spill]] %s7619_s0  ;;  %s6086_s30 = sadd.s32 4294967294, %s7623_s9  }
  0x21   : > { %9784 = sst [smem:[#allocation10_spill]] %s7623_s9  ;;  %s7807_s2 = sadd.s32 1, %s7623_s9  }
  0x22   : > { %9785 = sst [smem:[#allocation11_spill]] %s7803_s19  ;;  %s582_s5 = sadd.s32 1, %s7619_s0 }
  0x23   : > { %9786 = sst [smem:[#allocation12_spill]] %s7807_s2  ;;  %s579_s10 = ssub.s32 %s7623_s9, %s7807_s2 }
  0x24   : > { %p592_p5 = scmp.ne.s32.totalorder %s7619_s0, %s7615_s29  ;;  %p580_p6 = scmp.eq.s32.totalorder %s579_s10, 0 }
  0x25   : > { %p593_p7 = scmp.eq.s32.totalorder %s7803_s19, 1  ;;  %p598_p8 = scmp.ne.s32.totalorder %s7615_s29, %s7611_s4 }
  0x26   : > { %p599_p9 = scmp.eq.s32.totalorder %s6086_s30, 1  ;;  %p6089_p12 = scmp.ge.s32.totalorder %s7623_s9, 1 }
  0x27   : > { %s7818_s6 = scalar_select %p580_p6, %s7619_s0, %s582_s5  }
  0x28   : > { %p7820_p10 = por %p593_p7, %p592_p5  ;;  %p7824_p11 = por %p599_p9, %p598_p8 }
  0x29   : > { %9787 = sst [smem:[#allocation13_spill]] %s7818_s6  ;;  %p697_p13 = scmp.lt.s32.totalorder %s7623_s9, 3 }
  0x2a   : > { %s9788_s1 = scalar_select %p7820_p10, 1, 0 }
  0x2b   : > { %s9790_s27 = scalar_select %p7824_p11, 1, 0 }
  0x2c   : > { %9789 = sst [smem:[#allocation14_spill]] %s9788_s1  ;;  %p698_p0 = pnand %p6089_p12, %p697_p13 }
  0x2d   : > { %9791 = sst [smem:[#allocation15_spill]] %s9790_s27  ;;  %p765_p1 = scmp.lt.s32.totalorder (!%p698_p0), %s7803_s19, 1  ;;  %v771_v0 = vlaneseq (!%p698_p0)  ;;  %v9748_v4 = vmov (!%p698_p0), 0.0|0.0   ;;  %v7627_v15 = vmov (!%p698_p0), 0.0   ;;  %vm871_vm2 = vcmask (!%p698_p0), 1041408  }
  0x2e   : > { %701 = sbr.rel (%p698_p0) target bundleno = 10365 (0x287d), region = 120  ;;  %s770_s3 = sld [smem:[#allocation3 + %s7803_s19]] (!%p698_p0)  ;;  %6924 = vmatprep.subr.bf16.mxu0 (!%p698_p0), %v9748_v4  ;;  %6954 = vmatprep.subr.bf16.mxu1 (!%p698_p0), %v9748_v4  ;;  %vm9752_vm3 = vcmask (!%p698_p0), 1046528   ;;  %vm906_vm4 = vcmask (!%p698_p0), 1044480   ;;  %vm9751_vm5 = vcmask (!%p698_p0), 1045504   ;;  %vm918_vm6 = vcmask (!%p698_p0), 1043456  }
  0x2f   : > { %s9792_s8 = sld [smem:[#allocation18_spill]] (!%p698_p0)  ;;  %v7840_v3 = vshrl.u32 (!%p698_p0), %v771_v0, 7  ;;  %s9793_s5 = sld [smem:[#allocation17_spill]] (!%p698_p0)  ;;  %vm924_vm7 = vcmask (!%p698_p0), 261120   ;;  %vm9750_vm8 = vcmask (!%p698_p0), 523264   ;;  %vm9747_vm9 = vcmask (!%p698_p0), 785408  }
  0x30   : > { %s9736_s6 = smov (!%p698_p0), 32   ;;  %s9734_s2 = smov (!%p698_p0), 96   ;;  %vm1871_vm10 = vcmask (!%p698_p0), 130048   ;;  %vm9760_vm12 = vcmask (!%p698_p0), 1040384   ;;  %vm7631_vm13 = vmmov (!%p698_p0), 1  }
  0x31   : > { %v7851_v8 = vadd.s32 (!%p698_p0), 8, %v7840_v3  ;;  %s9797_s28 = sld [smem:[#allocation21_spill]] (!%p698_p0)  ;;  %s9799_s27 = smov (!%p698_p0), 32   ;;  %vm8307_vm11 = vmpackc.low (!%p698_p0), %vm1871_vm10, %vm1871_vm10 }
  0x32   : > { %s9801_s0 = sld [smem:[#allocation22_spill]] (!%p698_p0)  ;;  %vm8328_vm14 = vmpackc.low (!%p698_p0), %vm9760_vm12, %vm7631_vm13 }
  0x34   : > { %v7863_v12 = vstv (!%p698_p0), %s770_s3 }
  0x35   : > { %v848_v1 = vld [vmem:[%s9792_s8] sm:$0xff]  ;;  %v849_v2 = vld [vmem:[%s9792_s8 + $0x8] sm:$0xff]  ;;  %s766_s10 = scalar_select %p765_p1, %s7803_s19, 1  ;;  %v850_v6 = vld [vmem:[%s9792_s8 + $0x10] sm:$0xff]  ;;  %vm777_vm0 = vcmp.lt.s32.totalorder %v7840_v3, %v7863_v12  ;;  %vm778_vm1 = vcmp.lt.s32.totalorder %v7851_v8, %v7863_v12 }
  0x36   : > { %v6925_v5 = vpack.c.bf16 %v849_v2, %v848_v1  ;;  %v851_v7 = vld [vmem:[%s9792_s8 + $0x18] sm:$0xff]  ;;  %v852_v10 = vld [vmem:[%s9792_s8 + $0x20] sm:$0xff]  ;;  %v853_v11 = vld [vmem:[%s9792_s8 + $0x28] sm:$0xff]  ;;  %v7874_v16 = vsel %vm777_vm0, 1.0, %v7627_v15  ;;  %v7877_v17 = vsel %vm778_vm1, 1.0, %v7627_v15  ;;  %s9803_s19 = sld [smem:[#allocation24_spill]] }
  0x37   : > { %s6399_s7 = sshll.u32 %s766_s10, 4  ;;  %v6928_v9 = vpack.c.bf16 %v851_v7, %v850_v6  ;;  %v6931_v18 = vpack.c.bf16 %v853_v11, %v852_v10  ;;  %v854_v21 = vld [vmem:[%s9792_s8 + $0x30] sm:$0xff]  ;;  %v855_v22 = vld [vmem:[%s9792_s8 + $0x38] sm:$0xff]  ;;  %v856_v26 = vld [vmem:[%s9792_s8 + $0x40] sm:$0xff] }
  0x38   : > { %6926 = vmatpush1.bf16.msra.mxu0 %v6925_v5  ;;  %s769_s4 = scalar_lea.vmem %s9793_s5, %s6399_s7  ;;  %v6934_v25 = vpack.c.bf16 %v855_v22, %v854_v21  ;;  %v857_v27 = vld [vmem:[%s9792_s8 + $0x48] sm:$0xff]  ;;  %v858_v43 = vld [vmem:[%s9792_s8 + $0x50] sm:$0xff]  ;;  %v859_v44 = vld [vmem:[%s9792_s8 + $0x58] sm:$0xff]  ;;  %s9738_s7 = smov 64  }
  0x39   : > { %6927 = vmatprep.subr.bf16.mxu0 %v9748_v4  ;;  %v7865_v13 = vld [vmem:[%s769_s4] sm:$0xff]  ;;  %v7867_v14 = vld [vmem:[%s769_s4 + $0x8] sm:$0xff]  ;;  %v6937_v38 = vpack.c.bf16 %v857_v27, %v856_v26  ;;  %v6940_v51 = vpack.c.bf16 %v859_v44, %v858_v43  ;;  %v862_v58 = vld [vmem:[%s9792_s8 + $0x70] sm:$0xff]  ;;  %s9794_s5 = sld [smem:[#allocation19_spill]]  ;;  %s9795_s4 = sld [smem:[#allocation20_spill]] }
  0x3a   : > { %v846_v19 = vmul.f32 %v7874_v16, %v7865_v13  ;;  %v847_v20 = vmul.f32 %v7877_v17, %v7867_v14  ;;  %v860_v53 = vld [vmem:[%s9792_s8 + $0x60] sm:$0xff]  ;;  %v861_v54 = vld [vmem:[%s9792_s8 + $0x68] sm:$0xff]  ;;  %v863_v59 = vld [vmem:[%s9792_s8 + $0x78] sm:$0xff]  ;;  %s9802_s10 = smov %s9801_s0 }
  0x3b   : > { %v6943_v57 = vpack.c.bf16 %v861_v54, %v860_v53  ;;  %v6946_v60 = vpack.c.bf16 %v863_v59, %v862_v58  ;;  %v864_v61 = vld [vmem:[%s9792_s8 + $0x80] sm:$0xff]  ;;  %v865_v62 = vld [vmem:[%s9792_s8 + $0x88] sm:$0xff]  ;;  %v866_v1 = vld [vmem:[%s9792_s8 + $0x90] sm:$0xff] }
  0x3c   : > { %6929 = vmatpush1.bf16.msra.mxu0 %v6928_v9  ;;  %v872_v23 = vrot.slane %v846_v19, 6  ;;  %v873_v24 = vrot.slane %v847_v20, 6  ;;  %v6949_v63 = vpack.c.bf16 %v865_v62, %v864_v61  ;;  %v867_v2 = vld [vmem:[%s9792_s8 + $0x98] sm:$0xff]  ;;  %v6119_v44 = vld [vmem:[%s9792_s8 + $0xa0] sm:$0xff]  ;;  %v6125_v53 = vld [vmem:[%s9792_s8 + $0xd0] sm:$0xff] }
  0x3d   : > { %6930 = vmatprep.subr.bf16.mxu0 %v9748_v4  ;;  %v6952_v5 = vpack.c.bf16 %v867_v2, %v866_v1  ;;  %v6126_v54 = vld [vmem:[%s9792_s8 + $0xd8] sm:$0xff]  ;;  %v6129_v59 = vld [vmem:[%s9792_s8 + $0xf0] sm:$0xff]  ;;  %v6131_v62 = vld [vmem:[%s9792_s8 + $0x100] sm:$0xff] }
  0x3e   : > { %v7897_v28 = vsel %vm871_vm2, %v872_v23, %v873_v24  ;;  %v7900_v29 = vsel %vm871_vm2, 0.0, %v872_v23  ;;  %v879_v30 = vsel %vm871_vm2, %v873_v24, 0.0  ;;  %v6133_v2 = vld [vmem:[%s9792_s8 + $0x110] sm:$0xff] }
  0x3f   : > { %v883_v31 = vrot.slane %v7900_v29, 1  ;;  %v884_v32 = vrot.slane %v7897_v28, 1  ;;  %v907_v33 = vrot.slane %v7900_v29, 3  ;;  %v908_v34 = vrot.slane %v7897_v28, 3  ;;  %s9796_s3 = smov %s9795_s4 }
  0x40   : > { %6932 = vmatpush1.bf16.msra.mxu0 %v6931_v18  ;;  %v895_v35 = vrot.slane %v7900_v29, 2  ;;  %v896_v36 = vrot.slane %v7897_v28, 2  ;;  %v886_v37 = vrot.slane %v879_v30, 1  ;;  %v919_v41 = vrot.slane %v7900_v29, 4 }
  0x41   : > { %6933 = vmatprep.subr.bf16.mxu0 %v9748_v4  ;;  %v885_v39 = vsel %vm9752_vm3, %v883_v31, %v884_v32  ;;  %v909_v40 = vsel %vm906_vm4, %v907_v33, %v908_v34  ;;  %v898_v42 = vrot.slane %v879_v30, 2  ;;  %v920_v45 = vrot.slane %v7897_v28, 4 }
  0x42   : > { %888 = vrot.lane.b32.xlu0 %v885_v39, %s9736_s6  ;;  %912 = vrot.lane.b32.xlu1 %v909_v40, %s9734_s2  ;;  %v897_v46 = vsel %vm9751_vm5, %v895_v35, %v896_v36  ;;  %v887_v47 = vsel %vm9752_vm3, %v884_v32, %v886_v37  ;;  %v910_v48 = vrot.slane %v879_v30, 3  ;;  %v922_v49 = vrot.slane %v879_v30, 4 }
  0x43   : > { %v921_v50 = vsel %vm918_vm6, %v919_v41, %v920_v45  ;;  %v899_v55 = vsel %vm9751_vm5, %v896_v36, %v898_v42 }
  0x44   : > { %6935 = vmatpush1.bf16.msra.mxu0 %v6934_v25  ;;  %6115 = vmatprep.mubr.msk.f32.mxu0 %vm924_vm7, %v921_v50  ;;  %v923_v52 = vsel %vm918_vm6, %v920_v45, %v922_v49  ;;  %v911_v56 = vsel %vm906_vm4, %v908_v34, %v910_v48  ;;  %v6114_v25 = vld [vmem:[%s9794_s5] ss:$0 sm:$0xff]  ;;  %v6120_v45 = vld [vmem:[%s9792_s8 + $0xa8] sm:$0xff]  ;;  %v6122_v48 = vld [vmem:[%s9792_s8 + $0xb8] sm:$0xff] }
  0x45   : > { %6936 = vmatprep.subr.bf16.mxu0 %v9748_v4  ;;  %v6123_v50 = vld [vmem:[%s9792_s8 + $0xc0] sm:$0xff] }
  0x46   : > { %900 = vrot.lane.b32.xlu0 %v897_v46, %s9738_s7  ;;  %890 = vrot.lane.b32.xlu1 %v887_v47, %s9736_s6  ;;  %v6121_v46 = vld [vmem:[%s9792_s8 + $0xb0] sm:$0xff]  ;;  %v6955_v47 = vpack.c.bf16 %v6120_v45, %v6119_v44 }
  0x47   : > { %v6958_v49 = vpack.c.bf16 %v6122_v48, %v6121_v46 }
  0x48   : > { %6938 = vmatpush1.bf16.msra.mxu0 %v6937_v38  ;;  %6956 = vmatpush1.bf16.msra.mxu1 %v6955_v47 }
  0x49   : > { %6939 = vmatprep.subr.bf16.mxu0 %v9748_v4  ;;  %6957 = vmatprep.subr.bf16.mxu1 %v9748_v4 }
  0x4a   : > { %902 = vrot.lane.b32.xlu0 %v899_v55, %s9738_s7  ;;  %914 = vrot.lane.b32.xlu1 %v911_v56, %s9734_s2  ;;  %v6964_v55 = vpack.c.bf16 %v6126_v54, %v6125_v53  ;;  %v6127_v56 = vld [vmem:[%s9792_s8 + $0xe0] sm:$0xff]  ;;  %s9798_s7 = smov 64  }
  0x4c   : > { %6941 = vmatpush1.bf16.msra.mxu0 %v6940_v51  ;;  %v6124_v51 = vld [vmem:[%s9792_s8 + $0xc8] sm:$0xff]  ;;  %6959 = vmatpush1.bf16.msra.mxu1 %v6958_v49 }
  0x4d   : > { %6942 = vmatprep.subr.bf16.mxu0 %v9748_v4  ;;  %6960 = vmatprep.subr.bf16.mxu1 %v9748_v4 }
  0x50   : > { %6944 = vmatpush1.bf16.msra.mxu0 %v6943_v57  ;;  %v6128_v57 = vld [vmem:[%s9792_s8 + $0xe8] sm:$0xff] }
  0x51   : > { %6945 = vmatprep.subr.bf16.mxu0 %v9748_v4  ;;  %v6967_v58 = vpack.c.bf16 %v6128_v57, %v6127_v56 }
  0x54   : > { %6947 = vmatpush1.bf16.msra.mxu0 %v6946_v60  ;;  %v6130_v60 = vld [vmem:[%s9792_s8 + $0xf8] sm:$0xff] }
  0x55   : > { %6948 = vmatprep.subr.bf16.mxu0 %v9748_v4  ;;  %v6970_v61 = vpack.c.bf16 %v6130_v60, %v6129_v59 }
  0x58   : > { %6950 = vmatpush1.bf16.msra.mxu0 %v6949_v63  ;;  %v6132_v63 = vld [vmem:[%s9792_s8 + $0x108] sm:$0xff] }
  0x59   : > { %6951 = vmatprep.subr.bf16.mxu0 %v9748_v4  ;;  %v6973_v1 = vpack.c.bf16 %v6132_v63, %v6131_v62 }
  0x5c   : > { %6953 = vmatpush1.bf16.msra.mxu0 %v6952_v5  ;;  %v6134_v5 = vld [vmem:[%s9792_s8 + $0x118] sm:$0xff] }
  0x5d   : > { %6984 = vmatprep.subr.bf16.mxu0 %v9748_v4 }
  0xb4   : > { %v889_v6 = vpop.permute.xlu0 %888  ;;  %v913_v7 = vpop.permute.xlu1 %912 }
  0xb5   : > { %v925_v9 = vsel %vm924_vm7, %v7900_v29, %v889_v6  ;;  %v6976_v6 = vpack.c.bf16 %v6134_v5, %v6133_v2 }
  0xb8   : > { %v901_v10 = vpop.permute.xlu0 %900  ;;  %v891_v11 = vpop.permute.xlu1 %890 }
  0xb9   : > { %v928_v18 = vsel %vm9750_vm8, %v925_v9, %v901_v10  ;;  %v926_v20 = vsel %vm924_vm7, %v7897_v28, %v891_v11  ;;  %v6136_v9 = vld [vmem:[%s9792_s8 + $0x128] sm:$0xff] }
  0xba   : > { %v931_v19 = vsel %vm9747_vm9, %v928_v18, %v913_v7  ;;  %v6135_v7 = vld [vmem:[%s9792_s8 + $0x120] sm:$0xff] }
  0xbb   : > { %1008 = vmatmul.mubr.f32.vlgmr.msra.gmra.mrb[0].mxu0 %v931_v19  ;;  %v6979_v10 = vpack.c.bf16 %v6136_v9, %v6135_v7 }
  0xbc   : > { %v903_v21 = vpop.permute.xlu0 %902  ;;  %v915_v22 = vpop.permute.xlu1 %914  ;;  %6116 = vmatprep.mubr.msk.f32.mxu0 %vm924_vm7, %v923_v52  ;;  %v6961_v52 = vpack.c.bf16 %v6124_v51, %v6123_v50 }
  0xbd   : > { %v929_v23 = vsel %vm9750_vm8, %v926_v20, %v903_v21 }
  0xbe   : > { %v932_v24 = vsel %vm9747_vm9, %v929_v23, %v915_v22  ;;  %6962 = vmatpush1.bf16.msra.mxu1 %v6961_v52 }
  0xbf   : > { %1013 = vmatmul.mubr.f32.gmra.mrb[2].mxu0 %v932_v24  ;;  %6963 = vmatprep.subr.bf16.mxu1 %v9748_v4  ;;  %v6117_v24 = vld [vmem:[%s9795_s4] ss:$0 sm:$0xff]  ;;  %s9800_s4 = smov 96  }
  0xc2   : > { %6965 = vmatpush1.bf16.msra.mxu1 %v6964_v55 }
  0xc3   : > { %6966 = vmatprep.subr.bf16.mxu1 %v9748_v4 }
  0xc6   : > { %6968 = vmatpush1.bf16.msra.mxu1 %v6967_v58 }
  0xc7   : > { %6969 = vmatprep.subr.bf16.mxu1 %v9748_v4 }
  0xca   : > { %6971 = vmatpush1.bf16.msra.mxu1 %v6970_v61 }
  0xcb   : > { %6972 = vmatprep.subr.bf16.mxu1 %v9748_v4 }
  0xce   : > { %6974 = vmatpush1.bf16.msra.mxu1 %v6973_v1 }
  0xcf   : > { %6975 = vmatprep.subr.bf16.mxu1 %v9748_v4 }
  0xd2   : > { %6977 = vmatpush1.bf16.msra.mxu1 %v6976_v6 }
  0xd3   : > { %6978 = vmatprep.subr.bf16.mxu1 %v9748_v4 }
  0xd6   : > { %6980 = vmatpush1.bf16.msra.mxu1 %v6979_v10 }
  0xd7   : > { %6981 = vmatprep.subr.bf16.mxu1 %v9748_v4 }
 0x18e   : > { %v1009_v26 = vpop.f32.mrb[0].mxu0 }
 0x18f   : > { %v1010_v27 = vadd.f32 %v6114_v25, %v1009_v26  ;;  %v1011_v29 = vpop.f32.mrb[1].mxu0  ;;  %v6118_v26 = vld [vmem:[%s9797_s28] ss:$0 sm:$0xff] }
 0x191   : > { %v1020_v30 = vsel %vm924_vm7, %v1010_v27, 0.0 }
 0x192   : > { %1021 = vadd.xlane.f32.xlu0 %v1020_v30  ;;  %v1014_v28 = vpop.f32.mrb[2].mxu0 }
 0x193   : > { %v1015_v31 = vadd.f32 %v6114_v25, %v1014_v28  ;;  %v1016_v32 = vpop.f32.mrb[3].mxu0 }
 0x195   : > { %v1023_v33 = vsel %vm924_vm7, %v1015_v31, 0.0 }
 0x196   : > { %1024 = vadd.xlane.f32.xlu1 %v1023_v33  ;;  %v6137_v33 = vld [vmem:[%s9792_s8 + $0x130] sm:$0xff] }
 0x21f   : > { %v1022_v34 = vpop.xlane.xlu0 %1021 }
 0x220   : > { %v1027_v35 = vmul.f32 0.03125, %v1022_v34  ;;  %v6138_v34 = vld [vmem:[%s9792_s8 + $0x138] sm:$0xff] }
 0x222   : > { %v7978_v36 = vsub.f32 %v1010_v27, %v1027_v35 }
 0x223   : > { %v1025_v37 = vpop.xlane.xlu1 %1024 }
 0x224   : > { %v1028_v38 = vmul.f32 0.03125, %v1025_v37  ;;  %v1031_v39 = vmul.f32 %v7978_v36, %v7978_v36  ;;  %v6982_v37 = vpack.c.bf16 %v6138_v34, %v6137_v33 }
 0x226   : > { %v7982_v40 = vsub.f32 %v1015_v31, %v1028_v38  ;;  %v1033_v41 = vsel %vm924_vm7, %v1031_v39, 0.0  ;;  %6983 = vmatpush1.bf16.msra.mxu1 %v6982_v37 }
 0x227   : > { %1034 = vadd.xlane.f32.xlu0 %v1033_v41 }
 0x228   : > { %v1032_v42 = vmul.f32 %v7982_v40, %v7982_v40 }
 0x22a   : > { %v1036_v43 = vsel %vm924_vm7, %v1032_v42, 0.0 }
 0x22b   : > { %1037 = vadd.xlane.f32.xlu0 %v1036_v43 }
 0x2b4   : > { %v1035_v11 = vpop.xlane.xlu0 %1034 }
 0x2b5   : > { %v1039_v18 = vmul.f32 0.03125, %v1035_v11 }
 0x2b7   : > { %v1041_v19 = vadd.f32 0.0001, %v1039_v18 }
 0x2b8   : > { %v1038_v20 = vpop.xlane.xlu0 %1037 }
 0x2b9   : > { %7487 = vrsqrt.f32 %v1041_v19  ;;  %v1040_v21 = vmul.f32 0.03125, %v1038_v20 }
 0x2bb   : > { %v1042_v22 = vadd.f32 0.0001, %v1040_v21 }
 0x2bd   : > { %7489 = vrsqrt.f32 %v1042_v22 }
 0x2c3   : > { %v7488_v23 = vpop.eup %7487 }
 0x2c4   : > { %v1045_v25 = vmul.f32 %v7488_v23, %v7978_v36  ;;  %v6140_v23 = vld [vmem:[%s9794_s5 + $0x1] ss:$0 sm:$0xff] }
 0x2c6   : > { %v1053_v27 = vmul.f32 %v6117_v24, %v1045_v25 }
 0x2c7   : > { %v7490_v29 = vpop.eup %7489 }
 0x2c8   : > { %v1046_v30 = vmul.f32 %v7490_v29, %v7982_v40  ;;  %v1061_v28 = vadd.f32 %v6118_v26, %v1053_v27 }
 0x2ca   : > { %v1054_v31 = vmul.f32 %v6117_v24, %v1046_v30  ;;  %v1063_v32 = vmax.f32 %v1061_v28, 0.0 }
 0x2cc   : > { %v1062_v35 = vadd.f32 %v6118_v26, %v1054_v31  ;;  %v1065_v36 = vmul.f32 %v7874_v16, %v1063_v32 }
 0x2ce   : > { %v1064_v38 = vmax.f32 %v1062_v35, 0.0  ;;  %v1092_v39 = vrot.slane %v1065_v36, 6 }
 0x2d0   : > { %v1066_v40 = vmul.f32 %v7877_v17, %v1064_v38  ;;  %v1098_v41 = vsel %vm871_vm2, 0.0, %v1092_v39 }
 0x2d1   : > { %v1135_v44 = vrot.slane %v1098_v41, 4  ;;  %v1113_v45 = vrot.slane %v1098_v41, 2  ;;  %v1102_v49 = vrot.slane %v1098_v41, 1  ;;  %v1124_v58 = vrot.slane %v1098_v41, 3 }
 0x2d2   : > { %v1093_v42 = vrot.slane %v1066_v40, 6 }
 0x2d4   : > { %v1094_v43 = vsel %vm871_vm2, %v1092_v39, %v1093_v42  ;;  %v1099_v46 = vsel %vm871_vm2, %v1093_v42, 0.0  ;;  %v6147_v42 = vld [vmem:[%s9792_s8 + $0x140] sm:$0xff] }
 0x2d5   : > { %v1136_v47 = vrot.slane %v1094_v43, 4  ;;  %v1114_v48 = vrot.slane %v1094_v43, 2  ;;  %v1103_v50 = vrot.slane %v1094_v43, 1  ;;  %v1138_v51 = vrot.slane %v1099_v46, 4 }
 0x2d6   : > { %v1116_v55 = vrot.slane %v1099_v46, 2  ;;  %v1125_v56 = vrot.slane %v1094_v43, 3  ;;  %v1105_v61 = vrot.slane %v1099_v46, 1  ;;  %v1127_v63 = vrot.slane %v1099_v46, 3  ;;  %v6150_v46 = vld [vmem:[%s9792_s8 + $0x158] sm:$0xff] }
 0x2d7   : > { %v1137_v52 = vsel %vm918_vm6, %v1135_v44, %v1136_v47  ;;  %v1115_v53 = vsel %vm9751_vm5, %v1113_v45, %v1114_v48  ;;  %v1104_v54 = vsel %vm9752_vm3, %v1102_v49, %v1103_v50  ;;  %v1139_v57 = vsel %vm918_vm6, %v1136_v47, %v1138_v51  ;;  %v6149_v44 = vld [vmem:[%s9792_s8 + $0x150] sm:$0xff]  ;;  %v6152_v49 = vld [vmem:[%s9792_s8 + $0x168] sm:$0xff] }
 0x2d8   : > { %6141 = vmatprep.mubr.msk.f32.mxu1 %vm924_vm7, %v1137_v52  ;;  %1118 = vrot.lane.b32.xlu0 %v1115_v53, %s9798_s7  ;;  %v1117_v59 = vsel %vm9751_vm5, %v1114_v48, %v1116_v55  ;;  %v1126_v60 = vsel %vm906_vm4, %v1124_v58, %v1125_v56  ;;  %v1106_v62 = vsel %vm9752_vm3, %v1103_v50, %v1105_v61  ;;  %v6151_v48 = vld [vmem:[%s9792_s8 + $0x160] sm:$0xff]  ;;  %v6153_v51 = vld [vmem:[%s9792_s8 + $0x170] sm:$0xff]  ;;  %v6154_v52 = vld [vmem:[%s9792_s8 + $0x178] sm:$0xff] }
 0x2d9   : > { %1107 = vrot.lane.b32.xlu1 %v1104_v54, %s9799_s27  ;;  %v1128_v1 = vsel %vm906_vm4, %v1125_v56, %v1127_v63  ;;  %v6988_v47 = vpack.c.bf16 %v6150_v46, %v6149_v44  ;;  %v6991_v50 = vpack.c.bf16 %v6152_v49, %v6151_v48  ;;  %v6994_v53 = vpack.c.bf16 %v6154_v52, %v6153_v51  ;;  %v6155_v54 = vld [vmem:[%s9792_s8 + $0x180] sm:$0xff]  ;;  %v6156_v55 = vld [vmem:[%s9792_s8 + $0x188] sm:$0xff]  ;;  %v6158_v58 = vld [vmem:[%s9792_s8 + $0x198] sm:$0xff] }
 0x2da   : > { %v6997_v56 = vpack.c.bf16 %v6156_v55, %v6155_v54  ;;  %v6160_v61 = vld [vmem:[%s9792_s8 + $0x1a8] sm:$0xff]  ;;  %v6161_v63 = vld [vmem:[%s9792_s8 + $0x1b0] sm:$0xff] }
 0x2dc   : > { %1120 = vrot.lane.b32.xlu0 %v1117_v59, %s9798_s7 }
 0x2dd   : > { %1129 = vrot.lane.b32.xlu1 %v1126_v60, %s9800_s4  ;;  %v6159_v60 = vld [vmem:[%s9792_s8 + $0x1a0] sm:$0xff] }
 0x2e1   : > { %1109 = vrot.lane.b32.xlu1 %v1106_v62, %s9799_s27  ;;  %v7003_v62 = vpack.c.bf16 %v6160_v61, %v6159_v60 }
 0x2e5   : > { %1131 = vrot.lane.b32.xlu1 %v1128_v1, %s9800_s4  ;;  %v6162_v1 = vld [vmem:[%s9792_s8 + $0x1b8] sm:$0xff] }
 0x34a   : > { %v1119_v5 = vpop.permute.xlu0 %1118 }
 0x34b   : > { %v1108_v2 = vpop.permute.xlu1 %1107 }
 0x34c   : > { %v1140_v6 = vsel %vm924_vm7, %v1098_v41, %v1108_v2  ;;  %v7006_v2 = vpack.c.bf16 %v6162_v1, %v6161_v63 }
 0x34d   : > { %v1142_v9 = vsel %vm9750_vm8, %v1140_v6, %v1119_v5  ;;  %v6163_v5 = vld [vmem:[%s9792_s8 + $0x1c0] sm:$0xff]  ;;  %v6164_v6 = vld [vmem:[%s9792_s8 + $0x1c8] sm:$0xff] }
 0x34e   : > { %v1121_v19 = vpop.permute.xlu0 %1120 }
 0x34f   : > { %v1130_v7 = vpop.permute.xlu1 %1129 }
 0x350   : > { %v1144_v10 = vsel %vm9747_vm9, %v1142_v9, %v1130_v7  ;;  %v7009_v7 = vpack.c.bf16 %v6164_v6, %v6163_v5 }
 0x351   : > { %1221 = vmatmul.mubr.f32.vlgmr.msra.gmra.mrb[0].mxu1 %v1144_v10 }
 0x352   : > { %6142 = vmatprep.mubr.msk.f32.mxu1 %vm924_vm7, %v1139_v57  ;;  %v6157_v57 = vld [vmem:[%s9792_s8 + $0x190] sm:$0xff] }
 0x353   : > { %v1110_v11 = vpop.permute.xlu1 %1109  ;;  %v7000_v59 = vpack.c.bf16 %v6158_v58, %v6157_v57 }
 0x354   : > { %v1141_v18 = vsel %vm924_vm7, %v1094_v43, %v1110_v11  ;;  %v6148_v43 = vld [vmem:[%s9792_s8 + $0x148] sm:$0xff] }
 0x355   : > { %v1143_v21 = vsel %vm9750_vm8, %v1141_v18, %v1121_v19  ;;  %v6985_v45 = vpack.c.bf16 %v6148_v43, %v6147_v42 }
 0x357   : > { %v1132_v20 = vpop.permute.xlu1 %1131  ;;  %6986 = vmatpush1.bf16.msra.mxu0 %v6985_v45 }
 0x358   : > { %v1145_v22 = vsel %vm9747_vm9, %v1143_v21, %v1132_v20  ;;  %6987 = vmatprep.subr.bf16.mxu0 %v9748_v4 }
 0x359   : > { %1226 = vmatmul.mubr.f32.gmra.mrb[2].mxu1 %v1145_v22  ;;  %v6145_v22 = vld [vmem:[%s9796_s3 + $0x1] ss:$0 sm:$0xff] }
 0x35b   : > { %6989 = vmatpush1.bf16.msra.mxu0 %v6988_v47 }
 0x35c   : > { %6990 = vmatprep.subr.bf16.mxu0 %v9748_v4 }
 0x35f   : > { %6992 = vmatpush1.bf16.msra.mxu0 %v6991_v50 }
 0x360   : > { %6993 = vmatprep.subr.bf16.mxu0 %v9748_v4 }
 0x363   : > { %6995 = vmatpush1.bf16.msra.mxu0 %v6994_v53 }
 0x364   : > { %6996 = vmatprep.subr.bf16.mxu0 %v9748_v4 }
 0x367   : > { %6998 = vmatpush1.bf16.msra.mxu0 %v6997_v56 }
 0x368   : > { %6999 = vmatprep.subr.bf16.mxu0 %v9748_v4 }
 0x36b   : > { %7001 = vmatpush1.bf16.msra.mxu0 %v7000_v59 }
 0x36c   : > { %7002 = vmatprep.subr.bf16.mxu0 %v9748_v4 }
 0x36f   : > { %7004 = vmatpush1.bf16.msra.mxu0 %v7003_v62 }
 0x370   : > { %7005 = vmatprep.subr.bf16.mxu0 %v9748_v4 }
 0x373   : > { %7007 = vmatpush1.bf16.msra.mxu0 %v7006_v2 }
 0x374   : > { %7008 = vmatprep.subr.bf16.mxu0 %v9748_v4 }
 0x377   : > { %7010 = vmatpush1.bf16.msra.mxu0 %v7009_v7 }
 0x378   : > { %7011 = vmatprep.subr.bf16.mxu0 %v9748_v4 }
 0x424   : > { %v1222_v24 = vpop.f32.mrb[0].mxu1 }
 0x425   : > { %v1223_v25 = vadd.f32 %v6140_v23, %v1222_v24  ;;  %v1224_v26 = vpop.f32.mrb[1].mxu1  ;;  %v6146_v24 = vld [vmem:[%s9797_s28 + $0x1] ss:$0 sm:$0xff] }
 0x427   : > { %v1235_v27 = vsel %vm924_vm7, %v1223_v25, 0.0 }
 0x428   : > { %1236 = vadd.xlane.f32.xlu0 %v1235_v27 }
 0x42c   : > { %v1227_v29 = vpop.f32.mrb[2].mxu1 }
 0x42d   : > { %v1228_v30 = vadd.f32 %v6140_v23, %v1227_v29  ;;  %v1229_v28 = vpop.f32.mrb[3].mxu1 }
 0x42f   : > { %v1238_v31 = vsel %vm924_vm7, %v1228_v30, 0.0 }
 0x430   : > { %1239 = vadd.xlane.f32.xlu1 %v1238_v31 }
 0x4b5   : > { %v1237_v32 = vpop.xlane.xlu0 %1236 }
 0x4b6   : > { %v1241_v33 = vmul.f32 0.03125, %v1237_v32  ;;  %v6165_v32 = vld [vmem:[%s9792_s8 + $0x1d0] sm:$0xff] }
 0x4b8   : > { %v8097_v34 = vsub.f32 %v1223_v25, %v1241_v33  ;;  %v6166_v33 = vld [vmem:[%s9792_s8 + $0x1d8] sm:$0xff]  ;;  %s9877_s8 = sld [smem:[#allocation28_spill]] }
 0x4ba   : > { %v1245_v35 = vmul.f32 %v8097_v34, %v8097_v34 }
 0x4bc   : > { %v1247_v36 = vsel %vm924_vm7, %v1245_v35, 0.0  ;;  %v7012_v35 = vpack.c.bf16 %v6166_v33, %v6165_v32 }
 0x4bd   : > { %1248 = vadd.xlane.f32.xlu0 %v1247_v36  ;;  %v1240_v37 = vpop.xlane.xlu1 %1239 }
 0x4be   : > { %v1242_v38 = vmul.f32 0.03125, %v1240_v37  ;;  %7013 = vmatpush1.bf16.msra.mxu0 %v7012_v35 }
 0x4c0   : > { %v8102_v39 = vsub.f32 %v1228_v30, %v1242_v38 }
 0x4c2   : > { %v1246_v40 = vmul.f32 %v8102_v39, %v8102_v39 }
 0x4c4   : > { %v1250_v41 = vsel %vm924_vm7, %v1246_v40, 0.0 }
 0x4c5   : > { %1251 = vadd.xlane.f32.xlu0 %v1250_v41 }
 0x54a   : > { %v1249_v9 = vpop.xlane.xlu0 %1248 }
 0x54b   : > { %v1253_v10 = vmul.f32 0.03125, %v1249_v9 }
 0x54d   : > { %v1255_v11 = vadd.f32 0.0001, %v1253_v10 }
 0x54f   : > { %7491 = vrsqrt.f32 %v1255_v11 }
 0x552   : > { %v1252_v18 = vpop.xlane.xlu0 %1251 }
 0x553   : > { %v1254_v19 = vmul.f32 0.03125, %v1252_v18 }
 0x555   : > { %v1256_v20 = vadd.f32 0.0001, %v1254_v19 }
 0x557   : > { %7493 = vrsqrt.f32 %v1256_v20 }
 0x559   : > { %v7492_v21 = vpop.eup %7491 }
 0x55a   : > { %v1259_v23 = vmul.f32 %v7492_v21, %v8097_v34  ;;  %v6168_v21 = vld [vmem:[%s9794_s5 + $0x2] ss:$0 sm:$0xff]  ;;  %s9805_s5 = sld [smem:[#allocation23_spill]] }
 0x55c   : > { %v1267_v25 = vmul.f32 %v6145_v22, %v1259_v23 }
 0x55e   : > { %v1275_v26 = vadd.f32 %v6146_v24, %v1267_v25 }
 0x560   : > { %v1277_v27 = vmax.f32 %v1275_v26, 0.0 }
 0x561   : > { %v7494_v29 = vpop.eup %7493 }
 0x562   : > { %v1260_v30 = vmul.f32 %v7494_v29, %v8102_v39  ;;  %v1279_v28 = vmul.f32 %v7874_v16, %v1277_v27 }
 0x564   : > { %v1268_v31 = vmul.f32 %v6145_v22, %v1260_v30  ;;  %v1306_v36 = vrot.slane %v1279_v28, 6 }
 0x566   : > { %v1276_v34 = vadd.f32 %v6146_v24, %v1268_v31  ;;  %v1312_v39 = vsel %vm871_vm2, 0.0, %v1306_v36 }
 0x567   : > { %v1349_v42 = vrot.slane %v1312_v39, 4  ;;  %v1327_v43 = vrot.slane %v1312_v39, 2  ;;  %v1316_v47 = vrot.slane %v1312_v39, 1  ;;  %v1338_v56 = vrot.slane %v1312_v39, 3 }
 0x568   : > { %v1278_v37 = vmax.f32 %v1276_v34, 0.0 }
 0x56a   : > { %v1280_v38 = vmul.f32 %v7877_v17, %v1278_v37 }
 0x56c   : > { %v1307_v40 = vrot.slane %v1280_v38, 6 }
 0x56e   : > { %v1308_v41 = vsel %vm871_vm2, %v1306_v36, %v1307_v40  ;;  %v1313_v44 = vsel %vm871_vm2, %v1307_v40, 0.0  ;;  %v1493_v40 = vld [vmem:[%s9801_s0] sm:$0xff]  ;;  %s9812_s0 = sld [smem:[#allocation27_spill]] }
 0x56f   : > { %v1350_v45 = vrot.slane %v1308_v41, 4  ;;  %v1328_v46 = vrot.slane %v1308_v41, 2  ;;  %v1317_v48 = vrot.slane %v1308_v41, 1  ;;  %v1352_v49 = vrot.slane %v1313_v44, 4 }
 0x570   : > { %v1330_v53 = vrot.slane %v1313_v44, 2  ;;  %v1339_v54 = vrot.slane %v1308_v41, 3  ;;  %v1319_v59 = vrot.slane %v1313_v44, 1  ;;  %v1341_v61 = vrot.slane %v1313_v44, 3  ;;  %v1496_v44 = vld [vmem:[%s9802_s10 + $0x18] sm:$0xff] }
 0x571   : > { %v1351_v50 = vsel %vm918_vm6, %v1349_v42, %v1350_v45  ;;  %v1329_v51 = vsel %vm9751_vm5, %v1327_v43, %v1328_v46  ;;  %v1318_v52 = vsel %vm9752_vm3, %v1316_v47, %v1317_v48  ;;  %v1353_v55 = vsel %vm918_vm6, %v1350_v45, %v1352_v49  ;;  %v1495_v43 = vld [vmem:[%s9802_s10 + $0x10] sm:$0xff] }
 0x572   : > { %6169 = vmatprep.mubr.msk.f32.mxu0 %vm924_vm7, %v1351_v50  ;;  %1332 = vrot.lane.b32.xlu0 %v1329_v51, %s9798_s7  ;;  %v1331_v57 = vsel %vm9751_vm5, %v1328_v46, %v1330_v53  ;;  %v1340_v58 = vsel %vm906_vm4, %v1338_v56, %v1339_v54  ;;  %v1320_v60 = vsel %vm9752_vm3, %v1317_v48, %v1319_v59  ;;  %v6173_v53 = vld [vmem:[%s9796_s3 + $0x2] ss:$0 sm:$0xff]  ;;  %s9804_s3 = sld [smem:[#allocation26_spill]]  ;;  %vm9756_vm5 = vcmask 64512  }
 0x573   : > { %1321 = vrot.lane.b32.xlu1 %v1318_v52, %s9799_s27  ;;  %v1342_v62 = vsel %vm906_vm4, %v1339_v54, %v1341_v61  ;;  %v7018_v45 = vpack.c.bf16 %v1496_v44, %v1495_v43  ;;  %vm9755_vm3 = vcmask 72704  }
 0x574   : > { %s9813_s26 = smov %s9812_s0 }
 0x576   : > { %1334 = vrot.lane.b32.xlu0 %v1331_v57, %s9798_s7 }
 0x577   : > { %1343 = vrot.lane.b32.xlu1 %v1340_v58, %s9800_s4 }
 0x57b   : > { %1323 = vrot.lane.b32.xlu1 %v1320_v60, %s9799_s27 }
 0x57f   : > { %1345 = vrot.lane.b32.xlu1 %v1342_v62, %s9800_s4 }
 0x5e4   : > { %v1333_v1 = vpop.permute.xlu0 %1332 }
 0x5e5   : > { %v1322_v63 = vpop.permute.xlu1 %1321 }
 0x5e6   : > { %v1354_v2 = vsel %vm924_vm7, %v1312_v39, %v1322_v63 }
 0x5e7   : > { %v1356_v5 = vsel %vm9750_vm8, %v1354_v2, %v1333_v1  ;;  %v1605_v1 = vld [vmem:[%s9803_s19] sm:$0xff]  ;;  %v1606_v2 = vld [vmem:[%s9803_s19 + $0x8] sm:$0xff] }
 0x5e8   : > { %v1335_v11 = vpop.permute.xlu0 %1334 }
 0x5e9   : > { %v1344_v6 = vpop.permute.xlu1 %1343 }
 0x5ea   : > { %v1358_v7 = vsel %vm9747_vm9, %v1356_v5, %v1344_v6  ;;  %v7022_v5 = vpack.c.bf16 %v1606_v2, %v1605_v1  ;;  %v1607_v6 = vld [vmem:[%s9803_s19 + $0x10] sm:$0xff] }
 0x5eb   : > { %1435 = vmatmul.mubr.f32.vlgmr.msra.gmra.mrb[4].mxu0 %v1358_v7  ;;  %v1608_v7 = vld [vmem:[%s9803_s19 + $0x18] sm:$0xff] }
 0x5ec   : > { %6170 = vmatprep.mubr.msk.f32.mxu0 %vm924_vm7, %v1353_v55  ;;  %v6174_v55 = vld [vmem:[%s9797_s28 + $0x2] ss:$0 sm:$0xff] }
 0x5ed   : > { %v1324_v9 = vpop.permute.xlu1 %1323 }
 0x5ee   : > { %v1355_v10 = vsel %vm924_vm7, %v1308_v41, %v1324_v9  ;;  %v1494_v41 = vld [vmem:[%s9802_s10 + $0x8] sm:$0xff]  ;;  %v7026_v9 = vpack.c.bf16 %v1608_v7, %v1607_v6  ;;  %v7634_v7 = vmov 2   ;;  %s762_s10 = sand.u32 1, %s7615_s29  }
 0x5ef   : > { %v1357_v19 = vsel %vm9750_vm8, %v1355_v10, %v1335_v11  ;;  %v7014_v42 = vpack.c.bf16 %v1494_v41, %v1493_v40  ;;  %v1699_v10 = vld [vmem:[%s9804_s3] sm:$0xff]  ;;  %v1700_v11 = vld [vmem:[%s9804_s3 + $0x8] sm:$0xff]  ;;  %vm9757_vm8 = vcmask 56320   ;;  %v9840_v40 = vmov 6   ;;  %s6090_s30 = sshll.u32 %s762_s10, 4 }
 0x5f0   : > { %v1595_v41 = vld [vmem:[%s9710_s17] sm:$0xff]  ;;  %s764_s9 = scalar_lea.vmem [#allocation4], %s6090_s30  ;;  %s7641_s30 = smov [#allocation4]  }
 0x5f1   : > { %v1346_v18 = vpop.permute.xlu1 %1345  ;;  %7015 = vmatprep.subr.bf16.mxu1 %v7014_v42  ;;  %s6024_s1 = sshll.u32 %s764_s9, 4  ;;  %s7563_s4 = sshll.u32 %s7641_s30, 4  ;;  %s9648_s1 = int_to_ptr.vmem [resolvable:$true] %s6024_s1  ;;  %s7564_s4 = int_to_ptr.vmem [resolvable:$false] %s7563_s4 }
 0x5f2   : > { %v1359_v20 = vsel %vm9747_vm9, %v1357_v19, %v1346_v18  ;;  %7017 = vmatpush3.bf16.msra.mxu1 %v7014_v42  ;;  %v7030_v18 = vpack.c.bf16 %v1700_v11, %v1699_v10  ;;  %v1596_v42 = vld [vmem:[%s9710_s17 + $0x8] sm:$0x1]  ;;  %v7636_v10 = vmov 3   ;;  %v9763_v11 = vmov 5   ;;  %s7559_s6 = scalar_lea.vmem %s9648_s1, 256  ;;  %p7566_p5 = scmp.lt.s32.totalorder %s9648_s1, %s7564_s4 }
 0x5f3   : > { %1440 = vmatmul.mubr.f32.gmra.mrb[6].mxu0 %v1359_v20  ;;  %7019 = vmatprep.subr.bf16.mxu1 %v7018_v45  ;;  %v6177_v20 = vld [vmem:[%s9805_s5] ss:$0 sm:$0xff]  ;;  %v8325_v43 = vpack.c.bf16 %v1596_v42, %v1595_v41  ;;  %s9810_s5 = sld [smem:[#allocation25_spill]]  ;;  %vm9758_vm9 = vcmask 48128   ;;  %p7560_p2 = scmp.ne.s32.totalorder %s9648_s1, %s7559_s6 }
 0x5f5   : > { %p7561_p3 = pnand %p7560_p2, %p7820_p10 }
 0x5f6   : > { %7021 = vmatpush3.bf16.msra.mxu1 %v7018_v45  ;;  %v7632_v45 = vmov 1  }
 0x5f7   : > { %7023 = vmatprep.subr.bf16.mxu1 %v7022_v5  ;;  %7416 = vset.pattern.permute.xlu1 %v7632_v45  ;;  %p7562_p4 = pneg %p7561_p3 }
 0x6be   : > { %v1436_v22 = vpop.f32.mrb[4].mxu0 }
 0x6bf   : > { %v1437_v23 = vadd.f32 %v6168_v21, %v1436_v22  ;;  %v1438_v24 = vpop.f32.mrb[5].mxu0 }
 0x6c1   : > { %v1449_v25 = vsel %vm924_vm7, %v1437_v23, 0.0 }
 0x6c2   : > { %1450 = vadd.xlane.f32.xlu0 %v1449_v25 }
 0x6c6   : > { %v1441_v26 = vpop.f32.mrb[6].mxu0 }
 0x6c7   : > { %v1442_v27 = vadd.f32 %v6168_v21, %v1441_v26  ;;  %v1443_v29 = vpop.f32.mrb[7].mxu0 }
 0x6c8   : > { %v1701_v29 = vld [vmem:[%s9804_s3 + $0x10] sm:$0xff] }
 0x6c9   : > { %v1452_v30 = vsel %vm924_vm7, %v1442_v27, 0.0 }
 0x6ca   : > { %1453 = vadd.xlane.f32.xlu1 %v1452_v30  ;;  %v1702_v30 = vld [vmem:[%s9804_s3 + $0x18] sm:$0xff] }
 0x74f   : > { %v1451_v28 = vpop.xlane.xlu0 %1450 }
 0x750   : > { %v1455_v31 = vmul.f32 0.03125, %v1451_v28 }
 0x752   : > { %v1457_v32 = vsub.f32 %v1437_v23, %v1455_v31  ;;  %v1785_v31 = vld [vmem:[%s9705_s12] sm:$0xff] }
 0x754   : > { %v1459_v33 = vmul.f32 %v1457_v32, %v1457_v32 }
 0x756   : > { %v1461_v34 = vsel %vm924_vm7, %v1459_v33, 0.0 }
 0x757   : > { %1462 = vadd.xlane.f32.xlu0 %v1461_v34  ;;  %v1454_v35 = vpop.xlane.xlu1 %1453  ;;  %v1787_v34 = vld [vmem:[%s9705_s12 + $0x10] sm:$0xff] }
 0x758   : > { %v1456_v36 = vmul.f32 0.03125, %v1454_v35  ;;  %v1788_v35 = vld [vmem:[%s9705_s12 + $0x18] sm:$0xff] }
 0x75a   : > { %v1458_v37 = vsub.f32 %v1442_v27, %v1456_v36  ;;  %v7042_v36 = vpack.c.bf16 %v1788_v35, %v1787_v34 }
 0x75c   : > { %v1460_v38 = vmul.f32 %v1458_v37, %v1458_v37 }
 0x75e   : > { %v1464_v39 = vsel %vm924_vm7, %v1460_v38, 0.0  ;;  %v1594_v38 = vld [vmem:[%s9709_s16 + $0x8] sm:$0x1] }
 0x75f   : > { %1465 = vadd.xlane.f32.xlu0 %v1464_v39 }
 0x7e4   : > { %v1463_v46 = vpop.xlane.xlu0 %1462 }
 0x7e5   : > { %v1467_v47 = vmul.f32 0.03125, %v1463_v46  ;;  %v7633_v46 = vmov 0  }
 0x7e6   : > { %7415 = vset.pattern.permute.xlu0 %v7633_v46 }
 0x7e7   : > { %v1469_v48 = vadd.f32 0.0001, %v1467_v47  ;;  %v6179_v47 = vld [vmem:[%s9810_s5] ss:$0 sm:$0xff] }
 0x7e9   : > { %7495 = vrsqrt.f32 %v1469_v48 }
 0x7ec   : > { %v1466_v49 = vpop.xlane.xlu0 %1465 }
 0x7ed   : > { %v1468_v50 = vmul.f32 0.03125, %v1466_v49 }
 0x7ef   : > { %v1470_v51 = vadd.f32 0.0001, %v1468_v50 }
 0x7f1   : > { %7497 = vrsqrt.f32 %v1470_v51 }
 0x7f3   : > { %v7496_v52 = vpop.eup %7495 }
 0x7f4   : > { %v1473_v54 = vmul.f32 %v7496_v52, %v1457_v32  ;;  %v1786_v32 = vld [vmem:[%s9705_s12 + $0x8] sm:$0xff] }
 0x7f5   : > { %v7038_v33 = vpack.c.bf16 %v1786_v32, %v1785_v31 }
 0x7f6   : > { %v1481_v56 = vmul.f32 %v6173_v53, %v1473_v54  ;;  %v6182_v54 = vld [vmem:[%s9704_s11] ss:$0 sm:$0xff] }
 0x7f8   : > { %v1489_v57 = vadd.f32 %v6174_v55, %v1481_v56 }
 0x7fa   : > { %v1491_v58 = vmax.f32 %v1489_v57, 0.0 }
 0x7fb   : > { %v7498_v59 = vpop.eup %7497 }
 0x7fc   : > { %v1474_v60 = vmul.f32 %v7498_v59, %v1458_v37  ;;  %6595 = vmatprep.mubr.msk.f32.mxu1 %vm924_vm7, %v1491_v58  ;;  %v1593_v37 = vld [vmem:[%s9709_s16] sm:$0xff] }
 0x7fd   : > { %v8303_v39 = vpack.c.bf16 %v1594_v38, %v1593_v37 }
 0x7fe   : > { %v1482_v61 = vmul.f32 %v6173_v53, %v1474_v60  ;;  %v6185_v60 = vld [vmem:[%s9706_s13] ss:$0 sm:$0xff] }
 0x800   : > { %v1490_v62 = vadd.f32 %v6174_v55, %v1482_v61 }
 0x802   : > { %v1492_v63 = vmax.f32 %v1490_v62, 0.0 }
 0x804   : > { %6596 = vmatmul.mubr.msk.f32.vlgmr.msra.gmra.mrb[4].mxu1 %vm924_vm7, %v1492_v63 }
 0x805   : > { %7025 = vmatpush3.bf16.msra.mxu1 %v7022_v5 }
 0x806   : > { %7027 = vmatprep.subr.bf16.mxu1 %v7026_v9 }
 0x809   : > { %7029 = vmatpush3.bf16.msra.mxu1 %v7026_v9  ;;  %v9764_v9 = vmov 6  }
 0x80a   : > { %7031 = vmatprep.subr.bf16.mxu1 %v7030_v18 }
 0x8d7   : > { %v6597_v19 = vpop.f32.mrb[4].mxu1 }
 0x8d8   : > { %v1579_v21 = vadd.f32 %v6597_v19, %v7867_v14  ;;  %v1569_v22 = vpop.f32.mrb[5].mxu1  ;;  %v7638_v19 = vmov 4  }
 0x8d9   : > { %v1578_v23 = vadd.f32 %v1569_v22, %v7865_v13  ;;  %v7034_v13 = vpack.c.bf16 %v1702_v30, %v1701_v29  ;;  %v7640_v22 = vmov 7   ;;  %v8381_v30 = vand.u32 127, %v771_v0 }
 0x8da   : > { %v1588_v24 = vadd.f32 %v6177_v20, %v1579_v21 }
 0x8db   : > { %v1587_v25 = vadd.f32 %v6177_v20, %v1578_v23  ;;  %v7639_v20 = vmov 8   ;;  %v8389_v32 = vsub.s32 %v8381_v30, %v7840_v3 }
 0x8dc   : > { %v1590_v26 = vmul.f32 %v7877_v17, %v1588_v24 }
 0x8dd   : > { %v1589_v27 = vmul.f32 %v7874_v16, %v1587_v25  ;;  %vm790_vm0 = vcmp.eq.s32.totalorder %v8389_v32, 4294967292  ;;  %vm796_vm1 = vcmp.eq.s32.totalorder %v8389_v32, 4294967293  ;;  %vm802_vm2 = vcmp.eq.s32.totalorder %v8389_v32, 4294967294 }
 0x8de   : > { %v8273_v14 = vmul.f32 %v7877_v17, %v1590_v26  ;;  %v8398_v0 = vsel %vm790_vm0, 1.0, %v7627_v15  ;;  %vm808_vm6 = vcmp.eq.s32.totalorder %v8389_v32, 4294967295  ;;  %v8410_v38 = vsel %vm802_vm2, 1.0, %v7627_v15 }
 0x8df   : > { %v8270_v28 = vmul.f32 %v7874_v16, %v1589_v27  ;;  %vm814_vm0 = vcmp.eq.s32.totalorder %v8389_v32, 0 }
 0x8e1   : > { %6606 = vmatprep.mubr.msk.f32.mxu1 %vm924_vm7, %v8270_v28 }
 0x8e2   : > { %6607 = vmatmul.mubr.msk.f32.vlgmr.msra.gmra.mrb[6].mxu1 %vm924_vm7, %v8273_v14 }
 0x8e3   : > { %7033 = vmatpush3.bf16.msra.mxu1 %v7030_v18  ;;  %6617 = vmatprep.mubr.msk.f32.mxu1 %vm924_vm7, %v8270_v28 }
 0x8e4   : > { %7035 = vmatprep.subr.bf16.mxu1 %v7034_v13 }
 0x8e7   : > { %7037 = vmatpush3.bf16.msra.mxu1 %v7034_v13  ;;  %v8385_v13 = vsub.s32 %v8381_v30, %v7851_v8  ;;  %v8404_v8 = vsel %vm796_vm1, 1.0, %v7627_v15 }
 0x8e8   : > { %7039 = vmatprep.subr.bf16.mxu1 %v7038_v33 }
 0x8e9   : > { %vm791_vm15 = vcmp.eq.s32.totalorder %v8385_v13, 4294967292  ;;  %vm797_vm4 = vcmp.eq.s32.totalorder %v8385_v13, 4294967293  ;;  %vm803_vm13 = vcmp.eq.s32.totalorder %v8385_v13, 4294967294  ;;  %vm815_vm1 = vcmp.eq.s32.totalorder %v8385_v13, 0 }
 0x8ea   : > { %6618 = vmatmul.mubr.msk.f32.vlgmr.msra.gmra.mrb[8].mxu1 %vm924_vm7, %v8273_v14  ;;  %v8394_v34 = vsel %vm791_vm15, 1.0, %v7627_v15  ;;  %v8413_v41 = vsel %vm797_vm4, 1.0, %v7627_v15  ;;  %vm809_vm15 = vcmp.eq.s32.totalorder %v8385_v13, 4294967295  ;;  %vm821_vm2 = vcmp.eq.s32.totalorder %v8385_v13, 1 }
 0x8eb   : > { %7041 = vmatpush3.bf16.msra.mxu1 %v7038_v33  ;;  %6628 = vmatprep.mubr.msk.f32.mxu1 %vm924_vm7, %v8270_v28  ;;  %vm820_vm4 = vcmp.eq.s32.totalorder %v8389_v32, 1 }
 0x8ec   : > { %7043 = vmatprep.subr.bf16.mxu1 %v7042_v36 }
 0x8ef   : > { %7045 = vmatpush3.bf16.msra.mxu1 %v7042_v36 }
 0x8f0   : > { %7048 = vmatprep.subr.msk.bf16.mxu1 %vm8307_vm11, %v8303_v39 }
 0x8f2   : > { %6629 = vmatmul.mubr.msk.f32.vlgmr.msra.gmra.mrb[10].mxu1 %vm924_vm7, %v8273_v14 }
 0x8f8   : > { %7051 = vmatpush3.bf16.xpose.msk.msra.mxu1 %vm8307_vm11, %v8303_v39 }
 0x8f9   : > { %7060 = vmatprep.subr.msk.bf16.mxu1 %vm8328_vm14, %v8325_v43 }
 0x9b5   : > { %v6608_v48 = vpop.f32.mrb[6].mxu1 }
 0x9b6   : > { %v1694_v49 = vadd.f32 %v6608_v48, %v6179_v47  ;;  %v1688_v50 = vpop.f32.mrb[7].mxu1  ;;  %v8418_v48 = vsel %vm808_vm6, 1.0, %v7627_v15  ;;  %vm826_vm6 = vcmp.eq.s32.totalorder %v8389_v32, 2 }
 0x9b7   : > { %v1689_v51 = vadd.f32 %v6179_v47, %v1688_v50 }
 0x9b8   : > { %v1698_v53 = vmul.f32 0.25, %v1694_v49  ;;  %v8421_v49 = vsel %vm803_vm13, 1.0, %v7627_v15  ;;  %vm827_vm13 = vcmp.eq.s32.totalorder %v8385_v13, 2 }
 0x9b9   : > { %v1697_v52 = vmul.f32 0.25, %v1689_v51 }
 0x9bb   : > { %6635 = vmatprep.mubr.msk.f32.mxu1 %vm1871_vm10, %v1697_v52  ;;  %6642 = vmatprep.mubr.msk.f32.mxu0 %vm1871_vm10, %v1697_v52 }
 0x9bc   : > { %6636 = vmatmul.mubr.msk.f32.vlgmr.msra.gmra.mrb[12].mxu1 %vm1871_vm10, %v1698_v53 }
 0x9bd   : > { %v6619_v55 = vpop.f32.mrb[8].mxu1  ;;  %7063 = vmatpush3.bf16.msk.msra.mxu1 %vm8328_vm14, %v8325_v43 }
 0x9be   : > { %v1782_v56 = vadd.f32 %v6619_v55, %v6182_v54  ;;  %v1776_v57 = vpop.f32.mrb[9].mxu1  ;;  %v8428_v55 = vsel %vm809_vm15, 1.0, %v7627_v15  ;;  %vm783_vm15 = vcmp.lt.s32.totalorder %v8381_v30, %v7863_v12 }
 0x9bf   : > { %v1777_v58 = vadd.f32 %v6182_v54, %v1776_v57 }
 0x9c1   : > { %v7052_v59 = vpack.c.bf16 %v1782_v56, %v1777_v58 }
 0x9c3   : > { %7054 = vmatprep.subr.msk.bf16.mxu0 %vm8307_vm11, %v7052_v59 }
 0x9c4   : > { %7057 = vmatpush3.bf16.xpose.msk.msra.mxu0 %vm8307_vm11, %v7052_v59 }
 0x9c5   : > { %v6630_v61 = vpop.f32.mrb[10].mxu1 }
 0x9c6   : > { %v1868_v62 = vadd.f32 %v6630_v61, %v6185_v60  ;;  %v1862_v63 = vpop.f32.mrb[11].mxu1  ;;  %v8438_v61 = vsel %vm815_vm1, 1.0, %v7627_v15  ;;  %vm833_vm1 = vcmp.eq.s32.totalorder %v8385_v13, 3 }
 0x9c7   : > { %v1863_v1 = vadd.f32 %v6185_v60, %v1862_v63  ;;  %v8434_v60 = vsel %vm814_vm0, 1.0, %v7627_v15  ;;  %vm832_vm0 = vcmp.eq.s32.totalorder %v8389_v32, 3  ;;  %v8470_v30 = vsel %vm833_vm1, 1.0, %v7627_v15 }
 0x9c8   : > { %v8467_v12 = vsel %vm832_vm0, 1.0, %v7627_v15  ;;  %vm2249_vm0 = vcmask 15360   ;;  %vm2252_vm1 = vcmask 23552  }
 0x9c9   : > { %v8356_v2 = vpack.c.bf16 %v1868_v62, %v1863_v1 }
 0x9cb   : > { %6643 = vmatmul.mubr.msk.f32.vlgmr.msra.gmra.mrb[8].mxu0 %vm1871_vm10, %v1698_v53  ;;  %7065 = vmatprep.subr.bf16.mxu1 %v8356_v2 }
 0xa8f   : > { %v6637_v5 = vpop.f32.mrb[12].mxu1 }
 0xa90   : > { %2057 = vperm.xlu1 %7416, %v6637_v5   ;;  %1966 = vperm.xlu0 %7415, %v6637_v5   ;;  %v1950_v6 = vpop.f32.mrb[13].mxu1 }
 0xa94   : > { %7417 = vset.pattern.permute.xlu1 %v7634_v7  ;;  %7421 = vset.pattern.permute.xlu0 %v9764_v9 }
 0xa95   : > { %2069 = vperm.xlu1 %7417, %v6637_v5   ;;  %2117 = vperm.xlu0 %7421, %v6637_v5  }
 0xa99   : > { %7418 = vset.pattern.permute.xlu1 %v7636_v10  ;;  %7428 = vset.pattern.permute.xlu0 %v9763_v11 }
 0xa9a   : > { %2081 = vperm.xlu1 %7418, %v6637_v5   ;;  %2101 = vperm.xlu0 %7428, %v1950_v6  }
 0xa9e   : > { %v6644_v18 = vpop.f32.mrb[8].mxu0  ;;  %7419 = vset.pattern.permute.xlu1 %v7638_v19  ;;  %7431 = vset.pattern.permute.xlu0 %v7639_v20 }
 0xa9f   : > { %v2043_v21 = vpop.f32.mrb[9].mxu0  ;;  %2093 = vperm.xlu1 %7419, %v6637_v5   ;;  %2137 = vperm.xlu0 %7431, %v1950_v6  }
 0xaa3   : > { %7420 = vset.pattern.permute.xlu1 %v9763_v11  ;;  %7438 = vset.pattern.permute.xlu0 %v9763_v11 }
 0xaa4   : > { %2105 = vperm.xlu1 %7420, %v6637_v5  }
 0xaa8   : > { %7422 = vset.pattern.permute.xlu1 %v7640_v22 }
 0xaa9   : > { %2129 = vperm.xlu1 %7422, %v6637_v5  }
 0xaad   : > { %7423 = vset.pattern.permute.xlu1 %v7633_v46 }
 0xaae   : > { %1961 = vperm.xlu1 %7423, %v1950_v6  }
 0xab2   : > { %7424 = vset.pattern.permute.xlu1 %v7632_v45 }
 0xab3   : > { %2053 = vperm.xlu1 %7424, %v1950_v6  }
 0xab7   : > { %7425 = vset.pattern.permute.xlu1 %v7634_v7 }
 0xab8   : > { %2065 = vperm.xlu1 %7425, %v1950_v6  }
 0xabc   : > { %7426 = vset.pattern.permute.xlu1 %v7636_v10 }
 0xabd   : > { %2077 = vperm.xlu1 %7426, %v1950_v6  }
 0xac1   : > { %7427 = vset.pattern.permute.xlu1 %v7638_v19 }
 0xac2   : > { %2089 = vperm.xlu1 %7427, %v1950_v6  }
 0xac6   : > { %7429 = vset.pattern.permute.xlu1 %v9764_v9 }
 0xac7   : > { %2113 = vperm.xlu1 %7429, %v1950_v6  }
 0xacb   : > { %7430 = vset.pattern.permute.xlu1 %v7640_v22 }
 0xacc   : > { %2125 = vperm.xlu1 %7430, %v1950_v6  }
 0xad0   : > { %7432 = vset.pattern.permute.xlu1 %v7639_v20 }
 0xad1   : > { %2141 = vperm.xlu1 %7432, %v6637_v5   ;;  %v8442_v5 = vsel %vm821_vm2, 1.0, %v7627_v15  ;;  %vm838_vm2 = vcmp.eq.s32.totalorder %v8389_v32, 4 }
 0xad5   : > { %7433 = vset.pattern.permute.xlu1 %v7633_v46 }
 0xb0f   : > { %v2058_v23 = vpop.permute.xlu1 %2057  ;;  %v1967_v35 = vpop.permute.xlu0 %1966 }
 0xb10   : > { %v1970_v3 = vmul.f32 %v8394_v34, %v1967_v35  ;;  %v2061_v53 = vmul.f32 %v8413_v41, %v2058_v23  ;;  %v8447_v23 = vsel %vm820_vm4, 1.0, %v7627_v15  ;;  %vm839_vm4 = vcmp.eq.s32.totalorder %v8385_v13, 4 }
 0xb12   : > { %v2049_v47 = vadd.f32 %v6644_v18, %v1970_v3  ;;  %v8453_v3 = vsel %vm826_vm6, 1.0, %v7627_v15 }
 0xb14   : > { %v2070_v24 = vpop.permute.xlu1 %2069  ;;  %v2118_v54 = vpop.permute.xlu0 %2117  ;;  %v2063_v58 = vadd.f32 %v2061_v53, %v2049_v47  ;;  %v8474_v53 = vsel %vm838_vm2, 1.0, %v7627_v15  ;;  %vm9761_vm2 = vcmask 31744  }
 0xb15   : > { %v2073_v59 = vmul.f32 %v8421_v49, %v2070_v24 }
 0xb19   : > { %v2082_v25 = vpop.permute.xlu1 %2081  ;;  %v2102_v24 = vpop.permute.xlu0 %2101 }
 0xb1a   : > { %v2085_v63 = vmul.f32 %v8428_v55, %v2082_v25 }
 0xb1e   : > { %v2094_v26 = vpop.permute.xlu1 %2093 }
 0xb23   : > { %v2106_v27 = vpop.permute.xlu1 %2105 }
 0xb24   : > { %v2109_v35 = vmul.f32 %v8442_v5, %v2106_v27 }
 0xb28   : > { %v8378_v29 = vpop.permute.xlu1 %2129 }
 0xb2d   : > { %v1962_v31 = vpop.permute.xlu1 %1961 }
 0xb2e   : > { %v1969_v37 = vmul.f32 %v8398_v0, %v1962_v31  ;;  %v2097_v31 = vmul.f32 %v8438_v61, %v2094_v26 }
 0xb30   : > { %v2044_v50 = vadd.f32 %v2043_v21, %v1969_v37  ;;  %v2075_v21 = vadd.f32 %v2073_v59, %v2063_v58 }
 0xb32   : > { %v2054_v33 = vpop.permute.xlu1 %2053  ;;  %v2087_v25 = vadd.f32 %v2085_v63, %v2075_v21  ;;  %v2133_v63 = vmul.f32 %v8470_v30, %v8378_v29 }
 0xb33   : > { %v2060_v42 = vmul.f32 %v8404_v8, %v2054_v33 }
 0xb34   : > { %v2099_v26 = vadd.f32 %v2097_v31, %v2087_v25 }
 0xb35   : > { %v2062_v56 = vadd.f32 %v2060_v42, %v2044_v50  ;;  %v8460_v42 = vsel %vm827_vm13, 1.0, %v7627_v15  ;;  %v6095_v50 = vsel %vm783_vm15, 1.0, %v7627_v15  ;;  %vm2246_vm15 = vcmask 7168  }
 0xb36   : > { %v8478_v32 = vmul.f32 %v6095_v50, %v7874_v16 }
 0xb37   : > { %v2066_v36 = vpop.permute.xlu1 %2065 }
 0xb38   : > { %v2072_v51 = vmul.f32 %v8410_v38, %v2066_v36  ;;  %v2108_v36 = vmul.f32 %v8447_v23, %v2102_v24  ;;  %vm2148_vm6 = vcmp.eq.f32.partialorder %v8478_v32, 0.0 }
 0xb3a   : > { %v2074_v62 = vadd.f32 %v2072_v51, %v2062_v56  ;;  %v2111_v51 = vadd.f32 %v2109_v35, %v2099_v26  ;;  %v2138_v56 = vpop.permute.xlu0 %2137 }
 0xb3c   : > { %v2078_v52 = vpop.permute.xlu1 %2077 }
 0xb3d   : > { %v2084_v57 = vmul.f32 %v8418_v48, %v2078_v52  ;;  %v2121_v52 = vmul.f32 %v8460_v42, %v2118_v54 }
 0xb3f   : > { %v2086_v6 = vadd.f32 %v2084_v57, %v2074_v62  ;;  %v2123_v62 = vadd.f32 %v2121_v52, %v2111_v51 }
 0xb41   : > { %v2090_v1 = vpop.permute.xlu1 %2089  ;;  %v2135_v24 = vadd.f32 %v2133_v63, %v2123_v62 }
 0xb42   : > { %v2096_v18 = vmul.f32 %v8434_v60, %v2090_v1  ;;  %v2144_v1 = vmul.f32 %v8474_v53, %v2138_v56 }
 0xb44   : > { %v2098_v33 = vadd.f32 %v2096_v18, %v2086_v6  ;;  %v8485_v6 = vsel %vm839_vm4, 1.0, %v7627_v15  ;;  %v8488_v18 = vmul.f32 %v6095_v50, %v7877_v17  ;;  %vm9759_vm4 = vcmask 39936  }
 0xb46   : > { %v2114_v37 = vpop.permute.xlu1 %2113  ;;  %v2110_v27 = vadd.f32 %v2108_v36, %v2098_v33  ;;  %vm2149_vm13 = vcmp.eq.f32.partialorder %v8488_v18, 0.0 }
 0xb47   : > { %v2120_v47 = vmul.f32 %v8453_v3, %v2114_v37 }
 0xb49   : > { %v2122_v58 = vadd.f32 %v2120_v47, %v2110_v27 }
 0xb4b   : > { %v2126_v57 = vpop.permute.xlu1 %2125 }
 0xb4c   : > { %v2132_v59 = vmul.f32 %v8467_v12, %v2126_v57 }
 0xb4e   : > { %v2134_v54 = vadd.f32 %v2132_v59, %v2122_v58 }
 0xb50   : > { %v2142_v13 = vpop.permute.xlu1 %2141  ;;  %v2146_v21 = vadd.f32 %v2144_v1, %v2134_v54 }
 0xb51   : > { %v2145_v31 = vmul.f32 %v8485_v6, %v2142_v13 }
 0xb52   : > { %v2150_v33 = vsel %vm2148_vm6, -10000.0, %v2146_v21 }
 0xb53   : > { %v2152_v29 = vsel %vm1871_vm10, %v2150_v33, -inf  ;;  %v2147_v25 = vadd.f32 %v2145_v31, %v2135_v24 }
 0xb54   : > { %2153 = vmax.xlane.f32.xlu1 %v2152_v29 }
 0xb55   : > { %v2151_v15 = vsel %vm2149_vm13, -10000.0, %v2147_v25 }
 0xb56   : > { %v2155_v35 = vsel %vm1871_vm10, %v2151_v15, -inf }
 0xb57   : > { %2156 = vmax.xlane.f32.xlu0 %v2155_v35 }
 0xbe1   : > { %v2154_v36 = vpop.xlane.xlu1 %2153 }
 0xbe2   : > { %v2158_v37 = vsub.f32 %v2150_v33, %v2154_v36 }
 0xbe4   : > { %v2160_v26 = vmul.f32 1.442695, %v2158_v37  ;;  %v2157_v27 = vpop.xlane.xlu0 %2156 }
 0xbe5   : > { %v2159_v47 = vsub.f32 %v2151_v15, %v2157_v27 }
 0xbe6   : > { %7499 = vpow2.f32 %v2160_v26 }
 0xbe7   : > { %v2162_v50 = vmul.f32 1.442695, %v2159_v47 }
 0xbe9   : > { %7501 = vpow2.f32 %v2162_v50 }
 0xbf0   : > { %v7500_v51 = vpop.eup %7499 }
 0xbf1   : > { %v2164_v52 = vsel %vm1871_vm10, %v7500_v51, 0.0 }
 0xbf2   : > { %2165 = vadd.xlane.f32.xlu0 %v2164_v52 }
 0xbf3   : > { %v7502_v56 = vpop.eup %7501 }
 0xbf4   : > { %v2167_v57 = vsel %vm1871_vm10, %v7502_v56, 0.0 }
 0xbf5   : > { %2168 = vadd.xlane.f32.xlu1 %v2167_v57 }
 0xc7f   : > { %v2166_v58 = vpop.xlane.xlu0 %2165 }
 0xc80   : > { %7503 = vrcp.f32 %v2166_v58 }
 0xc82   : > { %v2169_v59 = vpop.xlane.xlu1 %2168 }
 0xc83   : > { %7505 = vrcp.f32 %v2169_v59 }
 0xc8a   : > { %v7504_v62 = vpop.eup %7503 }
 0xc8b   : > { %v8501_v1 = vmul.f32 %v7504_v62, %v7500_v51 }
 0xc8d   : > { %v7506_v63 = vpop.eup %7505  ;;  %v2174_v29 = vmul.f32 %v8398_v0, %v8501_v1  ;;  %v2190_v36 = vmul.f32 %v8410_v38, %v8501_v1  ;;  %v2198_v47 = vmul.f32 %v8418_v48, %v8501_v1  ;;  %v2214_v62 = vmul.f32 %v8447_v23, %v8501_v1 }
 0xc8e   : > { %v8503_v54 = vmul.f32 %v7506_v63, %v7502_v56  ;;  %v2206_v56 = vmul.f32 %v8434_v60, %v8501_v1 }
 0xc8f   : > { %v2176_v15 = vsel %vm1871_vm10, %v2174_v29, 0.0  ;;  %v2192_v26 = vsel %vm1871_vm10, %v2190_v36, 0.0  ;;  %v2200_v51 = vsel %vm1871_vm10, %v2198_v47, 0.0  ;;  %v2437_v47 = vld [vmem:[%s9707_s14] sm:$0xff] }
 0xc90   : > { %v2183_v13 = vmul.f32 %v8413_v41, %v8503_v54  ;;  %v2175_v21 = vmul.f32 %v8394_v34, %v8503_v54  ;;  %v2191_v33 = vmul.f32 %v8421_v49, %v8503_v54  ;;  %v2199_v35 = vmul.f32 %v8428_v55, %v8503_v54 }
 0xc91   : > { %v2207_v27 = vmul.f32 %v8438_v61, %v8503_v54  ;;  %v2215_v52 = vmul.f32 %v8442_v5, %v8503_v54  ;;  %v2208_v58 = vsel %vm1871_vm10, %v2206_v56, 0.0  ;;  %v2223_v59 = vmul.f32 %v8460_v42, %v8503_v54 }
 0xc92   : > { %v2187_v24 = vsel %vm1871_vm10, %v2183_v13, 0.0  ;;  %v2179_v31 = vsel %vm1871_vm10, %v2175_v21, 0.0  ;;  %v2195_v25 = vsel %vm1871_vm10, %v2191_v33, 0.0  ;;  %v2203_v37 = vsel %vm1871_vm10, %v2199_v35, 0.0 }
 0xc93   : > { %2188 = vadd.xlane.f32.xlu1 %v2187_v24  ;;  %2180 = vadd.xlane.f32.xlu0 %v2179_v31  ;;  %v2211_v50 = vsel %vm1871_vm10, %v2207_v27, 0.0  ;;  %v2219_v57 = vsel %vm1871_vm10, %v2215_v52, 0.0  ;;  %v2227_v63 = vsel %vm1871_vm10, %v2223_v59, 0.0  ;;  %v2216_v13 = vsel %vm1871_vm10, %v2214_v62, 0.0 }
 0xc94   : > { %v2182_v21 = vmul.f32 %v8404_v8, %v8501_v1  ;;  %v2222_v24 = vmul.f32 %v8453_v3, %v8501_v1  ;;  %v2231_v29 = vmul.f32 %v8470_v30, %v8503_v54  ;;  %v2239_v36 = vmul.f32 %v8485_v6, %v8503_v54 }
 0xc96   : > { %v2184_v31 = vsel %vm1871_vm10, %v2182_v21, 0.0  ;;  %v2224_v33 = vsel %vm1871_vm10, %v2222_v24, 0.0 }
 0xc97   : > { %2196 = vadd.xlane.f32.xlu1 %v2195_v25  ;;  %2177 = vadd.xlane.f32.xlu0 %v2176_v15  ;;  %v2230_v25 = vmul.f32 %v8467_v12, %v8501_v1  ;;  %v2235_v15 = vsel %vm1871_vm10, %v2231_v29, 0.0 }
 0xc99   : > { %v2232_v35 = vsel %vm1871_vm10, %v2230_v25, 0.0 }
 0xc9b   : > { %2204 = vadd.xlane.f32.xlu1 %v2203_v37  ;;  %2193 = vadd.xlane.f32.xlu0 %v2192_v26  ;;  %v2238_v37 = vmul.f32 %v8474_v53, %v8501_v1  ;;  %v2243_v26 = vsel %vm1871_vm10, %v2239_v36, 0.0 }
 0xc9d   : > { %v2240_v27 = vsel %vm1871_vm10, %v2238_v37, 0.0 }
 0xc9f   : > { %2212 = vadd.xlane.f32.xlu1 %v2211_v50  ;;  %2201 = vadd.xlane.f32.xlu0 %v2200_v51  ;;  %v2438_v50 = vld [vmem:[%s9707_s14 + $0x8] sm:$0xff] }
 0xca0   : > { %v7068_v51 = vpack.c.bf16 %v2438_v50, %v2437_v47 }
 0xca2   : > { %7069 = vmatprep.subr.bf16.mxu0 %v7068_v51 }
 0xca3   : > { %2220 = vadd.xlane.f32.xlu1 %v2219_v57  ;;  %2209 = vadd.xlane.f32.xlu0 %v2208_v58 }
 0xca4   : > { %7071 = vmatpush3.bf16.msra.mxu0 %v7068_v51 }
 0xca5   : > { %7110 = vmatprep.subr.msk.bf16.mxu0 %vm8328_vm14, %v8325_v43 }
 0xca7   : > { %2228 = vadd.xlane.f32.xlu1 %v2227_v63  ;;  %2217 = vadd.xlane.f32.xlu0 %v2216_v13 }
 0xcab   : > { %2185 = vadd.xlane.f32.xlu1 %v2184_v31  ;;  %2225 = vadd.xlane.f32.xlu0 %v2224_v33 }
 0xcaf   : > { %2236 = vadd.xlane.f32.xlu1 %v2235_v15  ;;  %2233 = vadd.xlane.f32.xlu0 %v2232_v35 }
 0xcb3   : > { %2244 = vadd.xlane.f32.xlu1 %v2243_v26  ;;  %2241 = vadd.xlane.f32.xlu0 %v2240_v27 }
 0xd20   : > { %v2189_v52 = vpop.xlane.xlu1 %2188  ;;  %v2181_v56 = vpop.xlane.xlu0 %2180 }
 0xd21   : > { %v2248_v35 = vsel %vm2246_vm15, %v2181_v56, %v2189_v52 }
 0xd24   : > { %v2197_v57 = vpop.xlane.xlu1 %2196  ;;  %v2178_v58 = vpop.xlane.xlu0 %2177 }
 0xd25   : > { %v2251_v37 = vsel %vm2249_vm0, %v2248_v35, %v2197_v57  ;;  %v6203_v57 = vld [vmem:[%s9803_s19 + $0x20] sm:$0xff] }
 0xd26   : > { %v6211_v35 = vld [vmem:[%s9804_s3 + $0x20] sm:$0xff] }
 0xd28   : > { %v2205_v59 = vpop.xlane.xlu1 %2204  ;;  %v2194_v62 = vpop.xlane.xlu0 %2193 }
 0xd29   : > { %v2254_v27 = vsel %vm2252_vm1, %v2251_v37, %v2205_v59  ;;  %v6204_v59 = vld [vmem:[%s9803_s19 + $0x28] sm:$0xff]  ;;  %v6214_v37 = vld [vmem:[%s9804_s3 + $0x38] sm:$0xff] }
 0xd2c   : > { %v2213_v63 = vpop.xlane.xlu1 %2212  ;;  %v2202_v13 = vpop.xlane.xlu0 %2201 }
 0xd2d   : > { %v2257_v4 = vsel %vm9761_vm2, %v2254_v27, %v2213_v63  ;;  %v6220_v27 = vld [vmem:[%s9705_s12 + $0x28] sm:$0xff] }
 0xd30   : > { %v2221_v21 = vpop.xlane.xlu1 %2220  ;;  %v2210_v24 = vpop.xlane.xlu0 %2209 }
 0xd31   : > { %v2260_v52 = vsel %vm9759_vm4, %v2257_v4, %v2221_v21 }
 0xd34   : > { %v2229_v31 = vpop.xlane.xlu1 %2228  ;;  %v2218_v33 = vpop.xlane.xlu0 %2217 }
 0xd38   : > { %v2186_v29 = vpop.xlane.xlu1 %2185  ;;  %v2226_v25 = vpop.xlane.xlu0 %2225 }
 0xd39   : > { %v2247_v15 = vsel %vm2246_vm15, %v2178_v58, %v2186_v29  ;;  %v7072_v29 = vpack.c.bf16 %v6204_v59, %v6203_v57  ;;  %v6208_v57 = vld [vmem:[%s9810_s5 + $0x1] ss:$0 sm:$0xff] }
 0xd3a   : > { %v2250_v36 = vsel %vm2249_vm0, %v2247_v15, %v2194_v62  ;;  %v2263_v62 = vsel %vm9758_vm9, %v2260_v52, %v2229_v31  ;;  %v6205_v31 = vld [vmem:[%s9803_s19 + $0x30] sm:$0xff] }
 0xd3b   : > { %v2253_v26 = vsel %vm2252_vm1, %v2250_v36, %v2202_v13  ;;  %v6213_v36 = vld [vmem:[%s9804_s3 + $0x30] sm:$0xff] }
 0xd3c   : > { %v2256_v47 = vsel %vm9761_vm2, %v2253_v26, %v2210_v24  ;;  %v2237_v50 = vpop.xlane.xlu1 %2236  ;;  %v2234_v51 = vpop.xlane.xlu0 %2233  ;;  %v7084_v26 = vpack.c.bf16 %v6214_v37, %v6213_v36 }
 0xd3d   : > { %v2259_v58 = vsel %vm9759_vm4, %v2256_v47, %v2218_v33  ;;  %v2266_v13 = vsel %vm9757_vm8, %v2263_v62, %v2237_v50  ;;  %v6221_v50 = vld [vmem:[%s9705_s12 + $0x30] sm:$0xff] }
 0xd3e   : > { %v2262_v56 = vsel %vm9758_vm9, %v2259_v58, %v2226_v25  ;;  %v6206_v25 = vld [vmem:[%s9803_s19 + $0x38] sm:$0xff] }
 0xd3f   : > { %v2265_v63 = vsel %vm9757_vm8, %v2262_v56, %v2234_v51  ;;  %v7076_v15 = vpack.c.bf16 %v6206_v25, %v6205_v31  ;;  %v6222_v51 = vld [vmem:[%s9705_s12 + $0x38] sm:$0xff]  ;;  %v6224_v25 = vld [vmem:[%s9706_s13 + $0x1] ss:$0 sm:$0xff] }
 0xd40   : > { %v2245_v24 = vpop.xlane.xlu1 %2244  ;;  %v2242_v4 = vpop.xlane.xlu0 %2241  ;;  %v7092_v58 = vpack.c.bf16 %v6222_v51, %v6221_v50 }
 0xd41   : > { %v2269_v21 = vsel %vm9756_vm5, %v2266_v13, %v2245_v24  ;;  %v2268_v33 = vsel %vm9756_vm5, %v2265_v63, %v2242_v4  ;;  %v6216_v4 = vld [vmem:[%s9704_s11 + $0x1] ss:$0 sm:$0xff] }
 0xd42   : > { %6649 = vmatprep.mubr.msk.f32.mxu1 %vm9755_vm3, %v2268_v33 }
 0xd43   : > { %6650 = vmatmul.mubr.msk.f32.vlgmr.msra.gmra.mrb[14].mxu1 %vm9755_vm3, %v2269_v21 }
 0xd44   : > { %7067 = vmatpush3.bf16.msra.mxu1 %v8356_v2  ;;  %6656 = vmatprep.mubr.msk.f32.mxu1 %vm1871_vm10, %v8501_v1  ;;  %v6212_v2 = vld [vmem:[%s9804_s3 + $0x28] sm:$0xff] }
 0xd45   : > { %7073 = vmatprep.subr.bf16.mxu1 %v7072_v29  ;;  %v7080_v1 = vpack.c.bf16 %v6212_v2, %v6211_v35 }
 0xd4b   : > { %6657 = vmatmul.mubr.msk.f32.vlgmr.msra.gmra.mrb[14].mxu1 %vm1871_vm10, %v8503_v54  ;;  %v6219_v54 = vld [vmem:[%s9705_s12 + $0x20] sm:$0xff] }
 0xd4c   : > { %7075 = vmatpush3.bf16.msra.mxu1 %v7072_v29  ;;  %6674 = vmatprep.mubr.msk.f32.mxu1 %vm924_vm7, %v8270_v28  ;;  %v7088_v47 = vpack.c.bf16 %v6220_v27, %v6219_v54 }
 0xd4d   : > { %7077 = vmatprep.subr.bf16.mxu1 %v7076_v15 }
 0xd50   : > { %7079 = vmatpush3.bf16.msra.mxu1 %v7076_v15 }
 0xd51   : > { %7081 = vmatprep.subr.bf16.mxu1 %v7080_v1 }
 0xd53   : > { %6675 = vmatmul.mubr.msk.f32.vlgmr.msra.gmra.mrb[16].mxu1 %vm924_vm7, %v8273_v14 }
 0xd54   : > { %7083 = vmatpush3.bf16.msra.mxu1 %v7080_v1  ;;  %6685 = vmatprep.mubr.msk.f32.mxu1 %vm924_vm7, %v8270_v28 }
 0xd55   : > { %7085 = vmatprep.subr.bf16.mxu1 %v7084_v26 }
 0xd58   : > { %7087 = vmatpush3.bf16.msra.mxu1 %v7084_v26 }
 0xd59   : > { %7089 = vmatprep.subr.bf16.mxu1 %v7088_v47 }
 0xd5b   : > { %6686 = vmatmul.mubr.msk.f32.vlgmr.msra.gmra.mrb[18].mxu1 %vm924_vm7, %v8273_v14 }
 0xd5c   : > { %7091 = vmatpush3.bf16.msra.mxu1 %v7088_v47  ;;  %6696 = vmatprep.mubr.msk.f32.mxu1 %vm924_vm7, %v8270_v28 }
 0xd5d   : > { %7093 = vmatprep.subr.bf16.mxu1 %v7092_v58 }
 0xd60   : > { %7095 = vmatpush3.bf16.msra.mxu1 %v7092_v58 }
 0xd61   : > { %7098 = vmatprep.subr.msk.bf16.mxu1 %vm8307_vm11, %v8303_v39 }
 0xd63   : > { %6697 = vmatmul.mubr.msk.f32.vlgmr.msra.gmra.mrb[20].mxu1 %vm924_vm7, %v8273_v14 }
 0xd69   : > { %7101 = vmatpush3.bf16.xpose.msk.msra.mxu1 %vm8307_vm11, %v8303_v39 }
 0xe1e   : > { %v6658_v52 = vpop.f32.mrb[14].mxu1 }
 0xe1f   : > { %v2428_v56 = vpop.f32.mrb[15].mxu1 }
 0xe20   : > { %6663 = vmatprep.mubr.msk.f32.mxu0 %vm1871_vm10, %v2428_v56 }
 0xe21   : > { %6664 = vmatmul.mubr.msk.f32.vlgmr.msra.gmra.mrb[10].mxu0 %vm1871_vm10, %v6658_v52 }
 0xe22   : > { %7113 = vmatpush3.bf16.msk.msra.mxu0 %vm8328_vm14, %v8325_v43 }
 0xe26   : > { %v6676_v59 = vpop.f32.mrb[16].mxu1 }
 0xe27   : > { %v2607_v62 = vadd.f32 %v6676_v59, %v6208_v57  ;;  %v2601_v63 = vpop.f32.mrb[17].mxu1 }
 0xe28   : > { %v2602_v13 = vadd.f32 %v6208_v57, %v2601_v63 }
 0xe29   : > { %v2611_v39 = vmul.f32 0.25, %v2607_v62 }
 0xe2a   : > { %v2610_v24 = vmul.f32 0.25, %v2602_v13 }
 0xe2c   : > { %6703 = vmatprep.mubr.msk.f32.mxu1 %vm1871_vm10, %v2610_v24 }
 0xe2d   : > { %6704 = vmatmul.mubr.msk.f32.vlgmr.msra.gmra.mrb[22].mxu1 %vm1871_vm10, %v2611_v39 }
 0xe2e   : > { %v6687_v21 = vpop.f32.mrb[18].mxu1  ;;  %6710 = vmatprep.mubr.msk.f32.mxu1 %vm1871_vm10, %v2610_v24 }
 0xe2f   : > { %v2697_v43 = vadd.f32 %v6687_v21, %v6216_v4  ;;  %v2691_v33 = vpop.f32.mrb[19].mxu1 }
 0xe30   : > { %v2692_v29 = vadd.f32 %v6216_v4, %v2691_v33 }
 0xe32   : > { %v7102_v31 = vpack.c.bf16 %v2697_v43, %v2692_v29 }
 0xe34   : > { %7104 = vmatprep.subr.msk.bf16.mxu1 %vm8307_vm11, %v7102_v31 }
 0xe35   : > { %7107 = vmatpush3.bf16.xpose.msk.msra.mxu1 %vm8307_vm11, %v7102_v31 }
 0xe36   : > { %v6698_v15 = vpop.f32.mrb[20].mxu1 }
 0xe37   : > { %v2785_v35 = vadd.f32 %v6698_v15, %v6224_v25  ;;  %v2779_v2 = vpop.f32.mrb[21].mxu1 }
 0xe38   : > { %v2780_v1 = vadd.f32 %v6224_v25, %v2779_v2 }
 0xe3a   : > { %v8666_v36 = vpack.c.bf16 %v2785_v35, %v2780_v1 }
 0xe3c   : > { %6711 = vmatmul.mubr.msk.f32.vlgmr.msra.gmra.mrb[24].mxu1 %vm1871_vm10, %v2611_v39  ;;  %7115 = vmatprep.subr.bf16.mxu0 %v8666_v36 }
 0xf00   : > { %v6705_v37 = vpop.f32.mrb[22].mxu1 }
 0xf01   : > { %3015 = vperm.xlu0 %7438, %v6705_v37   ;;  %2876 = vperm.xlu1 %7433, %v6705_v37   ;;  %v2860_v26 = vpop.f32.mrb[23].mxu1 }
 0xf05   : > { %7441 = vset.pattern.permute.xlu0 %v7633_v46  ;;  %7434 = vset.pattern.permute.xlu1 %v7632_v45 }
 0xf06   : > { %2967 = vperm.xlu1 %7434, %v6705_v37   ;;  %2871 = vperm.xlu0 %7441, %v2860_v26  }
 0xf0a   : > { %7435 = vset.pattern.permute.xlu1 %v7634_v7  ;;  %7445 = vset.pattern.permute.xlu0 %v7638_v19 }
 0xf0b   : > { %2979 = vperm.xlu1 %7435, %v6705_v37   ;;  %2999 = vperm.xlu0 %7445, %v2860_v26  }
 0xf0f   : > { %7436 = vset.pattern.permute.xlu1 %v7636_v10  ;;  %7448 = vset.pattern.permute.xlu0 %v7640_v22  ;;  %v6712_v54 = vpop.f32.mrb[24].mxu1 }
 0xf10   : > { %2991 = vperm.xlu1 %7436, %v6705_v37   ;;  %3035 = vperm.xlu0 %7448, %v2860_v26   ;;  %v2953_v27 = vpop.f32.mrb[25].mxu1 }
 0xf14   : > { %7437 = vset.pattern.permute.xlu1 %v7638_v19  ;;  %7450 = vset.pattern.permute.xlu0 %v7639_v20 }
 0xf15   : > { %3003 = vperm.xlu1 %7437, %v6705_v37   ;;  %3051 = vperm.xlu0 %7450, %v6705_v37  }
 0xf19   : > { %7439 = vset.pattern.permute.xlu1 %v9764_v9  ;;  %7451 = vset.pattern.permute.xlu0 %v7633_v46 }
 0xf1a   : > { %3027 = vperm.xlu1 %7439, %v6705_v37  }
 0xf1e   : > { %7440 = vset.pattern.permute.xlu1 %v7640_v22 }
 0xf1f   : > { %3039 = vperm.xlu1 %7440, %v6705_v37  }
 0xf23   : > { %7442 = vset.pattern.permute.xlu1 %v7632_v45 }
 0xf24   : > { %2963 = vperm.xlu1 %7442, %v2860_v26  }
 0xf28   : > { %7443 = vset.pattern.permute.xlu1 %v7634_v7 }
 0xf29   : > { %2975 = vperm.xlu1 %7443, %v2860_v26  }
 0xf2d   : > { %7444 = vset.pattern.permute.xlu1 %v7636_v10 }
 0xf2e   : > { %2987 = vperm.xlu1 %7444, %v2860_v26  }
 0xf32   : > { %7446 = vset.pattern.permute.xlu1 %v9763_v11 }
 0xf33   : > { %3011 = vperm.xlu1 %7446, %v2860_v26  }
 0xf37   : > { %7447 = vset.pattern.permute.xlu1 %v9764_v9 }
 0xf38   : > { %3023 = vperm.xlu1 %7447, %v2860_v26  }
 0xf3c   : > { %7449 = vset.pattern.permute.xlu1 %v7639_v20 }
 0xf3d   : > { %3047 = vperm.xlu1 %7449, %v2860_v26  }
 0xf41   : > { %7452 = vset.pattern.permute.xlu1 %v7632_v45 }
 0xf80   : > { %v2877_v47 = vpop.permute.xlu1 %2876  ;;  %v3016_v51 = vpop.permute.xlu0 %3015 }
 0xf81   : > { %v2880_v52 = vmul.f32 %v8394_v34, %v2877_v47  ;;  %v3019_v25 = vmul.f32 %v8442_v5, %v3016_v51 }
 0xf83   : > { %v2959_v59 = vadd.f32 %v6712_v54, %v2880_v52 }
 0xf85   : > { %v2968_v50 = vpop.permute.xlu1 %2967  ;;  %v2872_v56 = vpop.permute.xlu0 %2871 }
 0xf86   : > { %v2971_v57 = vmul.f32 %v8413_v41, %v2968_v50 }
 0xf88   : > { %v2973_v13 = vadd.f32 %v2971_v57, %v2959_v59  ;;  %v2879_v59 = vmul.f32 %v8398_v0, %v2872_v56 }
 0xf8a   : > { %v2980_v58 = vpop.permute.xlu1 %2979  ;;  %v3000_v39 = vpop.permute.xlu0 %2999 }
 0xf8b   : > { %v2983_v62 = vmul.f32 %v8421_v49, %v2980_v58 }
 0xf8d   : > { %v2985_v4 = vadd.f32 %v2983_v62, %v2973_v13  ;;  %v2954_v13 = vadd.f32 %v2953_v27, %v2879_v59 }
 0xf8f   : > { %v2992_v63 = vpop.permute.xlu1 %2991  ;;  %v3036_v31 = vpop.permute.xlu0 %3035 }
 0xf90   : > { %v2995_v24 = vmul.f32 %v8428_v55, %v2992_v63  ;;  %v3042_v27 = vmul.f32 %v8467_v12, %v3036_v31 }
 0xf92   : > { %v2997_v43 = vadd.f32 %v2995_v24, %v2985_v4 }
 0xf94   : > { %v3004_v21 = vpop.permute.xlu1 %3003  ;;  %v3052_v1 = vpop.permute.xlu0 %3051 }
 0xf95   : > { %v3007_v33 = vmul.f32 %v8438_v61, %v3004_v21  ;;  %v3055_v47 = vmul.f32 %v8485_v6, %v3052_v1 }
 0xf97   : > { %v3009_v29 = vadd.f32 %v3007_v33, %v2997_v43 }
 0xf99   : > { %v3028_v15 = vpop.permute.xlu1 %3027  ;;  %v3021_v35 = vadd.f32 %v3019_v25, %v3009_v29  ;;  %v3006_v25 = vmul.f32 %v8434_v60, %v3000_v39 }
 0xf9a   : > { %v3031_v2 = vmul.f32 %v8460_v42, %v3028_v15 }
 0xf9c   : > { %v3033_v26 = vadd.f32 %v3031_v2, %v3021_v35 }
 0xf9e   : > { %v3040_v37 = vpop.permute.xlu1 %3039 }
 0xf9f   : > { %v3043_v54 = vmul.f32 %v8470_v30, %v3040_v37 }
 0xfa1   : > { %v3045_v50 = vadd.f32 %v3043_v54, %v3033_v26 }
 0xfa3   : > { %v2964_v58 = vpop.permute.xlu1 %2963  ;;  %v3057_v52 = vadd.f32 %v3055_v47, %v3045_v50 }
 0xfa4   : > { %v2970_v62 = vmul.f32 %v8404_v8, %v2964_v58 }
 0xfa5   : > { %v3059_v57 = vsel %vm2149_vm13, -10000.0, %v3057_v52 }
 0xfa6   : > { %v3063_v51 = vsel %vm1871_vm10, %v3059_v57, -inf  ;;  %v2972_v4 = vadd.f32 %v2970_v62, %v2954_v13 }
 0xfa7   : > { %3064 = vmax.xlane.f32.xlu0 %v3063_v51 }
 0xfa8   : > { %v2976_v63 = vpop.permute.xlu1 %2975 }
 0xfa9   : > { %v2982_v24 = vmul.f32 %v8410_v38, %v2976_v63 }
 0xfab   : > { %v2984_v43 = vadd.f32 %v2982_v24, %v2972_v4 }
 0xfad   : > { %v2988_v21 = vpop.permute.xlu1 %2987 }
 0xfae   : > { %v2994_v33 = vmul.f32 %v8418_v48, %v2988_v21 }
 0xfb0   : > { %v2996_v29 = vadd.f32 %v2994_v33, %v2984_v43 }
 0xfb2   : > { %v3012_v15 = vpop.permute.xlu1 %3011  ;;  %v3008_v35 = vadd.f32 %v3006_v25, %v2996_v29 }
 0xfb3   : > { %v3018_v56 = vmul.f32 %v8447_v23, %v3012_v15 }
 0xfb5   : > { %v3020_v1 = vadd.f32 %v3018_v56, %v3008_v35 }
 0xfb7   : > { %v3024_v2 = vpop.permute.xlu1 %3023 }
 0xfb8   : > { %v3030_v37 = vmul.f32 %v8453_v3, %v3024_v2 }
 0xfba   : > { %v3032_v26 = vadd.f32 %v3030_v37, %v3020_v1 }
 0xfbc   : > { %v3048_v54 = vpop.permute.xlu1 %3047  ;;  %v3044_v47 = vadd.f32 %v3042_v27, %v3032_v26 }
 0xfbd   : > { %v3054_v50 = vmul.f32 %v8474_v53, %v3048_v54 }
 0xfbf   : > { %v3056_v58 = vadd.f32 %v3054_v50, %v3044_v47 }
 0xfc1   : > { %v3058_v52 = vsel %vm2148_vm6, -10000.0, %v3056_v58 }
 0xfc2   : > { %v3060_v39 = vsel %vm1871_vm10, %v3058_v52, -inf }
 0xfc3   : > { %3061 = vmax.xlane.f32.xlu1 %v3060_v39 }
0x1034   : > { %v3065_v59 = vpop.xlane.xlu0 %3064 }
0x1035   : > { %v3067_v51 = vsub.f32 %v3059_v57, %v3065_v59 }
0x1037   : > { %v3070_v62 = vmul.f32 1.442695, %v3067_v51 }
0x1039   : > { %7507 = vpow2.f32 %v3070_v62 }
0x1043   : > { %v7508_v63 = vpop.eup %7507 }
0x1044   : > { %v3075_v13 = vsel %vm1871_vm10, %v7508_v63, 0.0 }
0x1045   : > { %3076 = vadd.xlane.f32.xlu0 %v3075_v13 }
0x1050   : > { %v3062_v31 = vpop.xlane.xlu1 %3061 }
0x1051   : > { %v3066_v24 = vsub.f32 %v3058_v52, %v3062_v31 }
0x1053   : > { %v3068_v4 = vmul.f32 1.442695, %v3066_v24 }
0x1055   : > { %7509 = vpow2.f32 %v3068_v4 }
0x105f   : > { %v7510_v21 = vpop.eup %7509 }
0x1060   : > { %v3072_v43 = vsel %vm1871_vm10, %v7510_v21, 0.0 }
0x1061   : > { %3073 = vadd.xlane.f32.xlu1 %v3072_v43 }
0x10d2   : > { %v3077_v33 = vpop.xlane.xlu0 %3076 }
0x10d3   : > { %7511 = vrcp.f32 %v3077_v33 }
0x10dd   : > { %v7512_v29 = vpop.eup %7511 }
0x10de   : > { %v8714_v25 = vmul.f32 %v7512_v29, %v7508_v63 }
0x10e0   : > { %v3091_v57 = vmul.f32 %v8413_v41, %v8714_v25  ;;  %v3083_v15 = vmul.f32 %v8394_v34, %v8714_v25  ;;  %v3099_v2 = vmul.f32 %v8421_v49, %v8714_v25  ;;  %v3107_v37 = vmul.f32 %v8428_v55, %v8714_v25 }
0x10e1   : > { %v3115_v26 = vmul.f32 %v8438_v61, %v8714_v25  ;;  %v3123_v50 = vmul.f32 %v8442_v5, %v8714_v25  ;;  %v3131_v52 = vmul.f32 %v8460_v42, %v8714_v25  ;;  %v3139_v24 = vmul.f32 %v8470_v30, %v8714_v25 }
0x10e2   : > { %v3095_v35 = vsel %vm1871_vm10, %v3091_v57, 0.0  ;;  %v3087_v56 = vsel %vm1871_vm10, %v3083_v15, 0.0  ;;  %v3103_v1 = vsel %vm1871_vm10, %v3099_v2, 0.0  ;;  %v3111_v27 = vsel %vm1871_vm10, %v3107_v37, 0.0 }
0x10e3   : > { %3096 = vadd.xlane.f32.xlu0 %v3095_v35  ;;  %3088 = vadd.xlane.f32.xlu1 %v3087_v56  ;;  %v3119_v47 = vsel %vm1871_vm10, %v3115_v26, 0.0  ;;  %v3127_v58 = vsel %vm1871_vm10, %v3123_v50, 0.0  ;;  %v3135_v39 = vsel %vm1871_vm10, %v3131_v52, 0.0  ;;  %v3147_v33 = vmul.f32 %v8485_v6, %v8714_v25 }
0x10e5   : > { %v3151_v57 = vsel %vm1871_vm10, %v3147_v33, 0.0 }
0x10e7   : > { %3104 = vadd.xlane.f32.xlu0 %v3103_v1 }
0x10eb   : > { %3112 = vadd.xlane.f32.xlu0 %v3111_v27 }
0x10ee   : > { %v3074_v54 = vpop.xlane.xlu1 %3073 }
0x10ef   : > { %7513 = vrcp.f32 %v3074_v54  ;;  %3120 = vadd.xlane.f32.xlu0 %v3119_v47 }
0x10f3   : > { %3128 = vadd.xlane.f32.xlu0 %v3127_v58 }
0x10f7   : > { %3136 = vadd.xlane.f32.xlu0 %v3135_v39 }
0x10f9   : > { %v7514_v59 = vpop.eup %7513 }
0x10fa   : > { %v8737_v51 = vmul.f32 %v7514_v59, %v7510_v21  ;;  %v3143_v21 = vsel %vm1871_vm10, %v3139_v24, 0.0 }
0x10fc   : > { %v3090_v62 = vmul.f32 %v8404_v8, %v8737_v51  ;;  %v3082_v63 = vmul.f32 %v8398_v0, %v8737_v51  ;;  %v3098_v4 = vmul.f32 %v8410_v38, %v8737_v51  ;;  %v3106_v29 = vmul.f32 %v8418_v48, %v8737_v51 }
0x10fd   : > { %v3114_v35 = vmul.f32 %v8434_v60, %v8737_v51  ;;  %v3122_v2 = vmul.f32 %v8447_v23, %v8737_v51  ;;  %v3130_v37 = vmul.f32 %v8453_v3, %v8737_v51  ;;  %v3138_v26 = vmul.f32 %v8467_v12, %v8737_v51 }
0x10fe   : > { %v3092_v13 = vsel %vm1871_vm10, %v3090_v62, 0.0  ;;  %v3084_v31 = vsel %vm1871_vm10, %v3082_v63, 0.0  ;;  %v3100_v43 = vsel %vm1871_vm10, %v3098_v4, 0.0  ;;  %v3108_v15 = vsel %vm1871_vm10, %v3106_v29, 0.0 }
0x10ff   : > { %3093 = vadd.xlane.f32.xlu0 %v3092_v13  ;;  %3085 = vadd.xlane.f32.xlu1 %v3084_v31  ;;  %v3116_v56 = vsel %vm1871_vm10, %v3114_v35, 0.0  ;;  %v3124_v1 = vsel %vm1871_vm10, %v3122_v2, 0.0  ;;  %v3132_v27 = vsel %vm1871_vm10, %v3130_v37, 0.0  ;;  %v3140_v54 = vsel %vm1871_vm10, %v3138_v26, 0.0 }
0x1100   : > { %v3146_v47 = vmul.f32 %v8474_v53, %v8737_v51 }
0x1102   : > { %v3148_v50 = vsel %vm1871_vm10, %v3146_v47, 0.0 }
0x1103   : > { %3144 = vadd.xlane.f32.xlu0 %v3143_v21  ;;  %3101 = vadd.xlane.f32.xlu1 %v3100_v43 }
0x1107   : > { %3152 = vadd.xlane.f32.xlu0 %v3151_v57  ;;  %3109 = vadd.xlane.f32.xlu1 %v3108_v15 }
0x110b   : > { %3117 = vadd.xlane.f32.xlu1 %v3116_v56 }
0x110f   : > { %3125 = vadd.xlane.f32.xlu1 %v3124_v1 }
0x1113   : > { %3133 = vadd.xlane.f32.xlu1 %v3132_v27 }
0x1117   : > { %3141 = vadd.xlane.f32.xlu1 %v3140_v54 }
0x111b   : > { %3149 = vadd.xlane.f32.xlu1 %v3148_v50  ;;  %v6240_v50 = vld [vmem:[%s9707_s14 + $0x10] sm:$0xff] }
0x1170   : > { %v3097_v58 = vpop.xlane.xlu0 %3096  ;;  %v3089_v59 = vpop.xlane.xlu1 %3088 }
0x1171   : > { %v3155_v35 = vsel %vm2246_vm15, %v3089_v59, %v3097_v58  ;;  %v6241_v58 = vld [vmem:[%s9707_s14 + $0x18] sm:$0xff] }
0x1174   : > { %v3105_v52 = vpop.xlane.xlu0 %3104 }
0x1175   : > { %v3157_v2 = vsel %vm2249_vm0, %v3155_v35, %v3105_v52 }
0x1178   : > { %v3113_v39 = vpop.xlane.xlu0 %3112 }
0x1179   : > { %v3159_v27 = vsel %vm2252_vm1, %v3157_v2, %v3113_v39 }
0x117c   : > { %v3121_v62 = vpop.xlane.xlu0 %3120 }
0x117d   : > { %v3161_v54 = vsel %vm9761_vm2, %v3159_v27, %v3121_v62 }
0x1180   : > { %v3129_v31 = vpop.xlane.xlu0 %3128 }
0x1181   : > { %v3163_v52 = vsel %vm9759_vm4, %v3161_v54, %v3129_v31  ;;  %v9811_v31 = vmov 0.0|0.0  }
0x1184   : > { %v3137_v4 = vpop.xlane.xlu0 %3136 }
0x1185   : > { %v3165_v39 = vsel %vm9758_vm9, %v3163_v52, %v3137_v4 }
0x118c   : > { %v3086_v63 = vpop.xlane.xlu1 %3085  ;;  %v3094_v43 = vpop.xlane.xlu0 %3093 }
0x118d   : > { %v3154_v15 = vsel %vm2246_vm15, %v3086_v63, %v3094_v43  ;;  %v7118_v43 = vpack.c.bf16 %v6241_v58, %v6240_v50 }
0x1190   : > { %v3102_v13 = vpop.xlane.xlu1 %3101  ;;  %v3145_v57 = vpop.xlane.xlu0 %3144 }
0x1191   : > { %v3156_v56 = vsel %vm2249_vm0, %v3154_v15, %v3102_v13 }
0x1194   : > { %v3110_v24 = vpop.xlane.xlu1 %3109  ;;  %v3153_v59 = vpop.xlane.xlu0 %3152 }
0x1195   : > { %v3158_v1 = vsel %vm2252_vm1, %v3156_v56, %v3110_v24  ;;  %v3167_v24 = vsel %vm9757_vm8, %v3165_v39, %v3145_v57  ;;  %v3468_v39 = vld [vmem:[%s9713_s20 + $0x10] sm:$0xff] }
0x1198   : > { %v3118_v21 = vpop.xlane.xlu1 %3117 }
0x1199   : > { %v3160_v26 = vsel %vm9761_vm2, %v3158_v1, %v3118_v21 }
0x119c   : > { %v3126_v33 = vpop.xlane.xlu1 %3125 }
0x119d   : > { %v3162_v47 = vsel %vm9759_vm4, %v3160_v26, %v3126_v33  ;;  %v3169_v33 = vsel %vm9756_vm5, %v3167_v24, %v3153_v59 }
0x11a0   : > { %v3134_v29 = vpop.xlane.xlu1 %3133 }
0x11a1   : > { %v3164_v63 = vsel %vm9758_vm9, %v3162_v47, %v3134_v29 }
0x11a4   : > { %v3142_v37 = vpop.xlane.xlu1 %3141 }
0x11a5   : > { %v3166_v13 = vsel %vm9757_vm8, %v3164_v63, %v3142_v37  ;;  %v3467_v63 = vld [vmem:[%s9713_s20 + $0x8] sm:$0xff]  ;;  %vm9816_vm8 = vcmask 1045504  }
0x11a6   : > { %vm9817_vm9 = vmmov %vm9816_vm8 }
0x11a8   : > { %v3150_v62 = vpop.xlane.xlu1 %3149 }
0x11a9   : > { %v3168_v21 = vsel %vm9756_vm5, %v3166_v13, %v3150_v62  ;;  %v3469_v62 = vld [vmem:[%s9713_s20 + $0x18] sm:$0xff] }
0x11aa   : > { %6717 = vmatprep.mubr.msk.f32.mxu0 %vm9755_vm3, %v3168_v21  ;;  %v7126_v24 = vpack.c.bf16 %v3469_v62, %v3468_v39  ;;  %v3470_v21 = vld [vmem:[%s9713_s20 + $0x20] sm:$0xff] }
0x11ab   : > { %6718 = vmatmul.mubr.msk.f32.vlgmr.msra.gmra.mrb[12].mxu0 %vm9755_vm3, %v3169_v33  ;;  %vm9814_vm3 = vcmask 1046528  }
0x11ac   : > { %7117 = vmatpush3.bf16.msra.mxu0 %v8666_v36  ;;  %6724 = vmatprep.mubr.msk.f32.mxu0 %vm1871_vm10, %v8737_v51  ;;  %v6178_v36 = vld [vmem:[%s9708_s15] ss:$0 sm:$0xff]  ;;  %vm9815_vm5 = vmmov %vm9814_vm3 }
0x11ad   : > { %7119 = vmatprep.subr.bf16.mxu0 %v7118_v43 }
0x11b3   : > { %6725 = vmatmul.mubr.msk.f32.vlgmr.msra.gmra.mrb[12].mxu0 %vm1871_vm10, %v8714_v25 }
0x11b4   : > { %7121 = vmatpush3.bf16.msra.mxu0 %v7118_v43  ;;  %v3471_v43 = vld [vmem:[%s9713_s20 + $0x28] sm:$0xff] }
0x11b5   : > { %7146 = vmatprep.subr.bf16.mxu0 %v9811_v31  ;;  %v7130_v33 = vpack.c.bf16 %v3471_v43, %v3470_v21 }
0x1286   : > { %v6726_v4 = vpop.f32.mrb[12].mxu0 }
0x1287   : > { %v3323_v29 = vpop.f32.mrb[13].mxu0 }
0x1288   : > { %6731 = vmatprep.mubr.msk.f32.mxu0 %vm1871_vm10, %v3323_v29  ;;  %v3473_v29 = vld [vmem:[%s9713_s20 + $0x38] sm:$0xff] }
0x1289   : > { %6732 = vmatmul.mubr.msk.f32.vlgmr.msra.gmra.mrb[10].mxu0 %vm1871_vm10, %v6726_v4  ;;  %v3472_v4 = vld [vmem:[%s9713_s20 + $0x30] sm:$0xff] }
0x135c   : > { %v6733_v57 = vpop.f32.mrb[10].mxu0 }
0x135d   : > { %v7342_v15 = vadd.f32 %v6733_v57, %v6178_v36  ;;  %v3407_v51 = vpop.f32.mrb[11].mxu0 }
0x135e   : > { %v7343_v35 = vadd.f32 %v6178_v36, %v3407_v51  ;;  %v7134_v36 = vpack.c.bf16 %v3473_v29, %v3472_v4 }
0x135f   : > { %v3419_v56 = vadd.f32 %v7342_v15, %v8273_v14 }
0x1360   : > { %v3418_v25 = vadd.f32 %v7343_v35, %v8270_v28  ;;  %v3466_v28 = vld [vmem:[%s9713_s20] sm:$0xff] }
0x1361   : > { %v3425_v2 = vsel %vm924_vm7, %v3419_v56, 0.0  ;;  %v7122_v13 = vpack.c.bf16 %v3467_v63, %v3466_v28 }
0x1362   : > { %3426 = vadd.xlane.f32.xlu0 %v3425_v2  ;;  %v3422_v1 = vsel %vm924_vm7, %v3418_v25, 0.0 }
0x1363   : > { %3423 = vadd.xlane.f32.xlu1 %v3422_v1  ;;  %7123 = vmatprep.subr.bf16.mxu1 %v7122_v13  ;;  %v6244_v1 = vld [vmem:[%s9711_s18] ss:$0 sm:$0xff] }
0x1364   : > { %7125 = vmatpush3.bf16.msra.mxu1 %v7122_v13  ;;  %v3477_v13 = vld [vmem:[%s9713_s20 + $0x58] sm:$0xff] }
0x1365   : > { %7127 = vmatprep.subr.bf16.mxu1 %v7126_v24 }
0x1368   : > { %7129 = vmatpush3.bf16.msra.mxu1 %v7126_v24 }
0x1369   : > { %7131 = vmatprep.subr.bf16.mxu1 %v7130_v33 }
0x136c   : > { %7133 = vmatpush3.bf16.msra.mxu1 %v7130_v33 }
0x136d   : > { %7135 = vmatprep.subr.bf16.mxu1 %v7134_v36 }
0x1370   : > { %7137 = vmatpush3.bf16.msra.mxu1 %v7134_v36 }
0x13ef   : > { %v3427_v37 = vpop.xlane.xlu0 %3426 }
0x13f0   : > { %v3429_v27 = vmul.f32 0.03125, %v3427_v37  ;;  %v3424_v26 = vpop.xlane.xlu1 %3423 }
0x13f1   : > { %v3428_v54 = vmul.f32 0.03125, %v3424_v26 }
0x13f2   : > { %v3431_v47 = vsub.f32 %v3419_v56, %v3429_v27 }
0x13f3   : > { %v3430_v50 = vsub.f32 %v3418_v25, %v3428_v54  ;;  %v6245_v54 = vld [vmem:[%s9812_s0] ss:$0 sm:$0xff] }
0x13f4   : > { %v3433_v58 = vmul.f32 %v3431_v47, %v3431_v47 }
0x13f5   : > { %v3432_v52 = vmul.f32 %v3430_v50, %v3430_v50 }
0x13f6   : > { %v3437_v59 = vsel %vm924_vm7, %v3433_v58, 0.0 }
0x13f7   : > { %3438 = vadd.xlane.f32.xlu0 %v3437_v59  ;;  %v3434_v14 = vsel %vm924_vm7, %v3432_v52, 0.0  ;;  %v3474_v52 = vld [vmem:[%s9713_s20 + $0x40] sm:$0xff]  ;;  %v3475_v59 = vld [vmem:[%s9713_s20 + $0x48] sm:$0xff] }
0x13f8   : > { %3435 = vadd.xlane.f32.xlu1 %v3434_v14  ;;  %v7138_v28 = vpack.c.bf16 %v3475_v59, %v3474_v52 }
0x13fa   : > { %7139 = vmatprep.subr.bf16.mxu1 %v7138_v28 }
0x13fb   : > { %7141 = vmatpush3.bf16.msra.mxu1 %v7138_v28 }
0x1484   : > { %v3439_v57 = vpop.xlane.xlu0 %3438 }
0x1485   : > { %v3441_v15 = vmul.f32 0.03125, %v3439_v57  ;;  %v3436_v51 = vpop.xlane.xlu1 %3435 }
0x1486   : > { %v3440_v35 = vmul.f32 0.03125, %v3436_v51 }
0x1487   : > { %v3443_v56 = vadd.f32 0.0001, %v3441_v15 }
0x1488   : > { %v3442_v25 = vadd.f32 0.0001, %v3440_v35 }
0x1489   : > { %7515 = vrsqrt.f32 %v3443_v56 }
0x148a   : > { %7517 = vrsqrt.f32 %v3442_v25 }
0x1493   : > { %v7516_v2 = vpop.eup %7515 }
0x1494   : > { %v7518_v37 = vpop.eup %7517  ;;  %v3447_v27 = vmul.f32 %v7516_v2, %v3431_v47 }
0x1495   : > { %v3446_v26 = vmul.f32 %v7518_v37, %v3430_v50  ;;  %v3476_v50 = vld [vmem:[%s9713_s20 + $0x50] sm:$0xff] }
0x1496   : > { %v3455_v58 = vmul.f32 %v6244_v1, %v3447_v27  ;;  %v7142_v24 = vpack.c.bf16 %v3477_v13, %v3476_v50  ;;  %v3609_v50 = vld [vmem:[%s9715_s22 + $0x8] sm:$0xff]  ;;  %v3610_v13 = vld [vmem:[%s9715_s22 + $0x10] sm:$0xff] }
0x1497   : > { %v3454_v14 = vmul.f32 %v6244_v1, %v3446_v26 }
0x1498   : > { %v8849_v63 = vadd.f32 %v6245_v54, %v3455_v58  ;;  %7143 = vmatprep.subr.bf16.mxu1 %v7142_v24 }
0x1499   : > { %v8851_v39 = vadd.f32 %v6245_v54, %v3454_v14  ;;  %7145 = vmatpush3.bf16.msra.mxu1 %v7142_v24  ;;  %v3611_v24 = vld [vmem:[%s9715_s22 + $0x18] sm:$0xff] }
0x149a   : > { %v3465_v47 = vmul.f32 %v7877_v17, %v8849_v63 }
0x149b   : > { %v3464_v62 = vmul.f32 %v7874_v16, %v8851_v39 }
0x149c   : > { %v3482_v21 = vrot.slane %v3465_v47, 7  ;;  %v3608_v47 = vld [vmem:[%s9715_s22] sm:$0xff] }
0x149d   : > { %v3481_v43 = vrot.slane %v3464_v62, 7  ;;  %v7147_v62 = vpack.c.bf16 %v3609_v50, %v3608_v47  ;;  %v3627_v47 = vld [vmem:[%s9715_s22 + $0x98] sm:$0xff] }
0x149e   : > { %v3488_v33 = vsel %vm9760_vm12, %v3482_v21, 0.0 }
0x149f   : > { %v3483_v4 = vsel %vm9760_vm12, %v3481_v43, %v3482_v21  ;;  %v3494_v29 = vrot.slane %v3488_v33, 1  ;;  %v3487_v36 = vsel %vm9760_vm12, 0.0, %v3481_v43  ;;  %v3505_v1 = vrot.slane %v3488_v33, 2  ;;  %7148 = vmatpush1.bf16.msra.mxu0 %v7147_v62  ;;  %v3612_v43 = vld [vmem:[%s9715_s22 + $0x20] sm:$0xff]  ;;  %v3613_v33 = vld [vmem:[%s9715_s22 + $0x28] sm:$0xff] }
0x14a0   : > { %v3492_v57 = vrot.slane %v3483_v4, 1  ;;  %v3491_v15 = vrot.slane %v3487_v36, 1  ;;  %v3502_v56 = vrot.slane %v3487_v36, 2  ;;  %v3503_v25 = vrot.slane %v3483_v4, 2  ;;  %7149 = vmatprep.subr.bf16.mxu0 %v9811_v31  ;;  %v3629_v62 = vld [vmem:[%s9715_s22 + $0xa8] sm:$0xff] }
0x14a1   : > { %v7150_v21 = vpack.c.bf16 %v3611_v24, %v3610_v13  ;;  %v3628_v13 = vld [vmem:[%s9715_s22 + $0xa0] sm:$0xff] }
0x14a2   : > { %v3495_v51 = vsel %vm9814_vm3, %v3492_v57, %v3494_v29  ;;  %v3493_v35 = vsel %vm9815_vm5, %v3491_v15, %v3492_v57  ;;  %v3504_v2 = vsel %vm9816_vm8, %v3502_v56, %v3503_v25  ;;  %v3506_v37 = vsel %vm9817_vm9, %v3503_v25, %v3505_v1  ;;  %v3614_v29 = vld [vmem:[%s9715_s22 + $0x30] sm:$0xff]  ;;  %v3616_v15 = vld [vmem:[%s9715_s22 + $0x40] sm:$0xff]  ;;  %v3619_v25 = vld [vmem:[%s9715_s22 + $0x58] sm:$0xff] }
0x14a3   : > { %3498 = vrot.lane.b32.xlu0 %v3495_v51, %s9799_s27  ;;  %3496 = vrot.lane.b32.xlu1 %v3493_v35, %s9799_s27  ;;  %vm9818_vm3 = vcmask 523264   ;;  %vm9819_vm5 = vcmask 785408   ;;  %v3617_v51 = vld [vmem:[%s9715_s22 + $0x48] sm:$0xff]  ;;  %v3618_v56 = vld [vmem:[%s9715_s22 + $0x50] sm:$0xff]  ;;  %v7177_v24 = vpack.c.bf16 %v3629_v62, %v3628_v13 }
0x14a4   : > { %vm9820_vm8 = vmmov %vm9818_vm3  ;;  %7151 = vmatpush1.bf16.msra.mxu0 %v7150_v21  ;;  %v7159_v35 = vpack.c.bf16 %v3617_v51, %v3616_v15  ;;  %v3620_v1 = vld [vmem:[%s9715_s22 + $0x60] sm:$0xff]  ;;  %v3630_v21 = vld [vmem:[%s9715_s22 + $0xb0] sm:$0xff] }
0x14a5   : > { %vm9821_vm4 = vmmov %vm9819_vm5  ;;  %7152 = vmatprep.subr.bf16.mxu0 %v9811_v31 }
0x14a6   : > { %vm9826_vm2 = vmmov %vm9820_vm8 }
0x14a7   : > { %3507 = vrot.lane.b32.xlu1 %v3504_v2, %s9798_s7  ;;  %v7162_v2 = vpack.c.bf16 %v3619_v25, %v3618_v56 }
0x14ab   : > { %3509 = vrot.lane.b32.xlu1 %v3506_v37, %s9798_s7  ;;  %v3621_v37 = vld [vmem:[%s9715_s22 + $0x68] sm:$0xff] }
0x1515   : > { %v3497_v27 = vpop.permute.xlu1 %3496  ;;  %v3499_v58 = vpop.permute.xlu0 %3498 }
0x1516   : > { %v3513_v26 = vsel %vm924_vm7, %v3487_v36, %v3497_v27  ;;  %v3514_v59 = vsel %vm924_vm7, %v3483_v4, %v3499_v58  ;;  %v7153_v4 = vpack.c.bf16 %v3613_v33, %v3612_v43  ;;  %v3615_v36 = vld [vmem:[%s9715_s22 + $0x38] sm:$0xff]  ;;  %v7165_v27 = vpack.c.bf16 %v3621_v37, %v3620_v1 }
0x1517   : > { %v7156_v57 = vpack.c.bf16 %v3615_v36, %v3614_v29  ;;  %v3631_v43 = vld [vmem:[%s9715_s22 + $0xb8] sm:$0xff] }
0x1518   : > { %7154 = vmatpush1.bf16.msra.mxu0 %v7153_v4  ;;  %v7180_v33 = vpack.c.bf16 %v3631_v43, %v3630_v21  ;;  %v6246_v4 = vld [vmem:[%s9714_s21] ss:$0 sm:$0xff] }
0x1519   : > { %v3508_v54 = vpop.permute.xlu1 %3507  ;;  %7155 = vmatprep.subr.bf16.mxu0 %v9811_v31 }
0x151a   : > { %v3515_v52 = vsel %vm9818_vm3, %v3513_v26, %v3508_v54  ;;  %v3622_v26 = vld [vmem:[%s9715_s22 + $0x70] sm:$0xff]  ;;  %v3623_v54 = vld [vmem:[%s9715_s22 + $0x78] sm:$0xff] }
0x151b   : > { %6758 = vmatprep.mubr.msk.f32.mxu1 %vm9819_vm5, %v3515_v52  ;;  %v7168_v58 = vpack.c.bf16 %v3623_v54, %v3622_v26  ;;  %v3624_v52 = vld [vmem:[%s9715_s22 + $0x80] sm:$0xff]  ;;  %vm9824_vm5 = vmmov %vm9817_vm9 }
0x151c   : > { %7157 = vmatpush1.bf16.msra.mxu0 %v7156_v57 }
0x151d   : > { %v3510_v14 = vpop.permute.xlu1 %3509  ;;  %7158 = vmatprep.subr.bf16.mxu0 %v9811_v31 }
0x151e   : > { %v3516_v28 = vsel %vm9820_vm8, %v3514_v59, %v3510_v14  ;;  %v3625_v59 = vld [vmem:[%s9715_s22 + $0x88] sm:$0xff] }
0x151f   : > { %6759 = vmatmul.mubr.msk.f32.vlgmr.msra.gmra.mrb[26].mxu1 %vm9821_vm4, %v3516_v28  ;;  %v7171_v14 = vpack.c.bf16 %v3625_v59, %v3624_v52  ;;  %v3626_v28 = vld [vmem:[%s9715_s22 + $0x90] sm:$0xff]  ;;  %vm9822_vm4 = vcmask 1046528  }
0x1520   : > { %7160 = vmatpush1.bf16.msra.mxu0 %v7159_v35  ;;  %v7174_v50 = vpack.c.bf16 %v3627_v47, %v3626_v28  ;;  %vm9823_vm3 = vmmov %vm9822_vm4 }
0x1521   : > { %7161 = vmatprep.subr.bf16.mxu0 %v9811_v31 }
0x1524   : > { %7163 = vmatpush1.bf16.msra.mxu0 %v7162_v2 }
0x1525   : > { %7164 = vmatprep.subr.bf16.mxu0 %v9811_v31 }
0x1528   : > { %7166 = vmatpush1.bf16.msra.mxu0 %v7165_v27 }
0x1529   : > { %7167 = vmatprep.subr.bf16.mxu0 %v9811_v31 }
0x152c   : > { %7169 = vmatpush1.bf16.msra.mxu0 %v7168_v58 }
0x152d   : > { %7170 = vmatprep.subr.bf16.mxu0 %v9811_v31 }
0x1530   : > { %7172 = vmatpush1.bf16.msra.mxu0 %v7171_v14 }
0x1531   : > { %7173 = vmatprep.subr.bf16.mxu0 %v9811_v31 }
0x1534   : > { %7175 = vmatpush1.bf16.msra.mxu0 %v7174_v50 }
0x1535   : > { %7176 = vmatprep.subr.bf16.mxu0 %v9811_v31 }
0x1538   : > { %7178 = vmatpush1.bf16.msra.mxu0 %v7177_v24 }
0x1539   : > { %7179 = vmatprep.subr.bf16.mxu0 %v9811_v31 }
0x153c   : > { %7181 = vmatpush1.bf16.msra.mxu0 %v7180_v33 }
0x15f2   : > { %v6760_v29 = vpop.f32.mrb[26].mxu1 }
0x15f3   : > { %v3601_v36 = vadd.f32 %v6760_v29, %v6246_v4  ;;  %v3595_v57 = vpop.f32.mrb[27].mxu1 }
0x15f4   : > { %v3596_v15 = vadd.f32 %v6246_v4, %v3595_v57  ;;  %v6249_v4 = vld [vmem:[%s9716_s23] ss:$0 sm:$0xff] }
0x15f5   : > { %v3605_v51 = vmax.f32 %v3601_v36, 0.0 }
0x15f6   : > { %v3604_v35 = vmax.f32 %v3596_v15, 0.0 }
0x15f7   : > { %v3607_v56 = vmul.f32 %v7877_v17, %v3605_v51 }
0x15f8   : > { %v3606_v25 = vmul.f32 %v7874_v16, %v3604_v35 }
0x15f9   : > { %v3636_v2 = vrot.slane %v3607_v56, 7 }
0x15fa   : > { %v3635_v1 = vrot.slane %v3606_v25, 7 }
0x15fb   : > { %v3642_v37 = vsel %vm9760_vm12, %v3636_v2, 0.0 }
0x15fc   : > { %v3648_v27 = vrot.slane %v3642_v37, 1  ;;  %v3659_v26 = vrot.slane %v3642_v37, 2  ;;  %v3637_v54 = vsel %vm9760_vm12, %v3635_v1, %v3636_v2  ;;  %v3641_v58 = vsel %vm9760_vm12, 0.0, %v3635_v1  ;;  %vm9825_vm12 = vmmov %vm9820_vm8 }
0x15fd   : > { %v3645_v52 = vrot.slane %v3641_v58, 1  ;;  %v3656_v59 = vrot.slane %v3641_v58, 2  ;;  %v3657_v14 = vrot.slane %v3637_v54, 2  ;;  %v3646_v28 = vrot.slane %v3637_v54, 1 }
0x15ff   : > { %v3658_v47 = vsel %vm9817_vm9, %v3656_v59, %v3657_v14  ;;  %v3649_v50 = vsel %vm9822_vm4, %v3646_v28, %v3648_v27  ;;  %v3647_v13 = vsel %vm9823_vm3, %v3645_v52, %v3646_v28  ;;  %v3660_v62 = vsel %vm9824_vm5, %v3657_v14, %v3659_v26  ;;  %vm9827_vm9 = vmmov %vm9826_vm2 }
0x1600   : > { %6250 = vmatprep.mubr.msk.f32.mxu0 %vm9820_vm8, %v3658_v47  ;;  %3652 = vrot.lane.b32.xlu1 %v3649_v50, %s9798_s7  ;;  %vm9830_vm4 = vcmask 39936   ;;  %vm9832_vm5 = vcmask 48128  }
0x1601   : > { %3650 = vrot.lane.b32.xlu0 %v3647_v13, %s9798_s7  ;;  %v6261_v13 = vld [vmem:[%s9803_s19 + $0x48] sm:$0xff]  ;;  %vm9831_vm3 = vmmov %vm9830_vm4 }
0x1602   : > { %vm9833_vm8 = vmmov %vm9832_vm5 }
0x1672   : > { %v3653_v43 = vpop.permute.xlu1 %3652 }
0x1673   : > { %v3651_v24 = vpop.permute.xlu0 %3650  ;;  %v3662_v33 = vsel %vm9827_vm9, %v3637_v54, %v3653_v43  ;;  %v6268_v43 = vld [vmem:[%s9804_s3 + $0x40] sm:$0xff]  ;;  %vm9834_vm9 = vcmask 56320  }
0x1674   : > { %v3661_v21 = vsel %vm9825_vm12, %v3641_v58, %v3651_v24  ;;  %v6262_v24 = vld [vmem:[%s9803_s19 + $0x50] sm:$0xff]  ;;  %vm9828_vm12 = vcmask 31744  }
0x1675   : > { %3738 = vmatmul.mubr.f32.vlgmr.msra.gmra.mrb[14].mxu0 %v3661_v21  ;;  %v6263_v21 = vld [vmem:[%s9803_s19 + $0x58] sm:$0xff] }
0x1676   : > { %6251 = vmatprep.mubr.msk.f32.mxu0 %vm9826_vm2, %v3660_v62  ;;  %vm9829_vm2 = vmmov %vm9828_vm12 }
0x1679   : > { %3743 = vmatmul.mubr.f32.gmra.mrb[16].mxu0 %v3662_v33  ;;  %v7186_v33 = vpack.c.bf16 %v6263_v21, %v6262_v24  ;;  %v6278_v24 = vld [vmem:[%s9705_s12 + $0x50] sm:$0xff]  ;;  %v6279_v21 = vld [vmem:[%s9705_s12 + $0x58] sm:$0xff] }
0x1748   : > { %v3739_v29 = vpop.f32.mrb[14].mxu0 }
0x1749   : > { %v3740_v36 = vadd.f32 %v6249_v4, %v3739_v29  ;;  %v3741_v57 = vpop.f32.mrb[15].mxu0 }
0x174b   : > { %v3748_v15 = vmul.f32 %v7874_v16, %v3740_v36 }
0x174c   : > { %v3744_v51 = vpop.f32.mrb[16].mxu0 }
0x174d   : > { %v3745_v35 = vadd.f32 %v6249_v4, %v3744_v51  ;;  %v3746_v56 = vpop.f32.mrb[17].mxu0  ;;  %v3750_v25 = vadd.f32 %v3748_v15, %v8851_v39  ;;  %v6269_v4 = vld [vmem:[%s9804_s3 + $0x48] sm:$0xff] }
0x174e   : > { %v7190_v29 = vpack.c.bf16 %v6269_v4, %v6268_v43  ;;  %v7202_v43 = vpack.c.bf16 %v6279_v21, %v6278_v24  ;;  %v6255_v4 = vld [vmem:[%s9709_s16 + $0x18] sm:$0x1] }
0x174f   : > { %v3749_v2 = vmul.f32 %v7877_v17, %v3745_v35  ;;  %v3754_v1 = vsel %vm924_vm7, %v3750_v25, 0.0 }
0x1750   : > { %3755 = vadd.xlane.f32.xlu0 %v3754_v1 }
0x1751   : > { %v3751_v37 = vadd.f32 %v3749_v2, %v8849_v63  ;;  %v6260_v63 = vld [vmem:[%s9803_s19 + $0x40] sm:$0xff] }
0x1752   : > { %v7182_v62 = vpack.c.bf16 %v6261_v13, %v6260_v63  ;;  %v6252_v2 = vld [vmem:[%s9717_s24] ss:$0 sm:$0xff]  ;;  %v6277_v13 = vld [vmem:[%s9705_s12 + $0x48] sm:$0xff] }
0x1753   : > { %v3757_v27 = vsel %vm924_vm7, %v3751_v37, 0.0  ;;  %v6276_v63 = vld [vmem:[%s9705_s12 + $0x40] sm:$0xff] }
0x1754   : > { %3758 = vadd.xlane.f32.xlu1 %v3757_v27  ;;  %7183 = vmatprep.subr.bf16.mxu1 %v7182_v62 }
0x1755   : > { %7185 = vmatpush3.bf16.msra.mxu1 %v7182_v62  ;;  %v7198_v62 = vpack.c.bf16 %v6277_v13, %v6276_v63 }
0x1756   : > { %7187 = vmatprep.subr.bf16.mxu1 %v7186_v33 }
0x1759   : > { %7189 = vmatpush3.bf16.msra.mxu1 %v7186_v33  ;;  %v6254_v33 = vld [vmem:[%s9709_s16 + $0x10] sm:$0xff] }
0x175a   : > { %7191 = vmatprep.subr.bf16.mxu1 %v7190_v29 }
0x17dd   : > { %v3756_v26 = vpop.xlane.xlu0 %3755 }
0x17de   : > { %v3760_v54 = vmul.f32 0.03125, %v3756_v26 }
0x17e0   : > { %v3762_v58 = vsub.f32 %v3750_v25, %v3760_v54 }
0x17e1   : > { %v3759_v52 = vpop.xlane.xlu1 %3758 }
0x17e2   : > { %v3761_v59 = vmul.f32 0.03125, %v3759_v52  ;;  %v3764_v14 = vmul.f32 %v3762_v58, %v3762_v58 }
0x17e4   : > { %v3763_v28 = vsub.f32 %v3751_v37, %v3761_v59  ;;  %v3766_v47 = vsel %vm924_vm7, %v3764_v14, 0.0  ;;  %v6253_v37 = vld [vmem:[%s9718_s25] ss:$0 sm:$0xff] }
0x17e5   : > { %3767 = vadd.xlane.f32.xlu0 %v3766_v47  ;;  %v6270_v47 = vld [vmem:[%s9804_s3 + $0x50] sm:$0xff] }
0x17e6   : > { %v3765_v39 = vmul.f32 %v3763_v28, %v3763_v28 }
0x17e8   : > { %v3769_v50 = vsel %vm924_vm7, %v3765_v39, 0.0 }
0x17e9   : > { %3770 = vadd.xlane.f32.xlu0 %v3769_v50 }
0x1872   : > { %v3768_v36 = vpop.xlane.xlu0 %3767 }
0x1873   : > { %v3772_v57 = vmul.f32 0.03125, %v3768_v36  ;;  %v6256_v36 = vld [vmem:[%s9710_s17 + $0x10] sm:$0xff] }
0x1875   : > { %v3774_v15 = vadd.f32 0.0001, %v3772_v57  ;;  %v6257_v57 = vld [vmem:[%s9710_s17 + $0x18] sm:$0x1] }
0x1876   : > { %v3771_v51 = vpop.xlane.xlu0 %3770 }
0x1877   : > { %7519 = vrsqrt.f32 %v3774_v15  ;;  %v3773_v35 = vmul.f32 0.03125, %v3771_v51  ;;  %v9072_v15 = vpack.c.bf16 %v6257_v57, %v6256_v36  ;;  %v6265_v51 = vld [vmem:[%s9810_s5 + $0x2] ss:$0 sm:$0xff] }
0x1879   : > { %v3775_v56 = vadd.f32 0.0001, %v3773_v35 }
0x187b   : > { %7521 = vrsqrt.f32 %v3775_v56 }
0x1881   : > { %v7520_v25 = vpop.eup %7519 }
0x1882   : > { %v3778_v1 = vmul.f32 %v7520_v25, %v3762_v58  ;;  %v6271_v58 = vld [vmem:[%s9804_s3 + $0x58] sm:$0xff] }
0x1884   : > { %v3786_v27 = vmul.f32 %v6252_v2, %v3778_v1 }
0x1885   : > { %v7522_v26 = vpop.eup %7521 }
0x1886   : > { %v3794_v54 = vadd.f32 %v6253_v37, %v3786_v27  ;;  %v3779_v52 = vmul.f32 %v7522_v26, %v3763_v28  ;;  %v7194_v28 = vpack.c.bf16 %v6271_v58, %v6270_v47  ;;  %v6273_v27 = vld [vmem:[%s9704_s11 + $0x2] ss:$0 sm:$0xff] }
0x1887   : > { %v6281_v58 = vld [vmem:[%s9706_s13 + $0x2] ss:$0 sm:$0xff] }
0x1888   : > { %v9017_v59 = vmul.f32 %v7874_v16, %v3794_v54  ;;  %v3787_v14 = vmul.f32 %v6252_v2, %v3779_v52 }
0x188a   : > { %v3795_v39 = vadd.f32 %v6253_v37, %v3787_v14  ;;  %6769 = vmatprep.mubr.msk.f32.mxu1 %vm924_vm7, %v9017_v59 }
0x188c   : > { %v9028_v50 = vmul.f32 %v7877_v17, %v3795_v39 }
0x188e   : > { %6770 = vmatmul.mubr.msk.f32.vlgmr.msra.gmra.mrb[28].mxu1 %vm924_vm7, %v9028_v50 }
0x188f   : > { %7193 = vmatpush3.bf16.msra.mxu1 %v7190_v29  ;;  %6780 = vmatprep.mubr.msk.f32.mxu1 %vm924_vm7, %v9017_v59  ;;  %v9056_v29 = vpack.c.bf16 %v6255_v4, %v6254_v33 }
0x1890   : > { %7195 = vmatprep.subr.bf16.mxu1 %v7194_v28 }
0x1893   : > { %7197 = vmatpush3.bf16.msra.mxu1 %v7194_v28 }
0x1894   : > { %7199 = vmatprep.subr.bf16.mxu1 %v7198_v62 }
0x1896   : > { %6781 = vmatmul.mubr.msk.f32.vlgmr.msra.gmra.mrb[30].mxu1 %vm924_vm7, %v9028_v50 }
0x1897   : > { %7201 = vmatpush3.bf16.msra.mxu1 %v7198_v62  ;;  %6791 = vmatprep.mubr.msk.f32.mxu1 %vm924_vm7, %v9017_v59 }
0x1898   : > { %7203 = vmatprep.subr.bf16.mxu1 %v7202_v43 }
0x189b   : > { %7205 = vmatpush3.bf16.msra.mxu1 %v7202_v43 }
0x189c   : > { %7208 = vmatprep.subr.msk.bf16.mxu1 %vm8307_vm11, %v9056_v29 }
0x189e   : > { %6792 = vmatmul.mubr.msk.f32.vlgmr.msra.gmra.mrb[32].mxu1 %vm924_vm7, %v9028_v50 }
0x18a4   : > { %7211 = vmatpush3.bf16.xpose.msk.msra.mxu1 %vm8307_vm11, %v9056_v29 }
0x18a5   : > { %7220 = vmatprep.subr.msk.bf16.mxu1 %vm8328_vm14, %v9072_v15 }
0x1961   : > { %v6771_v35 = vpop.f32.mrb[28].mxu1 }
0x1962   : > { %v3904_v56 = vadd.f32 %v6771_v35, %v6265_v51  ;;  %v3898_v25 = vpop.f32.mrb[29].mxu1 }
0x1963   : > { %v3899_v2 = vadd.f32 %v6265_v51, %v3898_v25 }
0x1964   : > { %v3908_v37 = vmul.f32 0.25, %v3904_v56 }
0x1965   : > { %v3907_v1 = vmul.f32 0.25, %v3899_v2 }
0x1967   : > { %6798 = vmatprep.mubr.msk.f32.mxu1 %vm1871_vm10, %v3907_v1  ;;  %6805 = vmatprep.mubr.msk.f32.mxu0 %vm1871_vm10, %v3907_v1 }
0x1968   : > { %6799 = vmatmul.mubr.msk.f32.vlgmr.msra.gmra.mrb[34].mxu1 %vm1871_vm10, %v3908_v37 }
0x1969   : > { %v6782_v26 = vpop.f32.mrb[30].mxu1  ;;  %7223 = vmatpush3.bf16.msk.msra.mxu1 %vm8328_vm14, %v9072_v15 }
0x196a   : > { %v3994_v54 = vadd.f32 %v6782_v26, %v6273_v27  ;;  %v3988_v52 = vpop.f32.mrb[31].mxu1 }
0x196b   : > { %v3989_v14 = vadd.f32 %v6273_v27, %v3988_v52 }
0x196d   : > { %v7212_v47 = vpack.c.bf16 %v3994_v54, %v3989_v14 }
0x196f   : > { %7214 = vmatprep.subr.msk.bf16.mxu0 %vm8307_vm11, %v7212_v47 }
0x1970   : > { %7217 = vmatpush3.bf16.xpose.msk.msra.mxu0 %vm8307_vm11, %v7212_v47 }
0x1971   : > { %v6793_v39 = vpop.f32.mrb[32].mxu1 }
0x1972   : > { %v4082_v28 = vadd.f32 %v6793_v39, %v6281_v58  ;;  %v4076_v63 = vpop.f32.mrb[33].mxu1 }
0x1973   : > { %v4077_v13 = vadd.f32 %v6281_v58, %v4076_v63 }
0x1975   : > { %v9096_v62 = vpack.c.bf16 %v4082_v28, %v4077_v13 }
0x1977   : > { %6806 = vmatmul.mubr.msk.f32.vlgmr.msra.gmra.mrb[18].mxu0 %vm1871_vm10, %v3908_v37  ;;  %7225 = vmatprep.subr.bf16.mxu1 %v9096_v62 }
0x1a3b   : > { %v6800_v24 = vpop.f32.mrb[34].mxu1 }
0x1a3c   : > { %4270 = vperm.xlu1 %7452, %v6800_v24   ;;  %4179 = vperm.xlu0 %7451, %v6800_v24   ;;  %v4163_v21 = vpop.f32.mrb[35].mxu1 }
0x1a40   : > { %7453 = vset.pattern.permute.xlu1 %v7634_v7  ;;  %7457 = vset.pattern.permute.xlu0 %v9764_v9 }
0x1a41   : > { %4282 = vperm.xlu1 %7453, %v6800_v24   ;;  %4330 = vperm.xlu0 %7457, %v6800_v24  }
0x1a45   : > { %7454 = vset.pattern.permute.xlu1 %v7636_v10  ;;  %7464 = vset.pattern.permute.xlu0 %v9763_v11 }
0x1a46   : > { %4294 = vperm.xlu1 %7454, %v6800_v24   ;;  %4314 = vperm.xlu0 %7464, %v4163_v21  }
0x1a4a   : > { %v6807_v43 = vpop.f32.mrb[18].mxu0  ;;  %7455 = vset.pattern.permute.xlu1 %v7638_v19  ;;  %7467 = vset.pattern.permute.xlu0 %v7639_v20 }
0x1a4b   : > { %v4256_v33 = vpop.f32.mrb[19].mxu0  ;;  %4306 = vperm.xlu1 %7455, %v6800_v24   ;;  %4350 = vperm.xlu0 %7467, %v4163_v21  }
0x1a4f   : > { %7456 = vset.pattern.permute.xlu1 %v9763_v11  ;;  %7474 = vset.pattern.permute.xlu0 %v9763_v11 }
0x1a50   : > { %4318 = vperm.xlu1 %7456, %v6800_v24  }
0x1a54   : > { %7458 = vset.pattern.permute.xlu1 %v7640_v22 }
0x1a55   : > { %4342 = vperm.xlu1 %7458, %v6800_v24  }
0x1a59   : > { %7459 = vset.pattern.permute.xlu1 %v7633_v46 }
0x1a5a   : > { %4174 = vperm.xlu1 %7459, %v4163_v21  }
0x1a5e   : > { %7460 = vset.pattern.permute.xlu1 %v7632_v45 }
0x1a5f   : > { %4266 = vperm.xlu1 %7460, %v4163_v21  }
0x1a63   : > { %7461 = vset.pattern.permute.xlu1 %v7634_v7 }
0x1a64   : > { %4278 = vperm.xlu1 %7461, %v4163_v21  }
0x1a68   : > { %7462 = vset.pattern.permute.xlu1 %v7636_v10 }
0x1a69   : > { %4290 = vperm.xlu1 %7462, %v4163_v21  }
0x1a6d   : > { %7463 = vset.pattern.permute.xlu1 %v7638_v19 }
0x1a6e   : > { %4302 = vperm.xlu1 %7463, %v4163_v21  }
0x1a72   : > { %7465 = vset.pattern.permute.xlu1 %v9764_v9 }
0x1a73   : > { %4326 = vperm.xlu1 %7465, %v4163_v21  }
0x1a77   : > { %7466 = vset.pattern.permute.xlu1 %v7640_v22 }
0x1a78   : > { %4338 = vperm.xlu1 %7466, %v4163_v21  }
0x1a7c   : > { %7468 = vset.pattern.permute.xlu1 %v7639_v20 }
0x1a7d   : > { %4354 = vperm.xlu1 %7468, %v6800_v24  }
0x1a81   : > { %7469 = vset.pattern.permute.xlu1 %v7633_v46 }
0x1abb   : > { %v4271_v4 = vpop.permute.xlu1 %4270  ;;  %v4180_v1 = vpop.permute.xlu0 %4179 }
0x1abc   : > { %v4183_v37 = vmul.f32 %v8394_v34, %v4180_v1  ;;  %v4274_v39 = vmul.f32 %v8413_v41, %v4271_v4 }
0x1abe   : > { %v4262_v52 = vadd.f32 %v6807_v43, %v4183_v37 }
0x1ac0   : > { %v4283_v36 = vpop.permute.xlu1 %4282  ;;  %v4331_v28 = vpop.permute.xlu0 %4330  ;;  %v4276_v24 = vadd.f32 %v4274_v39, %v4262_v52 }
0x1ac1   : > { %v4286_v21 = vmul.f32 %v8421_v49, %v4283_v36 }
0x1ac5   : > { %v4295_v57 = vpop.permute.xlu1 %4294 }
0x1ac6   : > { %v4298_v11 = vmul.f32 %v8428_v55, %v4295_v57 }
0x1aca   : > { %v4307_v51 = vpop.permute.xlu1 %4306 }
0x1acb   : > { %v4310_v37 = vmul.f32 %v8438_v61, %v4307_v51 }
0x1acf   : > { %v4319_v35 = vpop.permute.xlu1 %4318 }
0x1ad4   : > { %v4343_v56 = vpop.permute.xlu1 %4342 }
0x1ad9   : > { %v4175_v25 = vpop.permute.xlu1 %4174 }
0x1ada   : > { %v4182_v26 = vmul.f32 %v8398_v0, %v4175_v25 }
0x1adc   : > { %v4257_v14 = vadd.f32 %v4256_v33, %v4182_v26  ;;  %v4288_v33 = vadd.f32 %v4286_v21, %v4276_v24  ;;  %v4322_v26 = vmul.f32 %v8442_v5, %v4319_v35 }
0x1ade   : > { %v4267_v2 = vpop.permute.xlu1 %4266  ;;  %v4300_v4 = vadd.f32 %v4298_v11, %v4288_v33 }
0x1adf   : > { %v4273_v54 = vmul.f32 %v8404_v8, %v4267_v2  ;;  %v4315_v2 = vpop.permute.xlu0 %4314 }
0x1ae1   : > { %v4275_v63 = vadd.f32 %v4273_v54, %v4257_v14  ;;  %v4321_v54 = vmul.f32 %v8447_v23, %v4315_v2  ;;  %v4312_v14 = vadd.f32 %v4310_v37, %v4300_v4 }
0x1ae3   : > { %v4279_v27 = vpop.permute.xlu1 %4278  ;;  %v4324_v57 = vadd.f32 %v4322_v26, %v4312_v14  ;;  %v4351_v39 = vpop.permute.xlu0 %4350 }
0x1ae4   : > { %v4285_v47 = vmul.f32 %v8410_v38, %v4279_v27  ;;  %v4357_v11 = vmul.f32 %v8474_v53, %v4351_v39 }
0x1ae6   : > { %v4287_v1 = vadd.f32 %v4285_v47, %v4275_v63 }
0x1ae8   : > { %v4291_v58 = vpop.permute.xlu1 %4290 }
0x1ae9   : > { %v4297_v13 = vmul.f32 %v8418_v48, %v4291_v58  ;;  %v4334_v58 = vmul.f32 %v8460_v42, %v4331_v28 }
0x1aeb   : > { %v4299_v9 = vadd.f32 %v4297_v13, %v4287_v1  ;;  %v4336_v51 = vadd.f32 %v4334_v58, %v4324_v57 }
0x1aed   : > { %v4303_v25 = vpop.permute.xlu1 %4302 }
0x1aee   : > { %v4309_v43 = vmul.f32 %v8434_v60, %v4303_v25 }
0x1af0   : > { %v4311_v27 = vadd.f32 %v4309_v43, %v4299_v9  ;;  %v4346_v9 = vmul.f32 %v8470_v30, %v4343_v56 }
0x1af2   : > { %v4327_v52 = vpop.permute.xlu1 %4326  ;;  %v4323_v36 = vadd.f32 %v4321_v54, %v4311_v27  ;;  %v4348_v25 = vadd.f32 %v4346_v9, %v4336_v51 }
0x1af3   : > { %v4333_v47 = vmul.f32 %v8453_v3, %v4327_v52 }
0x1af5   : > { %v4335_v13 = vadd.f32 %v4333_v47, %v4323_v36 }
0x1af7   : > { %v4339_v63 = vpop.permute.xlu1 %4338 }
0x1af8   : > { %v4345_v24 = vmul.f32 %v8467_v12, %v4339_v63 }
0x1afa   : > { %v4347_v35 = vadd.f32 %v4345_v24, %v4335_v13 }
0x1afc   : > { %v4359_v21 = vadd.f32 %v4357_v11, %v4347_v35  ;;  %v4355_v1 = vpop.permute.xlu1 %4354 }
0x1afd   : > { %v4358_v43 = vmul.f32 %v8485_v6, %v4355_v1 }
0x1afe   : > { %v4361_v33 = vsel %vm2148_vm6, -10000.0, %v4359_v21 }
0x1aff   : > { %v4360_v28 = vadd.f32 %v4358_v43, %v4348_v25  ;;  %v4363_v2 = vsel %vm1871_vm10, %v4361_v33, -inf }
0x1b00   : > { %4364 = vmax.xlane.f32.xlu1 %v4363_v2 }
0x1b01   : > { %v4362_v37 = vsel %vm2149_vm13, -10000.0, %v4360_v28 }
0x1b02   : > { %v4366_v56 = vsel %vm1871_vm10, %v4362_v37, -inf }
0x1b03   : > { %4367 = vmax.xlane.f32.xlu0 %v4366_v56 }
0x1b8d   : > { %v4365_v27 = vpop.xlane.xlu1 %4364 }
0x1b8e   : > { %v4369_v4 = vsub.f32 %v4361_v33, %v4365_v27 }
0x1b90   : > { %v4371_v26 = vmul.f32 1.442695, %v4369_v4  ;;  %v4368_v54 = vpop.xlane.xlu0 %4367 }
0x1b91   : > { %v4370_v52 = vsub.f32 %v4362_v37, %v4368_v54 }
0x1b92   : > { %7523 = vpow2.f32 %v4371_v26 }
0x1b93   : > { %v4373_v14 = vmul.f32 1.442695, %v4370_v52 }
0x1b95   : > { %7525 = vpow2.f32 %v4373_v14 }
0x1b9c   : > { %v7524_v36 = vpop.eup %7523 }
0x1b9d   : > { %v4375_v47 = vsel %vm1871_vm10, %v7524_v36, 0.0 }
0x1b9e   : > { %4376 = vadd.xlane.f32.xlu0 %v4375_v47 }
0x1b9f   : > { %v7526_v57 = vpop.eup %7525 }
0x1ba0   : > { %v4378_v58 = vsel %vm1871_vm10, %v7526_v57, 0.0 }
0x1ba1   : > { %4379 = vadd.xlane.f32.xlu1 %v4378_v58 }
0x1c2b   : > { %v4377_v39 = vpop.xlane.xlu0 %4376 }
0x1c2c   : > { %7527 = vrcp.f32 %v4377_v39 }
0x1c2e   : > { %v4380_v63 = vpop.xlane.xlu1 %4379 }
0x1c2f   : > { %7529 = vrcp.f32 %v4380_v63 }
0x1c36   : > { %v7528_v13 = vpop.eup %7527 }
0x1c37   : > { %v9144_v51 = vmul.f32 %v7528_v13, %v7524_v36 }
0x1c39   : > { %v7530_v24 = vpop.eup %7529  ;;  %v4385_v43 = vmul.f32 %v8398_v0, %v9144_v51  ;;  %v4401_v37 = vmul.f32 %v8410_v38, %v9144_v51  ;;  %v4409_v26 = vmul.f32 %v8418_v48, %v9144_v51  ;;  %v4417_v36 = vmul.f32 %v8434_v60, %v9144_v51 }
0x1c3a   : > { %v9146_v9 = vmul.f32 %v7530_v24, %v7526_v57  ;;  %v4425_v39 = vmul.f32 %v8447_v23, %v9144_v51  ;;  %v4393_v24 = vmul.f32 %v8404_v8, %v9144_v51 }
0x1c3b   : > { %v4387_v28 = vsel %vm1871_vm10, %v4385_v43, 0.0  ;;  %v4403_v27 = vsel %vm1871_vm10, %v4401_v37, 0.0  ;;  %v4411_v52 = vsel %vm1871_vm10, %v4409_v26, 0.0  ;;  %v4419_v57 = vsel %vm1871_vm10, %v4417_v36, 0.0 }
0x1c3c   : > { %v4394_v11 = vmul.f32 %v8413_v41, %v9146_v9  ;;  %v4386_v35 = vmul.f32 %v8394_v34, %v9146_v9  ;;  %v4402_v25 = vmul.f32 %v8421_v49, %v9146_v9  ;;  %v4410_v2 = vmul.f32 %v8428_v55, %v9146_v9 }
0x1c3d   : > { %v4418_v4 = vmul.f32 %v8438_v61, %v9146_v9  ;;  %v4426_v14 = vmul.f32 %v8442_v5, %v9146_v9  ;;  %v4434_v58 = vmul.f32 %v8460_v42, %v9146_v9  ;;  %v4427_v13 = vsel %vm1871_vm10, %v4425_v39, 0.0 }
0x1c3e   : > { %v4398_v21 = vsel %vm1871_vm10, %v4394_v11, 0.0  ;;  %v4390_v1 = vsel %vm1871_vm10, %v4386_v35, 0.0  ;;  %v4406_v33 = vsel %vm1871_vm10, %v4402_v25, 0.0  ;;  %v4414_v56 = vsel %vm1871_vm10, %v4410_v2, 0.0 }
0x1c3f   : > { %4399 = vadd.xlane.f32.xlu1 %v4398_v21  ;;  %4391 = vadd.xlane.f32.xlu0 %v4390_v1  ;;  %v4422_v54 = vsel %vm1871_vm10, %v4418_v4, 0.0  ;;  %v4430_v47 = vsel %vm1871_vm10, %v4426_v14, 0.0  ;;  %v4438_v63 = vsel %vm1871_vm10, %v4434_v58, 0.0  ;;  %v4433_v11 = vmul.f32 %v8453_v3, %v9144_v51  ;;  %v6298_v4 = vld [vmem:[%s9707_s14 + $0x28] sm:$0xff] }
0x1c40   : > { %v4395_v35 = vsel %vm1871_vm10, %v4393_v24, 0.0  ;;  %v4442_v1 = vmul.f32 %v8470_v30, %v9146_v9  ;;  %v4441_v25 = vmul.f32 %v8467_v12, %v9144_v51  ;;  %v4449_v2 = vmul.f32 %v8474_v53, %v9144_v51 }
0x1c41   : > { %v4435_v21 = vsel %vm1871_vm10, %v4433_v11, 0.0 }
0x1c42   : > { %v4446_v43 = vsel %vm1871_vm10, %v4442_v1, 0.0 }
0x1c43   : > { %4407 = vadd.xlane.f32.xlu1 %v4406_v33  ;;  %4388 = vadd.xlane.f32.xlu0 %v4387_v28  ;;  %v4443_v33 = vsel %vm1871_vm10, %v4441_v25, 0.0  ;;  %v4450_v28 = vmul.f32 %v8485_v6, %v9146_v9 }
0x1c45   : > { %v4454_v37 = vsel %vm1871_vm10, %v4450_v28, 0.0 }
0x1c47   : > { %4415 = vadd.xlane.f32.xlu1 %v4414_v56  ;;  %4404 = vadd.xlane.f32.xlu0 %v4403_v27  ;;  %v4451_v56 = vsel %vm1871_vm10, %v4449_v2, 0.0  ;;  %v6297_v27 = vld [vmem:[%s9707_s14 + $0x20] sm:$0xff] }
0x1c48   : > { %v7228_v26 = vpack.c.bf16 %v6298_v4, %v6297_v27 }
0x1c4a   : > { %7229 = vmatprep.subr.bf16.mxu0 %v7228_v26 }
0x1c4b   : > { %4423 = vadd.xlane.f32.xlu1 %v4422_v54  ;;  %4412 = vadd.xlane.f32.xlu0 %v4411_v52 }
0x1c4c   : > { %7231 = vmatpush3.bf16.msra.mxu0 %v7228_v26 }
0x1c4f   : > { %4431 = vadd.xlane.f32.xlu1 %v4430_v47  ;;  %4420 = vadd.xlane.f32.xlu0 %v4419_v57 }
0x1c53   : > { %4439 = vadd.xlane.f32.xlu1 %v4438_v63  ;;  %4428 = vadd.xlane.f32.xlu0 %v4427_v13 }
0x1c57   : > { %4396 = vadd.xlane.f32.xlu1 %v4395_v35  ;;  %4436 = vadd.xlane.f32.xlu0 %v4435_v21 }
0x1c5b   : > { %4447 = vadd.xlane.f32.xlu1 %v4446_v43  ;;  %4444 = vadd.xlane.f32.xlu0 %v4443_v33 }
0x1c5f   : > { %4455 = vadd.xlane.f32.xlu1 %v4454_v37  ;;  %4452 = vadd.xlane.f32.xlu0 %v4451_v56 }
0x1ccc   : > { %v4400_v54 = vpop.xlane.xlu1 %4399  ;;  %v4392_v52 = vpop.xlane.xlu0 %4391 }
0x1ccd   : > { %v4458_v25 = vsel %vm2246_vm15, %v4392_v52, %v4400_v54  ;;  %v6301_v52 = vld [vmem:[%s9803_s19 + $0x60] sm:$0xff] }
0x1cd0   : > { %v4408_v14 = vpop.xlane.xlu1 %4407  ;;  %v4389_v36 = vpop.xlane.xlu0 %4388 }
0x1cd1   : > { %v4460_v33 = vsel %vm2249_vm0, %v4458_v25, %v4408_v14  ;;  %v6302_v14 = vld [vmem:[%s9803_s19 + $0x68] sm:$0xff]  ;;  %v6317_v25 = vld [vmem:[%s9705_s12 + $0x60] sm:$0xff] }
0x1cd4   : > { %v4416_v47 = vpop.xlane.xlu1 %4415  ;;  %v4405_v57 = vpop.xlane.xlu0 %4404 }
0x1cd5   : > { %v4462_v2 = vsel %vm2252_vm1, %v4460_v33, %v4416_v47  ;;  %v6320_v33 = vld [vmem:[%s9705_s12 + $0x78] sm:$0xff] }
0x1cd8   : > { %v4424_v58 = vpop.xlane.xlu1 %4423  ;;  %v4413_v39 = vpop.xlane.xlu0 %4412 }
0x1cd9   : > { %v4464_v4 = vsel %vm9829_vm2, %v4462_v2, %v4424_v58  ;;  %vm9836_vm2 = vcmask 64512   ;;  %v6310_v2 = vld [vmem:[%s9804_s3 + $0x68] sm:$0xff] }
0x1cdc   : > { %v4432_v63 = vpop.xlane.xlu1 %4431  ;;  %v4421_v13 = vpop.xlane.xlu0 %4420 }
0x1ce0   : > { %v4440_v24 = vpop.xlane.xlu1 %4439  ;;  %v4429_v11 = vpop.xlane.xlu0 %4428 }
0x1ce4   : > { %v4397_v35 = vpop.xlane.xlu1 %4396  ;;  %v4437_v21 = vpop.xlane.xlu0 %4436 }
0x1ce5   : > { %v4457_v1 = vsel %vm2246_vm15, %v4389_v36, %v4397_v35  ;;  %v4466_v36 = vsel %vm9831_vm3, %v4464_v4, %v4432_v63  ;;  %v7232_v35 = vpack.c.bf16 %v6302_v14, %v6301_v52  ;;  %vm9838_vm3 = vcmask 72704  }
0x1ce6   : > { %v4459_v43 = vsel %vm2249_vm0, %v4457_v1, %v4405_v57  ;;  %v4468_v47 = vsel %vm9833_vm8, %v4466_v36, %v4440_v24  ;;  %v6303_v24 = vld [vmem:[%s9803_s19 + $0x70] sm:$0xff] }
0x1ce7   : > { %v4461_v28 = vsel %vm2252_vm1, %v4459_v43, %v4413_v39  ;;  %v6319_v43 = vld [vmem:[%s9705_s12 + $0x70] sm:$0xff] }
0x1ce8   : > { %v4463_v37 = vsel %vm9828_vm12, %v4461_v28, %v4421_v13  ;;  %v4448_v56 = vpop.xlane.xlu1 %4447  ;;  %v4445_v27 = vpop.xlane.xlu0 %4444  ;;  %vm9835_vm12 = vmmov %vm9834_vm9  ;;  %v7252_v28 = vpack.c.bf16 %v6320_v33, %v6319_v43 }
0x1ce9   : > { %v4465_v26 = vsel %vm9830_vm4, %v4463_v37, %v4429_v11  ;;  %v4470_v58 = vsel %vm9835_vm12, %v4468_v47, %v4448_v56  ;;  %vm9837_vm4 = vmmov %vm9836_vm2  ;;  %v6311_v56 = vld [vmem:[%s9804_s3 + $0x70] sm:$0xff] }
0x1cea   : > { %v4467_v54 = vsel %vm9832_vm5, %v4465_v26, %v4437_v21  ;;  %vm9839_vm5 = vmmov %vm9838_vm3  ;;  %v6304_v21 = vld [vmem:[%s9803_s19 + $0x78] sm:$0xff] }
0x1ceb   : > { %v4469_v57 = vsel %vm9834_vm9, %v4467_v54, %v4445_v27  ;;  %v7236_v1 = vpack.c.bf16 %v6304_v21, %v6303_v24  ;;  %v6312_v27 = vld [vmem:[%s9804_s3 + $0x78] sm:$0xff]  ;;  %v6306_v54 = vld [vmem:[%s9810_s5 + $0x3] ss:$0 sm:$0xff]  ;;  %vm9850_vm12 = vmmov %vm9836_vm2 }
0x1cec   : > { %v4456_v39 = vpop.xlane.xlu1 %4455  ;;  %v4453_v13 = vpop.xlane.xlu0 %4452  ;;  %v7244_v36 = vpack.c.bf16 %v6312_v27, %v6311_v56 }
0x1ced   : > { %v4472_v63 = vsel %vm9836_vm2, %v4470_v58, %v4456_v39  ;;  %v4471_v11 = vsel %vm9837_vm4, %v4469_v57, %v4453_v13  ;;  %v6322_v58 = vld [vmem:[%s9706_s13 + $0x3] ss:$0 sm:$0xff] }
0x1cee   : > { %6812 = vmatprep.mubr.msk.f32.mxu1 %vm9838_vm3, %v4471_v11 }
0x1cef   : > { %6813 = vmatmul.mubr.msk.f32.vlgmr.msra.gmra.mrb[36].mxu1 %vm9839_vm5, %v4472_v63 }
0x1cf0   : > { %7227 = vmatpush3.bf16.msra.mxu1 %v9096_v62  ;;  %6819 = vmatprep.mubr.msk.f32.mxu1 %vm1871_vm10, %v9144_v51  ;;  %v6318_v62 = vld [vmem:[%s9705_s12 + $0x68] sm:$0xff] }
0x1cf1   : > { %7233 = vmatprep.subr.bf16.mxu1 %v7232_v35  ;;  %v7248_v51 = vpack.c.bf16 %v6318_v62, %v6317_v25 }
0x1cf7   : > { %6820 = vmatmul.mubr.msk.f32.vlgmr.msra.gmra.mrb[36].mxu1 %vm1871_vm10, %v9146_v9  ;;  %v6309_v9 = vld [vmem:[%s9804_s3 + $0x60] sm:$0xff] }
0x1cf8   : > { %7235 = vmatpush3.bf16.msra.mxu1 %v7232_v35  ;;  %6837 = vmatprep.mubr.msk.f32.mxu1 %vm924_vm7, %v9017_v59  ;;  %v7240_v37 = vpack.c.bf16 %v6310_v2, %v6309_v9 }
0x1cf9   : > { %7237 = vmatprep.subr.bf16.mxu1 %v7236_v1 }
0x1cfa   : > { %7241 = vmatprep.subr.bf16.mxu0 %v7240_v37 }
0x1cfc   : > { %7239 = vmatpush3.bf16.msra.mxu1 %v7236_v1 }
0x1cfd   : > { %7249 = vmatprep.subr.bf16.mxu1 %v7248_v51 }
0x1cff   : > { %6838 = vmatmul.mubr.msk.f32.vlgmr.msra.gmra.mrb[38].mxu1 %vm924_vm7, %v9028_v50 }
0x1d00   : > { %7251 = vmatpush3.bf16.msra.mxu1 %v7248_v51  ;;  %6859 = vmatprep.mubr.msk.f32.mxu1 %vm924_vm7, %v9017_v59 }
0x1d01   : > { %7253 = vmatprep.subr.bf16.mxu1 %v7252_v28 }
0x1d04   : > { %7255 = vmatpush3.bf16.msra.mxu1 %v7252_v28 }
0x1d07   : > { %6860 = vmatmul.mubr.msk.f32.vlgmr.msra.gmra.mrb[40].mxu1 %vm924_vm7, %v9028_v50 }
0x1dca   : > { %v6821_v4 = vpop.f32.mrb[36].mxu1 }
0x1dcb   : > { %v4629_v26 = vpop.f32.mrb[37].mxu1 }
0x1dcc   : > { %6826 = vmatprep.mubr.msk.f32.mxu0 %vm1871_vm10, %v4629_v26 }
0x1dcd   : > { %6827 = vmatmul.mubr.msk.f32.vlgmr.msra.gmra.mrb[20].mxu0 %vm1871_vm10, %v6821_v4 }
0x1dce   : > { %7243 = vmatpush3.bf16.msra.mxu0 %v7240_v37  ;;  %6848 = vmatprep.mubr.msk.f32.mxu0 %vm924_vm7, %v9017_v59 }
0x1dcf   : > { %7245 = vmatprep.subr.bf16.mxu0 %v7244_v36 }
0x1dd2   : > { %v6839_v52 = vpop.f32.mrb[38].mxu1  ;;  %7247 = vmatpush3.bf16.msra.mxu0 %v7244_v36 }
0x1dd3   : > { %v4803_v14 = vpop.f32.mrb[39].mxu1  ;;  %7258 = vmatprep.subr.msk.bf16.mxu0 %vm8307_vm11, %v9056_v29  ;;  %v4809_v11 = vadd.f32 %v6839_v52, %v6306_v54 }
0x1dd4   : > { %v4804_v47 = vadd.f32 %v6306_v54, %v4803_v14 }
0x1dd5   : > { %6849 = vmatmul.mubr.msk.f32.vlgmr.msra.gmra.mrb[22].mxu0 %vm924_vm7, %v9028_v50  ;;  %v4813_v21 = vmul.f32 0.25, %v4809_v11 }
0x1dd6   : > { %v4812_v57 = vmul.f32 0.25, %v4804_v47 }
0x1dd8   : > { %6866 = vmatprep.mubr.msk.f32.mxu0 %vm1871_vm10, %v4812_v57  ;;  %6873 = vmatprep.mubr.msk.f32.mxu1 %vm1871_vm10, %v4812_v57 }
0x1dda   : > { %v6861_v39 = vpop.f32.mrb[40].mxu1 }
0x1ddb   : > { %v4987_v13 = vadd.f32 %v6861_v39, %v6322_v58  ;;  %v4981_v63 = vpop.f32.mrb[41].mxu1  ;;  %7261 = vmatpush3.bf16.xpose.msk.msra.mxu0 %vm8307_vm11, %v9056_v29  ;;  %v6314_v29 = vld [vmem:[%s9704_s11 + $0x3] ss:$0 sm:$0xff] }
0x1ddc   : > { %v4982_v35 = vadd.f32 %v6322_v58, %v4981_v63  ;;  %7270 = vmatprep.subr.msk.bf16.mxu0 %vm8328_vm14, %v9072_v15 }
0x1dde   : > { %v9298_v24 = vpack.c.bf16 %v4987_v13, %v4982_v35 }
0x1de2   : > { %6867 = vmatmul.mubr.msk.f32.vlgmr.msra.gmra.mrb[24].mxu0 %vm1871_vm10, %v4813_v21 }
0x1de3   : > { %7273 = vmatpush3.bf16.msk.msra.mxu0 %vm8328_vm14, %v9072_v15 }
0x1de4   : > { %7275 = vmatprep.subr.bf16.mxu0 %v9298_v24 }
0x1ea8   : > { %v6850_v1 = vpop.f32.mrb[22].mxu0 }
0x1ea9   : > { %v4899_v25 = vadd.f32 %v6850_v1, %v6314_v29  ;;  %v4893_v62 = vpop.f32.mrb[23].mxu0 }
0x1eaa   : > { %v4894_v51 = vadd.f32 %v6314_v29, %v4893_v62 }
0x1eac   : > { %v7262_v43 = vpack.c.bf16 %v4899_v25, %v4894_v51 }
0x1eae   : > { %7264 = vmatprep.subr.msk.bf16.mxu1 %vm8307_vm11, %v7262_v43 }
0x1eaf   : > { %7267 = vmatpush3.bf16.xpose.msk.msra.mxu1 %vm8307_vm11, %v7262_v43  ;;  %vm9842_vm11 = vcmask 31744  }
0x1eb0   : > { %vm9843_vm14 = vmmov %vm9842_vm11 }
0x1eb5   : > { %v6868_v33 = vpop.f32.mrb[24].mxu0 }
0x1eb6   : > { %5217 = vperm.xlu0 %7474, %v6868_v33   ;;  %5078 = vperm.xlu1 %7469, %v6868_v33   ;;  %v5062_v44 = vpop.f32.mrb[25].mxu0 }
0x1eb7   : > { %6874 = vmatmul.mubr.msk.f32.vlgmr.msra.gmra.mrb[42].mxu1 %vm1871_vm10, %v4813_v21 }
0x1eba   : > { %7477 = vset.pattern.permute.xlu0 %v7633_v46  ;;  %7470 = vset.pattern.permute.xlu1 %v7632_v45  ;;  %v9841_v46 = vmov 5  }
0x1ebb   : > { %5169 = vperm.xlu1 %7470, %v6868_v33   ;;  %5073 = vperm.xlu0 %7477, %v5062_v44  }
0x1ebf   : > { %7471 = vset.pattern.permute.xlu1 %v7634_v7  ;;  %7481 = vset.pattern.permute.xlu0 %v7638_v19 }
0x1ec0   : > { %5181 = vperm.xlu1 %7471, %v6868_v33   ;;  %5201 = vperm.xlu0 %7481, %v5062_v44  }
0x1ec4   : > { %7472 = vset.pattern.permute.xlu1 %v7636_v10  ;;  %7484 = vset.pattern.permute.xlu0 %v7640_v22 }
0x1ec5   : > { %5193 = vperm.xlu1 %7472, %v6868_v33   ;;  %5237 = vperm.xlu0 %7484, %v5062_v44  }
0x1ec9   : > { %7473 = vset.pattern.permute.xlu1 %v7638_v19  ;;  %7486 = vset.pattern.permute.xlu0 %v7639_v20 }
0x1eca   : > { %5205 = vperm.xlu1 %7473, %v6868_v33   ;;  %5253 = vperm.xlu0 %7486, %v6868_v33  }
0x1ece   : > { %7475 = vset.pattern.permute.xlu1 %v9840_v40 }
0x1ecf   : > { %5229 = vperm.xlu1 %7475, %v6868_v33  }
0x1ed3   : > { %7476 = vset.pattern.permute.xlu1 %v7640_v22 }
0x1ed4   : > { %5241 = vperm.xlu1 %7476, %v6868_v33  }
0x1ed8   : > { %7478 = vset.pattern.permute.xlu1 %v7632_v45 }
0x1ed9   : > { %5165 = vperm.xlu1 %7478, %v5062_v44  }
0x1edd   : > { %7479 = vset.pattern.permute.xlu1 %v7634_v7 }
0x1ede   : > { %5177 = vperm.xlu1 %7479, %v5062_v44  }
0x1ee2   : > { %7480 = vset.pattern.permute.xlu1 %v7636_v10 }
0x1ee3   : > { %5189 = vperm.xlu1 %7480, %v5062_v44  }
0x1ee7   : > { %7482 = vset.pattern.permute.xlu1 %v9841_v46 }
0x1ee8   : > { %5213 = vperm.xlu1 %7482, %v5062_v44  }
0x1eec   : > { %7483 = vset.pattern.permute.xlu1 %v9840_v40 }
0x1eed   : > { %5225 = vperm.xlu1 %7483, %v5062_v44  }
0x1ef1   : > { %7485 = vset.pattern.permute.xlu1 %v7639_v20 }
0x1ef2   : > { %5249 = vperm.xlu1 %7485, %v5062_v44  }
0x1f35   : > { %v5079_v19 = vpop.permute.xlu1 %5078  ;;  %v5218_v37 = vpop.permute.xlu0 %5217 }
0x1f36   : > { %v5082_v4 = vmul.f32 %v8394_v34, %v5079_v19  ;;  %v5221_v40 = vmul.f32 %v8442_v5, %v5218_v37 }
0x1f3a   : > { %v5170_v22 = vpop.permute.xlu1 %5169  ;;  %v5074_v56 = vpop.permute.xlu0 %5073 }
0x1f3b   : > { %v5081_v26 = vmul.f32 %v8398_v0, %v5074_v56  ;;  %v5173_v20 = vmul.f32 %v8413_v41, %v5170_v22 }
0x1f3f   : > { %v5182_v15 = vpop.permute.xlu1 %5181  ;;  %v5202_v36 = vpop.permute.xlu0 %5201 }
0x1f40   : > { %v5185_v39 = vmul.f32 %v8421_v49, %v5182_v15  ;;  %v5208_v33 = vmul.f32 %v8434_v60, %v5202_v36 }
0x1f44   : > { %v5194_v45 = vpop.permute.xlu1 %5193  ;;  %v5238_v29 = vpop.permute.xlu0 %5237 }
0x1f45   : > { %v5197_v35 = vmul.f32 %v8428_v55, %v5194_v45 }
0x1f49   : > { %v5206_v28 = vpop.permute.xlu1 %5205 }
0x1f4a   : > { %v5209_v62 = vmul.f32 %v8438_v61, %v5206_v28 }
0x1f4e   : > { %v5230_v9 = vpop.permute.xlu1 %5229 }
0x1f4f   : > { %v5233_v15 = vmul.f32 %v8460_v42, %v5230_v9 }
0x1f53   : > { %v5242_v7 = vpop.permute.xlu1 %5241 }
0x1f54   : > { %v5245_v28 = vmul.f32 %v8470_v30, %v5242_v7 }
0x1f58   : > { %v5166_v2 = vpop.permute.xlu1 %5165 }
0x1f59   : > { %v5172_v57 = vmul.f32 %v8404_v8, %v5166_v2  ;;  %v5254_v2 = vpop.permute.xlu0 %5253 }
0x1f5a   : > { %v5257_v37 = vmul.f32 %v8485_v6, %v5254_v2 }
0x1f5d   : > { %v5178_v10 = vpop.permute.xlu1 %5177 }
0x1f5e   : > { %v5184_v63 = vmul.f32 %v8410_v38, %v5178_v10 }
0x1f62   : > { %v5190_v27 = vpop.permute.xlu1 %5189 }
0x1f63   : > { %v5196_v1 = vmul.f32 %v8418_v48, %v5190_v27 }
0x1f67   : > { %v5214_v52 = vpop.permute.xlu1 %5213 }
0x1f68   : > { %v5220_v19 = vmul.f32 %v8447_v23, %v5214_v52 }
0x1f6c   : > { %v5226_v51 = vpop.permute.xlu1 %5225 }
0x1f6d   : > { %v5232_v10 = vmul.f32 %v8453_v3, %v5226_v51 }
0x1f71   : > { %v5250_v27 = vpop.permute.xlu1 %5249 }
0x1f8a   : > { %v6875_v54 = vpop.f32.mrb[42].mxu1 }
0x1f8b   : > { %v5161_v14 = vadd.f32 %v6875_v54, %v5082_v4  ;;  %v5155_v47 = vpop.f32.mrb[43].mxu1 }
0x1f8c   : > { %v5156_v58 = vadd.f32 %v5155_v47, %v5081_v26  ;;  %v5244_v26 = vmul.f32 %v8467_v12, %v5238_v29 }
0x1f8d   : > { %v5175_v13 = vadd.f32 %v5173_v20, %v5161_v14  ;;  %v5256_v20 = vmul.f32 %v8474_v53, %v5250_v27 }
0x1f8e   : > { %v5174_v11 = vadd.f32 %v5172_v57, %v5156_v58 }
0x1f8f   : > { %v5187_v21 = vadd.f32 %v5185_v39, %v5175_v13 }
0x1f90   : > { %v5186_v25 = vadd.f32 %v5184_v63, %v5174_v11 }
0x1f91   : > { %v5199_v43 = vadd.f32 %v5197_v35, %v5187_v21 }
0x1f92   : > { %v5198_v44 = vadd.f32 %v5196_v1, %v5186_v25 }
0x1f93   : > { %v5211_v46 = vadd.f32 %v5209_v62, %v5199_v43 }
0x1f94   : > { %v5210_v22 = vadd.f32 %v5208_v33, %v5198_v44 }
0x1f95   : > { %v5223_v45 = vadd.f32 %v5221_v40, %v5211_v46 }
0x1f96   : > { %v5222_v56 = vadd.f32 %v5220_v19, %v5210_v22 }
0x1f97   : > { %v5235_v4 = vadd.f32 %v5233_v15, %v5223_v45 }
0x1f98   : > { %v5234_v36 = vadd.f32 %v5232_v10, %v5222_v56 }
0x1f99   : > { %v5247_v54 = vadd.f32 %v5245_v28, %v5235_v4 }
0x1f9a   : > { %v5246_v52 = vadd.f32 %v5244_v26, %v5234_v36 }
0x1f9b   : > { %v5259_v14 = vadd.f32 %v5257_v37, %v5247_v54 }
0x1f9c   : > { %v5258_v9 = vadd.f32 %v5256_v20, %v5246_v52 }
0x1f9d   : > { %v5261_v47 = vsel %vm2149_vm13, -10000.0, %v5259_v14 }
0x1f9e   : > { %v5265_v57 = vsel %vm1871_vm10, %v5261_v47, -inf  ;;  %v5260_v7 = vsel %vm2148_vm6, -10000.0, %v5258_v9  ;;  %vm9844_vm6 = vcmask 39936  }
0x1f9f   : > { %5266 = vmax.xlane.f32.xlu0 %v5265_v57  ;;  %v5262_v58 = vsel %vm1871_vm10, %v5260_v7, -inf  ;;  %vm9845_vm13 = vmmov %vm9844_vm6 }
0x1fa0   : > { %5263 = vmax.xlane.f32.xlu1 %v5262_v58 }
0x202c   : > { %v5267_v39 = vpop.xlane.xlu0 %5266 }
0x202d   : > { %v5269_v13 = vsub.f32 %v5261_v47, %v5267_v39  ;;  %v5264_v63 = vpop.xlane.xlu1 %5263 }
0x202e   : > { %v5268_v11 = vsub.f32 %v5260_v7, %v5264_v63 }
0x202f   : > { %v5272_v35 = vmul.f32 1.442695, %v5269_v13 }
0x2030   : > { %v5270_v21 = vmul.f32 1.442695, %v5268_v11 }
0x2031   : > { %7531 = vpow2.f32 %v5272_v35 }
0x2032   : > { %7533 = vpow2.f32 %v5270_v21 }
0x203b   : > { %v7532_v29 = vpop.eup %7531 }
0x203c   : > { %v7534_v18 = vpop.eup %7533  ;;  %v5277_v1 = vsel %vm1871_vm10, %v7532_v29, 0.0 }
0x203d   : > { %5278 = vadd.xlane.f32.xlu0 %v5277_v1  ;;  %v5274_v32 = vsel %vm1871_vm10, %v7534_v18, 0.0 }
0x203e   : > { %5275 = vadd.xlane.f32.xlu1 %v5274_v32 }
0x20ca   : > { %v5279_v25 = vpop.xlane.xlu0 %5278 }
0x20cb   : > { %7535 = vrcp.f32 %v5279_v25  ;;  %v5276_v62 = vpop.xlane.xlu1 %5275 }
0x20cc   : > { %7537 = vrcp.f32 %v5276_v62 }
0x20d5   : > { %v7536_v51 = vpop.eup %7535 }
0x20d6   : > { %v7538_v43 = vpop.eup %7537  ;;  %v9355_v33 = vmul.f32 %v7536_v51, %v7532_v29 }
0x20d7   : > { %v9357_v44 = vmul.f32 %v7538_v43, %v7534_v18 }
0x20d8   : > { %v5293_v40 = vmul.f32 %v8413_v41, %v9355_v33  ;;  %v5285_v46 = vmul.f32 %v8394_v34, %v9355_v33  ;;  %v5301_v15 = vmul.f32 %v8421_v49, %v9355_v33  ;;  %v5309_v41 = vmul.f32 %v8428_v55, %v9355_v33 }
0x20d9   : > { %v5284_v45 = vmul.f32 %v8398_v0, %v9357_v44  ;;  %v5300_v34 = vmul.f32 %v8410_v38, %v9357_v44  ;;  %v5317_v0 = vmul.f32 %v8438_v61, %v9355_v33  ;;  %v5308_v28 = vmul.f32 %v8418_v48, %v9357_v44 }
0x20da   : > { %v5297_v19 = vsel %vm1871_vm10, %v5293_v40, 0.0  ;;  %v5289_v22 = vsel %vm1871_vm10, %v5285_v46, 0.0  ;;  %v5305_v2 = vsel %vm1871_vm10, %v5301_v15, 0.0  ;;  %v5313_v56 = vsel %vm1871_vm10, %v5309_v41, 0.0  ;;  %v6339_v41 = vld [vmem:[%s9707_s14 + $0x38] sm:$0xff] }
0x20db   : > { %5298 = vadd.xlane.f32.xlu0 %v5297_v19  ;;  %5290 = vadd.xlane.f32.xlu1 %v5289_v22  ;;  %v5286_v10 = vsel %vm1871_vm10, %v5284_v45, 0.0  ;;  %v5302_v49 = vsel %vm1871_vm10, %v5300_v34, 0.0  ;;  %v5321_v27 = vsel %vm1871_vm10, %v5317_v0, 0.0  ;;  %v5310_v55 = vsel %vm1871_vm10, %v5308_v28, 0.0 }
0x20dc   : > { %v5325_v38 = vmul.f32 %v8442_v5, %v9355_v33  ;;  %v5316_v4 = vmul.f32 %v8434_v60, %v9357_v44  ;;  %v5333_v48 = vmul.f32 %v8460_v42, %v9355_v33  ;;  %v5324_v36 = vmul.f32 %v8447_v23, %v9357_v44 }
0x20dd   : > { %v5292_v60 = vmul.f32 %v8404_v8, %v9357_v44  ;;  %v5332_v54 = vmul.f32 %v8453_v3, %v9357_v44  ;;  %v5341_v23 = vmul.f32 %v8470_v30, %v9355_v33  ;;  %v5340_v52 = vmul.f32 %v8467_v12, %v9357_v44 }
0x20de   : > { %v5329_v26 = vsel %vm1871_vm10, %v5325_v38, 0.0  ;;  %v5318_v61 = vsel %vm1871_vm10, %v5316_v4, 0.0  ;;  %v5337_v37 = vsel %vm1871_vm10, %v5333_v48, 0.0  ;;  %v5326_v5 = vsel %vm1871_vm10, %v5324_v36, 0.0 }
0x20df   : > { %5306 = vadd.xlane.f32.xlu0 %v5305_v2  ;;  %5287 = vadd.xlane.f32.xlu1 %v5286_v10  ;;  %v5294_v20 = vsel %vm1871_vm10, %v5292_v60, 0.0  ;;  %v5334_v42 = vsel %vm1871_vm10, %v5332_v54, 0.0  ;;  %v5345_v14 = vsel %vm1871_vm10, %v5341_v23, 0.0  ;;  %v5342_v8 = vsel %vm1871_vm10, %v5340_v52, 0.0  ;;  %v6338_v10 = vld [vmem:[%s9707_s14 + $0x30] sm:$0xff] }
0x20e0   : > { %v5349_v3 = vmul.f32 %v8485_v6, %v9355_v33  ;;  %v5348_v9 = vmul.f32 %v8474_v53, %v9357_v44  ;;  %v7278_v38 = vpack.c.bf16 %v6339_v41, %v6338_v10 }
0x20e2   : > { %v5353_v47 = vsel %vm1871_vm10, %v5349_v3, 0.0  ;;  %v5350_v30 = vsel %vm1871_vm10, %v5348_v9, 0.0 }
0x20e3   : > { %5314 = vadd.xlane.f32.xlu0 %v5313_v56  ;;  %5303 = vadd.xlane.f32.xlu1 %v5302_v49 }
0x20e7   : > { %5322 = vadd.xlane.f32.xlu0 %v5321_v27  ;;  %5311 = vadd.xlane.f32.xlu1 %v5310_v55 }
0x20eb   : > { %5330 = vadd.xlane.f32.xlu0 %v5329_v26  ;;  %5319 = vadd.xlane.f32.xlu1 %v5318_v61 }
0x20ef   : > { %5338 = vadd.xlane.f32.xlu0 %v5337_v37  ;;  %5327 = vadd.xlane.f32.xlu1 %v5326_v5 }
0x20f3   : > { %5295 = vadd.xlane.f32.xlu0 %v5294_v20  ;;  %5335 = vadd.xlane.f32.xlu1 %v5334_v42 }
0x20f7   : > { %5346 = vadd.xlane.f32.xlu0 %v5345_v14  ;;  %5343 = vadd.xlane.f32.xlu1 %v5342_v8 }
0x20fb   : > { %5354 = vadd.xlane.f32.xlu0 %v5353_v47  ;;  %5351 = vadd.xlane.f32.xlu1 %v5350_v30  ;;  %v6347_v47 = vld [vmem:[%s9713_s20 + $0x68] sm:$0xff]  ;;  %v6348_v30 = vld [vmem:[%s9713_s20 + $0x70] sm:$0xff] }
0x2168   : > { %v5299_v12 = vpop.xlane.xlu0 %5298  ;;  %v5291_v57 = vpop.xlane.xlu1 %5290 }
0x2169   : > { %v5357_v32 = vsel %vm2246_vm15, %v5291_v57, %v5299_v12  ;;  %v6349_v57 = vld [vmem:[%s9713_s20 + $0x78] sm:$0xff] }
0x216c   : > { %v5307_v7 = vpop.xlane.xlu0 %5306  ;;  %v5288_v58 = vpop.xlane.xlu1 %5287 }
0x216d   : > { %v5359_v62 = vsel %vm2249_vm0, %v5357_v32, %v5307_v7  ;;  %v7286_v7 = vpack.c.bf16 %v6349_v57, %v6348_v30  ;;  %v6365_v30 = vld [vmem:[%s9715_s22 + $0xd8] sm:$0xff]  ;;  %v6366_v57 = vld [vmem:[%s9715_s22 + $0xe0] sm:$0xff] }
0x2170   : > { %v5315_v39 = vpop.xlane.xlu0 %5314  ;;  %v5304_v13 = vpop.xlane.xlu1 %5303 }
0x2171   : > { %v5361_v43 = vsel %vm2252_vm1, %v5359_v62, %v5315_v39  ;;  %v6351_v39 = vld [vmem:[%s9713_s20 + $0x88] sm:$0xff] }
0x2174   : > { %v5323_v63 = vpop.xlane.xlu0 %5322  ;;  %v5312_v11 = vpop.xlane.xlu1 %5311 }
0x2175   : > { %v5363_v22 = vsel %vm9843_vm14, %v5361_v43, %v5323_v63  ;;  %v6352_v63 = vld [vmem:[%s9713_s20 + $0x90] sm:$0xff] }
0x2178   : > { %v5331_v6 = vpop.xlane.xlu0 %5330  ;;  %v5320_v35 = vpop.xlane.xlu1 %5319 }
0x2179   : > { %v5365_v45 = vsel %vm9845_vm13, %v5363_v22, %v5331_v6  ;;  %v6355_v22 = vld [vmem:[%s9713_s20 + $0xa8] sm:$0xff] }
0x217c   : > { %v5339_v21 = vpop.xlane.xlu0 %5338  ;;  %v5328_v53 = vpop.xlane.xlu1 %5327 }
0x2180   : > { %v5296_v29 = vpop.xlane.xlu0 %5295  ;;  %v5336_v18 = vpop.xlane.xlu1 %5335 }
0x2181   : > { %v5356_v1 = vsel %vm2246_vm15, %v5288_v58, %v5296_v29  ;;  %vm9846_vm15 = vmmov %vm9833_vm8  ;;  %v6350_v58 = vld [vmem:[%s9713_s20 + $0x80] sm:$0xff] }
0x2182   : > { %v5358_v25 = vsel %vm2249_vm0, %v5356_v1, %v5304_v13  ;;  %v5367_v34 = vsel %vm9846_vm15, %v5365_v45, %v5339_v21  ;;  %vm9847_vm0 = vmmov %vm9834_vm9  ;;  %v7290_v13 = vpack.c.bf16 %v6351_v39, %v6350_v58  ;;  %vm9861_vm15 = vcmask 785408   ;;  %v6368_v39 = vld [vmem:[%s9715_s22 + $0xf0] sm:$0xff] }
0x2183   : > { %v5360_v51 = vsel %vm2252_vm1, %v5358_v25, %v5312_v11  ;;  %vm9848_vm1 = vmmov %vm9847_vm0  ;;  %v6353_v11 = vld [vmem:[%s9713_s20 + $0x98] sm:$0xff]  ;;  %v6344_v25 = vld [vmem:[%s9711_s18 + $0x1] ss:$0 sm:$0xff] }
0x2184   : > { %v5362_v40 = vsel %vm9842_vm11, %v5360_v51, %v5320_v35  ;;  %v5347_v46 = vpop.xlane.xlu0 %5346  ;;  %v5344_v19 = vpop.xlane.xlu1 %5343  ;;  %vm9849_vm9 = vmmov %vm9836_vm2  ;;  %v7294_v6 = vpack.c.bf16 %v6353_v11, %v6352_v63  ;;  %vm9856_vm11 = vcmask 1046528   ;;  %v6370_v11 = vld [vmem:[%s9715_s22 + $0x100] sm:$0xff] }
0x2185   : > { %v5364_v15 = vsel %vm9844_vm6, %v5362_v40, %v5328_v53  ;;  %v5369_v49 = vsel %vm9848_vm1, %v5367_v34, %v5347_v46  ;;  %vm9851_vm2 = vmmov %vm9838_vm3  ;;  %v6345_v40 = vld [vmem:[%s9813_s26 + $0x1] ss:$0 sm:$0xff]  ;;  %v6356_v34 = vld [vmem:[%s9713_s20 + $0xb0] sm:$0xff]  ;;  %vm9858_vm6 = vcmask 1045504  }
0x2186   : > { %v5366_v2 = vsel %vm9833_vm8, %v5364_v15, %v5336_v18  ;;  %vm9852_vm4 = vmmov %vm9851_vm2  ;;  %vm9860_vm8 = vcmask 523264  }
0x2187   : > { %v5368_v56 = vsel %vm9847_vm0, %v5366_v2, %v5344_v19  ;;  %v6354_v19 = vld [vmem:[%s9713_s20 + $0xa0] sm:$0xff]  ;;  %vm9857_vm14 = vmmov %vm9856_vm11 }
0x2188   : > { %v5355_v0 = vpop.xlane.xlu0 %5354  ;;  %v5352_v28 = vpop.xlane.xlu1 %5351  ;;  %v7298_v45 = vpack.c.bf16 %v6355_v22, %v6354_v19  ;;  %vm9859_vm13 = vmmov %vm9858_vm6  ;;  %v6380_v19 = vld [vmem:[%s9715_s22 + $0x150] sm:$0xff]  ;;  %v6381_v22 = vld [vmem:[%s9715_s22 + $0x158] sm:$0xff] }
0x2189   : > { %v5371_v27 = vsel %vm9849_vm9, %v5369_v49, %v5355_v0  ;;  %v5370_v55 = vsel %vm9850_vm12, %v5368_v56, %v5352_v28  ;;  %v6357_v56 = vld [vmem:[%s9713_s20 + $0xb8] sm:$0xff]  ;;  %vm9862_vm0 = vmmov %vm9860_vm8 }
0x218a   : > { %6880 = vmatprep.mubr.msk.f32.mxu0 %vm9851_vm2, %v5370_v55  ;;  %v7302_v0 = vpack.c.bf16 %v6357_v56, %v6356_v34  ;;  %vm9863_vm1 = vmmov %vm9861_vm15  ;;  %v6384_v56 = vld [vmem:[%s9715_s22 + $0x170] sm:$0xff] }
0x218b   : > { %6881 = vmatmul.mubr.msk.f32.vlgmr.msra.gmra.mrb[26].mxu0 %vm9852_vm4, %v5371_v27  ;;  %vm9867_vm4 = vmmov %vm9858_vm6 }
0x218c   : > { %7277 = vmatpush3.bf16.msra.mxu0 %v9298_v24  ;;  %6887 = vmatprep.mubr.msk.f32.mxu0 %vm1871_vm10, %v9357_v44  ;;  %v6259_v24 = vld [vmem:[%s9708_s15 + $0x1] ss:$0 sm:$0xff] }
0x218d   : > { %7279 = vmatprep.subr.bf16.mxu0 %v7278_v38 }
0x2193   : > { %6888 = vmatmul.mubr.msk.f32.vlgmr.msra.gmra.mrb[26].mxu0 %vm1871_vm10, %v9355_v33 }
0x2194   : > { %7281 = vmatpush3.bf16.msra.mxu0 %v7278_v38 }
0x2195   : > { %7306 = vmatprep.subr.bf16.mxu0 %v9811_v31 }
0x2266   : > { %v6889_v4 = vpop.f32.mrb[26].mxu0 }
0x2267   : > { %v5525_v26 = vpop.f32.mrb[27].mxu0 }
0x2268   : > { %6894 = vmatprep.mubr.msk.f32.mxu0 %vm1871_vm10, %v5525_v26 }
0x2269   : > { %6895 = vmatmul.mubr.msk.f32.vlgmr.msra.gmra.mrb[20].mxu0 %vm1871_vm10, %v6889_v4  ;;  %vm9853_vm10 = vcmask 1040384  }
0x226a   : > { %vm9854_vm3 = vmmov %vm9853_vm10 }
0x226b   : > { %vm9855_vm5 = vmmov %vm9854_vm3 }
0x226c   : > { %vm9864_vm9 = vmmov %vm9854_vm3 }
0x226d   : > { %vm9865_vm12 = vmmov %vm9854_vm3 }
0x226e   : > { %vm9866_vm2 = vmmov %vm9854_vm3 }
0x233c   : > { %v6896_v61 = vpop.f32.mrb[20].mxu0 }
0x233d   : > { %v7344_v48 = vadd.f32 %v6896_v61, %v6259_v24  ;;  %v5609_v44 = vpop.f32.mrb[21].mxu0 }
0x233e   : > { %v7345_v36 = vadd.f32 %v6259_v24, %v5609_v44 }
0x233f   : > { %v5621_v37 = vadd.f32 %v7344_v48, %v9028_v50 }
0x2340   : > { %v5620_v33 = vadd.f32 %v7345_v36, %v9017_v59  ;;  %v6346_v59 = vld [vmem:[%s9713_s20 + $0x60] sm:$0xff] }
0x2341   : > { %v5629_v5 = vsel %vm924_vm7, %v5621_v37, 0.0  ;;  %v7282_v12 = vpack.c.bf16 %v6347_v47, %v6346_v59  ;;  %v6364_v59 = vld [vmem:[%s9715_s22 + $0xd0] sm:$0xff] }
0x2342   : > { %5630 = vadd.xlane.f32.xlu0 %v5629_v5  ;;  %v5626_v60 = vsel %vm924_vm7, %v5620_v33, 0.0 }
0x2343   : > { %5627 = vadd.xlane.f32.xlu1 %v5626_v60  ;;  %7283 = vmatprep.subr.bf16.mxu1 %v7282_v12 }
0x2344   : > { %7285 = vmatpush3.bf16.msra.mxu1 %v7282_v12  ;;  %v7310_v12 = vpack.c.bf16 %v6365_v30, %v6364_v59  ;;  %v6387_v30 = vld [vmem:[%s9716_s23 + $0x1] ss:$0 sm:$0xff] }
0x2345   : > { %7287 = vmatprep.subr.bf16.mxu1 %v7286_v7 }
0x2348   : > { %7289 = vmatpush3.bf16.msra.mxu1 %v7286_v7  ;;  %v6367_v7 = vld [vmem:[%s9715_s22 + $0xe8] sm:$0xff] }
0x2349   : > { %7291 = vmatprep.subr.bf16.mxu1 %v7290_v13  ;;  %v7313_v58 = vpack.c.bf16 %v6367_v7, %v6366_v57 }
0x234c   : > { %7293 = vmatpush3.bf16.msra.mxu1 %v7290_v13  ;;  %v6369_v13 = vld [vmem:[%s9715_s22 + $0xf8] sm:$0xff] }
0x234d   : > { %7295 = vmatprep.subr.bf16.mxu1 %v7294_v6  ;;  %v7316_v63 = vpack.c.bf16 %v6369_v13, %v6368_v39 }
0x2350   : > { %7297 = vmatpush3.bf16.msra.mxu1 %v7294_v6  ;;  %v6371_v6 = vld [vmem:[%s9715_s22 + $0x108] sm:$0xff] }
0x2351   : > { %7299 = vmatprep.subr.bf16.mxu1 %v7298_v45 }
0x2354   : > { %7301 = vmatpush3.bf16.msra.mxu1 %v7298_v45  ;;  %v6382_v45 = vld [vmem:[%s9715_s22 + $0x160] sm:$0xff] }
0x2355   : > { %7303 = vmatprep.subr.bf16.mxu1 %v7302_v0 }
0x2358   : > { %7305 = vmatpush3.bf16.msra.mxu1 %v7302_v0 }
0x23cf   : > { %v5631_v54 = vpop.xlane.xlu0 %5630 }
0x23d0   : > { %v5633_v20 = vmul.f32 0.03125, %v5631_v54  ;;  %v5628_v42 = vpop.xlane.xlu1 %5627 }
0x23d1   : > { %v5632_v23 = vmul.f32 0.03125, %v5628_v42 }
0x23d2   : > { %v5635_v52 = vsub.f32 %v5621_v37, %v5633_v20 }
0x23d3   : > { %v5634_v14 = vsub.f32 %v5620_v33, %v5632_v23 }
0x23d4   : > { %v5637_v8 = vmul.f32 %v5635_v52, %v5635_v52 }
0x23d5   : > { %v5636_v3 = vmul.f32 %v5634_v14, %v5634_v14 }
0x23d6   : > { %v5641_v9 = vsel %vm924_vm7, %v5637_v8, 0.0 }
0x23d7   : > { %5642 = vadd.xlane.f32.xlu0 %v5641_v9  ;;  %v5638_v50 = vsel %vm924_vm7, %v5636_v3, 0.0  ;;  %v6362_v9 = vld [vmem:[%s9715_s22 + $0xc0] sm:$0xff] }
0x23d8   : > { %5639 = vadd.xlane.f32.xlu1 %v5638_v50  ;;  %v6363_v50 = vld [vmem:[%s9715_s22 + $0xc8] sm:$0xff] }
0x23d9   : > { %v7307_v47 = vpack.c.bf16 %v6363_v50, %v6362_v9 }
0x23db   : > { %7308 = vmatpush1.bf16.msra.mxu0 %v7307_v47 }
0x23dc   : > { %7309 = vmatprep.subr.bf16.mxu0 %v9811_v31 }
0x23df   : > { %7311 = vmatpush1.bf16.msra.mxu0 %v7310_v12 }
0x23e0   : > { %7312 = vmatprep.subr.bf16.mxu0 %v9811_v31 }
0x23e3   : > { %7314 = vmatpush1.bf16.msra.mxu0 %v7313_v58 }
0x23e4   : > { %7315 = vmatprep.subr.bf16.mxu0 %v9811_v31 }
0x23e7   : > { %7317 = vmatpush1.bf16.msra.mxu0 %v7316_v63 }
0x23e8   : > { %7318 = vmatprep.subr.bf16.mxu0 %v9811_v31 }
0x2464   : > { %v5643_v35 = vpop.xlane.xlu0 %5642 }
0x2465   : > { %v5645_v21 = vmul.f32 0.03125, %v5643_v35  ;;  %v5640_v53 = vpop.xlane.xlu1 %5639  ;;  %v7319_v35 = vpack.c.bf16 %v6371_v6, %v6370_v11 }
0x2466   : > { %v5644_v29 = vmul.f32 0.03125, %v5640_v53  ;;  %v6373_v53 = vld [vmem:[%s9715_s22 + $0x118] sm:$0xff] }
0x2467   : > { %v5647_v18 = vadd.f32 0.0001, %v5645_v21  ;;  %v6372_v21 = vld [vmem:[%s9715_s22 + $0x110] sm:$0xff]  ;;  %7320 = vmatpush1.bf16.msra.mxu0 %v7319_v35 }
0x2468   : > { %v5646_v1 = vadd.f32 0.0001, %v5644_v29  ;;  %v7322_v29 = vpack.c.bf16 %v6373_v53, %v6372_v21  ;;  %7321 = vmatprep.subr.bf16.mxu0 %v9811_v31 }
0x2469   : > { %7539 = vrsqrt.f32 %v5647_v18  ;;  %v6374_v18 = vld [vmem:[%s9715_s22 + $0x120] sm:$0xff] }
0x246a   : > { %7541 = vrsqrt.f32 %v5646_v1  ;;  %v6375_v1 = vld [vmem:[%s9715_s22 + $0x128] sm:$0xff] }
0x246b   : > { %7323 = vmatpush1.bf16.msra.mxu0 %v7322_v29 }
0x246c   : > { %7324 = vmatprep.subr.bf16.mxu0 %v9811_v31 }
0x2473   : > { %v7540_v32 = vpop.eup %7539 }
0x2474   : > { %v7542_v62 = vpop.eup %7541  ;;  %v5651_v51 = vmul.f32 %v7540_v32, %v5635_v52  ;;  %v7325_v32 = vpack.c.bf16 %v6375_v1, %v6374_v18 }
0x2475   : > { %v5650_v43 = vmul.f32 %v7542_v62, %v5634_v14  ;;  %v6377_v62 = vld [vmem:[%s9715_s22 + $0x138] sm:$0xff] }
0x2476   : > { %v5659_v46 = vmul.f32 %v6344_v25, %v5651_v51  ;;  %7326 = vmatpush1.bf16.msra.mxu0 %v7325_v32 }
0x2477   : > { %v5658_v15 = vmul.f32 %v6344_v25, %v5650_v43  ;;  %v6376_v25 = vld [vmem:[%s9715_s22 + $0x130] sm:$0xff]  ;;  %7327 = vmatprep.subr.bf16.mxu0 %v9811_v31  ;;  %v6378_v43 = vld [vmem:[%s9715_s22 + $0x140] sm:$0xff] }
0x2478   : > { %v9490_v2 = vadd.f32 %v6345_v40, %v5659_v46  ;;  %v7328_v51 = vpack.c.bf16 %v6377_v62, %v6376_v25 }
0x2479   : > { %v9492_v10 = vadd.f32 %v6345_v40, %v5658_v15  ;;  %v6379_v40 = vld [vmem:[%s9715_s22 + $0x148] sm:$0xff]  ;;  %v7334_v15 = vpack.c.bf16 %v6381_v22, %v6380_v19 }
0x247a   : > { %v5669_v41 = vmul.f32 %v7877_v17, %v9490_v2  ;;  %7329 = vmatpush1.bf16.msra.mxu0 %v7328_v51  ;;  %v7331_v46 = vpack.c.bf16 %v6379_v40, %v6378_v43 }
0x247b   : > { %v5668_v49 = vmul.f32 %v7874_v16, %v9492_v10  ;;  %7330 = vmatprep.subr.bf16.mxu0 %v9811_v31 }
0x247c   : > { %v5688_v28 = vrot.slane %v5669_v41, 7  ;;  %v6383_v41 = vld [vmem:[%s9715_s22 + $0x168] sm:$0xff] }
0x247d   : > { %v5687_v27 = vrot.slane %v5668_v49, 7  ;;  %v7337_v34 = vpack.c.bf16 %v6383_v41, %v6382_v45  ;;  %v6385_v49 = vld [vmem:[%s9715_s22 + $0x178] sm:$0xff] }
0x247e   : > { %v5694_v55 = vsel %vm9853_vm10, %v5688_v28, 0.0  ;;  %7332 = vmatpush1.bf16.msra.mxu0 %v7331_v46  ;;  %v7340_v0 = vpack.c.bf16 %v6385_v49, %v6384_v56  ;;  %vm9868_vm10 = vmmov %vm9856_vm11  ;;  %v6393_v49 = vld [vmem:[%s9718_s25 + $0x1] ss:$0 sm:$0xff] }
0x247f   : > { %v5689_v38 = vsel %vm9854_vm3, %v5687_v27, %v5688_v28  ;;  %v5700_v4 = vrot.slane %v5694_v55, 1  ;;  %v5693_v26 = vsel %vm9855_vm5, 0.0, %v5687_v27  ;;  %v5711_v5 = vrot.slane %v5694_v55, 2  ;;  %7333 = vmatprep.subr.bf16.mxu0 %v9811_v31  ;;  %v6359_v28 = vld [vmem:[%s9714_s21 + $0x1] ss:$0 sm:$0xff]  ;;  %vm9869_vm3 = vmmov %vm9868_vm10 }
0x2480   : > { %v5698_v24 = vrot.slane %v5689_v38, 1  ;;  %v5697_v61 = vrot.slane %v5693_v26, 1  ;;  %v5708_v36 = vrot.slane %v5693_v26, 2  ;;  %v5709_v37 = vrot.slane %v5689_v38, 2  ;;  %vm9870_vm5 = vmmov %vm9867_vm4 }
0x2482   : > { %v5701_v48 = vsel %vm9856_vm11, %v5698_v24, %v5700_v4  ;;  %v5699_v44 = vsel %vm9857_vm14, %v5697_v61, %v5698_v24  ;;  %v5710_v33 = vsel %vm9858_vm6, %v5708_v36, %v5709_v37  ;;  %v5712_v60 = vsel %vm9859_vm13, %v5709_v37, %v5711_v5  ;;  %7335 = vmatpush1.bf16.msra.mxu0 %v7334_v15  ;;  %vm9871_vm11 = vmmov %vm9862_vm0 }
0x2483   : > { %5704 = vrot.lane.b32.xlu0 %v5701_v48, %s9799_s27  ;;  %5702 = vrot.lane.b32.xlu1 %v5699_v44, %s9799_s27  ;;  %vm9872_vm14 = vmmov %vm9862_vm0 }
0x2484   : > { %7336 = vmatprep.subr.bf16.mxu0 %v9811_v31  ;;  %vm9873_vm6 = vmmov %vm9862_vm0 }
0x2485   : > { %vm9874_vm13 = vmmov %vm9862_vm0 }
0x2486   : > { %7338 = vmatpush1.bf16.msra.mxu0 %v7337_v34  ;;  %v6392_v34 = vld [vmem:[%s9717_s24 + $0x1] ss:$0 sm:$0xff] }
0x2487   : > { %5713 = vrot.lane.b32.xlu1 %v5710_v33, %s9798_s7  ;;  %7339 = vmatprep.subr.bf16.mxu0 %v9811_v31 }
0x248a   : > { %7341 = vmatpush1.bf16.msra.mxu0 %v7340_v0 }
0x248b   : > { %5715 = vrot.lane.b32.xlu1 %v5712_v60, %s9798_s7 }
0x24f5   : > { %v5703_v54 = vpop.permute.xlu1 %5702  ;;  %v5705_v23 = vpop.permute.xlu0 %5704 }
0x24f6   : > { %v5719_v20 = vsel %vm924_vm7, %v5693_v26, %v5703_v54  ;;  %v5720_v14 = vsel %vm924_vm7, %v5689_v38, %v5705_v23 }
0x24f9   : > { %v5714_v42 = vpop.permute.xlu1 %5713 }
0x24fa   : > { %v5721_v52 = vsel %vm9860_vm8, %v5719_v20, %v5714_v42 }
0x24fb   : > { %6921 = vmatprep.mubr.msk.f32.mxu1 %vm9861_vm15, %v5721_v52 }
0x24fd   : > { %v5716_v8 = vpop.permute.xlu1 %5715 }
0x24fe   : > { %v5722_v3 = vsel %vm9862_vm0, %v5720_v14, %v5716_v8 }
0x24ff   : > { %6922 = vmatmul.mubr.msk.f32.vlgmr.msra.gmra.mrb[44].mxu1 %vm9863_vm1, %v5722_v3 }
0x25d2   : > { %v6923_v27 = vpop.f32.mrb[44].mxu1 }
0x25d3   : > { %v5807_v55 = vadd.f32 %v6923_v27, %v6359_v28  ;;  %v5801_v38 = vpop.f32.mrb[45].mxu1 }
0x25d4   : > { %v5802_v4 = vadd.f32 %v6359_v28, %v5801_v38 }
0x25d5   : > { %v5811_v26 = vmax.f32 %v5807_v55, 0.0 }
0x25d6   : > { %v5810_v24 = vmax.f32 %v5802_v4, 0.0 }
0x25d7   : > { %v5813_v61 = vmul.f32 %v7877_v17, %v5811_v26 }
0x25d8   : > { %v5812_v48 = vmul.f32 %v7874_v16, %v5810_v24 }
0x25d9   : > { %v5844_v44 = vrot.slane %v5813_v61, 7 }
0x25da   : > { %v5843_v36 = vrot.slane %v5812_v48, 7 }
0x25db   : > { %v5850_v37 = vsel %vm9864_vm9, %v5844_v44, 0.0 }
0x25dc   : > { %v5856_v31 = vrot.slane %v5850_v37, 1  ;;  %v5867_v33 = vrot.slane %v5850_v37, 2  ;;  %v5845_v5 = vsel %vm9865_vm12, %v5843_v36, %v5844_v44  ;;  %v5849_v60 = vsel %vm9866_vm2, 0.0, %v5843_v36 }
0x25dd   : > { %v5853_v54 = vrot.slane %v5849_v60, 1  ;;  %v5864_v20 = vrot.slane %v5849_v60, 2  ;;  %v5865_v42 = vrot.slane %v5845_v5, 2  ;;  %v5854_v23 = vrot.slane %v5845_v5, 1 }
0x25df   : > { %v5866_v52 = vsel %vm9867_vm4, %v5864_v20, %v5865_v42  ;;  %v5857_v14 = vsel %vm9868_vm10, %v5854_v23, %v5856_v31  ;;  %v5855_v8 = vsel %vm9869_vm3, %v5853_v54, %v5854_v23  ;;  %v5868_v3 = vsel %vm9870_vm5, %v5865_v42, %v5867_v33 }
0x25e0   : > { %6388 = vmatprep.mubr.msk.f32.mxu0 %vm9871_vm11, %v5866_v52  ;;  %5860 = vrot.lane.b32.xlu1 %v5857_v14, %s9798_s7 }
0x25e1   : > { %5858 = vrot.lane.b32.xlu0 %v5855_v8, %s9798_s7  ;;  %s9875_s7 = sld [smem:[#allocation11_spill]] }
0x25e7   : > { %s6400_s0 = sshll.u32 %s9875_s7, 8  ;;  %s9652_s7 = scalar_lea.sflag [#allocation5], %s762_s10 }
0x25e8   : > { %s9646_s27 = scalar_lea.hbm %s9877_s8, %s6400_s0  ;;  %s7565_s0 = scalar_lea.vmem %s7564_s4, 512 }
0x25e9   : > { %p7567_p6 = scmp.lt.s32.totalorder %s7565_s0, %s7559_s6 }
0x25eb   : > { %p7568_p7 = por %p7567_p6, %p7566_p5 }
0x25ed   : > { %p7569_p8 = pnand %p7568_p7, %p7562_p4 }
0x2652   : > { %v5861_v59 = vpop.permute.xlu1 %5860 }
0x2653   : > { %v5859_v9 = vpop.permute.xlu0 %5858  ;;  %v5870_v47 = vsel %vm9874_vm13, %v5845_v5, %v5861_v59 }
0x2654   : > { %v5869_v50 = vsel %vm9872_vm14, %v5849_v60, %v5859_v9 }
0x2655   : > { %5946 = vmatmul.mubr.f32.vlgmr.msra.gmra.mrb[28].mxu0 %v5869_v50 }
0x2656   : > { %6389 = vmatprep.mubr.msk.f32.mxu0 %vm9873_vm6, %v5868_v3 }
0x2659   : > { %5951 = vmatmul.mubr.f32.gmra.mrb[30].mxu0 %v5870_v47 }
0x2728   : > { %v5947_v12 = vpop.f32.mrb[28].mxu0 }
0x2729   : > { %v5948_v57 = vadd.f32 %v6387_v30, %v5947_v12  ;;  %v5949_v7 = vpop.f32.mrb[29].mxu0 }
0x272b   : > { %v5956_v58 = vmul.f32 %v7874_v16, %v5948_v57 }
0x272c   : > { %v5952_v39 = vpop.f32.mrb[30].mxu0 }
0x272d   : > { %v5953_v13 = vadd.f32 %v6387_v30, %v5952_v39  ;;  %v5954_v63 = vpop.f32.mrb[31].mxu0  ;;  %v5958_v11 = vadd.f32 %v5956_v58, %v9492_v10 }
0x272f   : > { %v5957_v6 = vmul.f32 %v7877_v17, %v5953_v13  ;;  %v5964_v35 = vsel %vm924_vm7, %v5958_v11, 0.0 }
0x2730   : > { %5965 = vadd.xlane.f32.xlu0 %v5964_v35 }
0x2731   : > { %v5959_v21 = vadd.f32 %v5957_v6, %v9490_v2 }
0x2733   : > { %v5967_v53 = vsel %vm924_vm7, %v5959_v21, 0.0 }
0x2734   : > { %5968 = vadd.xlane.f32.xlu1 %v5967_v53 }
0x27bd   : > { %v5966_v29 = vpop.xlane.xlu0 %5965 }
0x27be   : > { %v5970_v18 = vmul.f32 0.03125, %v5966_v29 }
0x27c0   : > { %v5972_v1 = vsub.f32 %v5958_v11, %v5970_v18 }
0x27c1   : > { %v5969_v32 = vpop.xlane.xlu1 %5968 }
0x27c2   : > { %v5971_v25 = vmul.f32 0.03125, %v5969_v32  ;;  %v5974_v62 = vmul.f32 %v5972_v1, %v5972_v1 }
0x27c4   : > { %v5973_v51 = vsub.f32 %v5959_v21, %v5971_v25  ;;  %v5976_v10 = vsel %vm924_vm7, %v5974_v62, 0.0 }
0x27c5   : > { %5977 = vadd.xlane.f32.xlu0 %v5976_v10 }
0x27c6   : > { %v5975_v43 = vmul.f32 %v5973_v51, %v5973_v51 }
0x27c8   : > { %v5979_v40 = vsel %vm924_vm7, %v5975_v43, 0.0 }
0x27c9   : > { %5980 = vadd.xlane.f32.xlu0 %v5979_v40 }
0x2852   : > { %v5978_v46 = vpop.xlane.xlu0 %5977 }
0x2853   : > { %v5982_v2 = vmul.f32 0.03125, %v5978_v46 }
0x2855   : > { %v5984_v19 = vadd.f32 0.0001, %v5982_v2 }
0x2856   : > { %v5981_v22 = vpop.xlane.xlu0 %5980 }
0x2857   : > { %7543 = vrsqrt.f32 %v5984_v19  ;;  %v5983_v15 = vmul.f32 0.03125, %v5981_v22 }
0x2859   : > { %v5985_v45 = vadd.f32 0.0001, %v5983_v15 }
0x285b   : > { %7545 = vrsqrt.f32 %v5985_v45 }
0x2861   : > { %v7544_v41 = vpop.eup %7543 }
0x2862   : > { %v5988_v56 = vmul.f32 %v7544_v41, %v5972_v1 }
0x2864   : > { %v5996_v0 = vmul.f32 %v6392_v34, %v5988_v56 }
0x2865   : > { %v7546_v28 = vpop.eup %7545 }
0x2866   : > { %v6004_v27 = vadd.f32 %v6393_v49, %v5996_v0  ;;  %v5989_v55 = vmul.f32 %v7546_v28, %v5973_v51 }
0x2868   : > { %v5997_v38 = vmul.f32 %v6392_v34, %v5989_v55  ;;  %v6006_v4 = vmul.f32 %v7874_v16, %v6004_v27 }
0x286a   : > { %v6005_v26 = vadd.f32 %v6393_v49, %v5997_v38  ;;  %6008 = vst.msk [vmem:[%s764_s9] sm:$0xff] %vm924_vm7, %v6006_v4 }
0x286c   : > { %v6007_v24 = vmul.f32 %v7877_v17, %v6005_v26 }
0x286e   : > { %6009 = vst.msk [vmem:[%s764_s9 + $0x8] sm:$0xff] %vm924_vm7, %v6007_v24 }
0x286f   : > { %7572 = shalt.err (!%p7569_p8)
}
0x2870   : > { %s7573_s10 = scalar_lea.hbm %s9646_s27, 256  ;;  %s7577_s30 = scalar_lea.hbm %s9877_s8, 512 }
0x2871   : > { %p7574_p9 = scmp.ne.s32.totalorder %s9646_s27, %s7573_s10  ;;  %p7578_p0 = scmp.lt.u32.totalorder %s9646_s27, %s9877_s8 }
0x2872   : > { %p7579_p1 = scmp.lt.u32.totalorder %s7577_s30, %s7573_s10  ;;  %p7581_p3 = scmp.lt.u32.totalorder %s7573_s10, %s9646_s27 }
0x2873   : > { %p7575_p12 = pnand %p7574_p9, %p7820_p10 }
0x2874   : > { %p7580_p2 = por %p7579_p1, %p7578_p0 }
0x2875   : > { %p7576_p13 = pneg %p7575_p12 }
0x2876   : > { %p7582_p4 = por %p7581_p3, %p7580_p2 }
0x2878   : > { %p7583_p5 = pnand %p7582_p4, %p7576_p13 }
0x287a   : > { %7586 = shalt.err (!%p7583_p5)
}
0x287b   : > { %s7642_s6 = smov 128   ;;  %s7643_s0 = smov 8  }
0x287c   : > { %7358 = dma.vmem_to_hbm [thread:$0]  (%p7820_p10), %s9648_s1, 256, %s9646_s27, %s9652_s7, %s7642_s6, %s7642_s6, %s7643_s0  }
0x287d PF: > { %s9878_s9 = sld [smem:[#allocation10_spill]]  ;;  %s9879_s2 = sld [smem:[#allocation8_spill]] }
0x2883   : > { %p7364_p6 = scmp.ge.s32.totalorder %s9878_s9, 2  ;;  %s6039_s3 = sand.u32 1, %s9879_s2  }
0x2884   : > { %s6040_s10 = scalar_lea.sflag [#allocation5], %s6039_s3 }
0x2885   : > { %p7361_p7 = pnand %p7364_p6, %p7824_p11 }
0x2887   : > { %7606 = dma.done.wait (!%p7361_p7), %s6040_s10, 256  }
0x2888   : > { %7608 = vsyncadd (!%p7361_p7), %s6040_s10, 4294967040  ;;  %s9881_s9 = sld [smem:[#allocation12_spill]]  ;;  %s9882_s30 = sld [smem:[#allocation9_spill]] }
0x2889   : > { %s9883_s0 = sld [smem:[#allocation13_spill]]  ;;  %s9884_s4 = smov %s7615_s29 }
0x288e   : > { %p42_p8 = scmp.ge.s32.totalorder %s9881_s9, 4   ;;  %s9885_s29 = smov %s9882_s30 }
0x2890   :  { %44 = sbr.rel (!%p42_p8) target bundleno = 31 (0x1f), region = 195 }
0x2897   :  { %6045 = vsyncpa [#allocation5], 1 }
0x2898   :  { %6047 = vsyncpa [#allocation5 + $0x1], 1 }

</bundles_post_ra>
